<compile_context>
chip_gen: v7x
topology: tpu7x:2x2x1
jax: 0.10.0
libtpu: 0.0.40
codegen_flags: <defaults>
</compile_context>

<pallas_src>
import math

import jax
import jax.numpy as jnp
from jax.experimental import pallas as pl
from jax.experimental.pallas import tpu as pltpu


def _gelu_linear_kernel(x_ref, w_ref, b_ref, o_ref):
    # x_ref: (TM, K) f32, w_ref: (K, N) bf16, b_ref: (1, N) f32, o_ref: (TM, N) f32
    x = x_ref[...]
    # tanh-approx GELU (EUP transcendental; f32 elementwise math works on every
    # TPU generation, compute is hidden under the DMA anyway).
    c = math.sqrt(2.0 / math.pi)
    g = 0.5 * x * (1.0 + jnp.tanh(c * x * (1.0 + 0.044715 * (x * x))))
    # Cast to bf16 only at the MXU boundary; accumulate in f32.
    acc = jnp.dot(g.astype(w_ref.dtype), w_ref[...],
                  preferred_element_type=jnp.float32)
    o_ref[...] = acc + b_ref[...]


def gelu_linear_dropout(x, w_bf16, b, *, tm=192):
    """Computes dropout(linear(gelu(x))) with eval-mode dropout (identity).

    x: [B, S, K] float32, w_bf16: [K, N] (ideally stored bfloat16), b: [N]
    -> [B, S, N] float32
    """
    # TODO(synk): training-mode dropout (p=0.1) not implemented; identity in eval.
    B, S, K = x.shape
    N = w_bf16.shape[1]
    M = B * S

    tm = min(tm, M)
    grid_m = pl.cdiv(M, tm)  # no padding: partial trailing block handled by Pallas

    x2d = x.reshape(M, K)                       # metadata-only reshape, stays f32
    if w_bf16.dtype != jnp.bfloat16:            # no-op when weights already bf16
        w_bf16 = w_bf16.astype(jnp.bfloat16)
    b2d = b.astype(jnp.float32).reshape(1, N)

    cost = pl.CostEstimate(
        flops=2 * M * K * N,
        transcendentals=M * K,
        bytes_accessed=(M * K * 4) + (K * N * 2) + (N * 4) + (M * N * 4),
    )

    out = pl.pallas_call(
        _gelu_linear_kernel,
        out_shape=jax.ShapeDtypeStruct((M, N), jnp.float32),
        grid_spec=pltpu.PrefetchScalarGridSpec(
            num_scalar_prefetch=0,
            grid=(grid_m,),
            in_specs=[
                pl.BlockSpec((tm, K), lambda i: (i, 0)),
                pl.BlockSpec((K, N), lambda i: (0, 0)),   # constant block: fetched once
                pl.BlockSpec((1, N), lambda i: (0, 0)),   # constant block: fetched once
            ],
            out_specs=pl.BlockSpec((tm, N), lambda i: (i, 0)),
        ),
        compiler_params=pltpu.CompilerParams(
            dimension_semantics=("parallel",),
        ),
        cost_estimate=cost,
    )(x2d, w_bf16, b2d)

    return out.reshape(B, S, N)


if __name__ == "__main__":
    B, S, H_IN, H_OUT = 1, 384, 1024, 256

    key = jax.random.PRNGKey(0)
    kx, kw, kb = jax.random.split(key, 3)

    x = jax.random.normal(kx, (B, S, H_IN), dtype=jnp.float32)
    # Deterministic parameter init (Linear(1024 -> 256, bias=True)).
    bound = 1.0 / math.sqrt(H_IN)
    w = jax.random.uniform(kw, (H_IN, H_OUT), minval=-bound, maxval=bound,
                           dtype=jnp.float32)
    b = jax.random.uniform(kb, (H_OUT,), minval=-bound, maxval=bound,
                           dtype=jnp.float32)

    # Weights held in bf16 (cast done once here, outside the per-call path).
    w_bf16 = w.astype(jnp.bfloat16)

    y = gelu_linear_dropout(x, w_bf16, b)
    jax.block_until_ready(y)

    # Reference check against the exact (erf) f32 module semantics.  Remaining
    # error sources: bf16 weights / bf16 GELU-output matmul + tanh-approx GELU.
    g_ref = 0.5 * x * (1.0 + jax.lax.erf(x / math.sqrt(2.0)))
    y_ref = jnp.einsum("bsk,kn->bsn", g_ref, w) + b
    assert y.shape == (B, S, H_OUT)
    assert jnp.allclose(y, y_ref, atol=3e-2, rtol=3e-2)

    print("KERNEL_OK")
</pallas_src>

<mosaic_0001>
module attributes {stable_mosaic.version = 11 : i64} {
  func.func @_gelu_linear_kernel(%arg0: i32, %arg1: memref<192x1024xf32, #tpu.memory_space<vmem>>, %arg2: memref<1024x256xbf16, #tpu.memory_space<vmem>>, %arg3: memref<1x256xf32, #tpu.memory_space<vmem>>, %arg4: memref<192x256xf32, #tpu.memory_space<vmem>>) attributes {dimension_semantics = [#tpu.dimension_semantics<parallel>], iteration_bounds = array<i64: 2>, scalar_prefetch = 0 : i64, scratch_operands = 0 : i64, tpu.core_type = #tpu.core_type<tc>, window_params = [{transform_indices = @transform_0, window_bounds = array<i64: 192, 1024>}, {pipeline_mode = #tpu.pipeline_mode<synchronous>, transform_indices = @transform_1, window_bounds = array<i64: 1024, 256>}, {pipeline_mode = #tpu.pipeline_mode<synchronous>, transform_indices = @transform_2, window_bounds = array<i64: 1, 256>}, {transform_indices = @transform_3, window_bounds = array<i64: 192, 256>}]} {
    %c0 = arith.constant 0 : index
    %c0_0 = arith.constant 0 : index
    %0 = vector.load %arg1[%c0, %c0_0] : memref<192x1024xf32, #tpu.memory_space<vmem>>, vector<192x1024xf32>
    %cst = arith.constant 5.000000e-01 : f32
    %1 = vector.broadcast %cst : f32 to vector<192x1024xf32>
    %2 = arith.mulf %1, %0 : vector<192x1024xf32>
    %cst_1 = arith.constant 0.797884583 : f32
    %3 = vector.broadcast %cst_1 : f32 to vector<192x1024xf32>
    %4 = arith.mulf %3, %0 : vector<192x1024xf32>
    %5 = arith.mulf %0, %0 : vector<192x1024xf32>
    %cst_2 = arith.constant 4.471500e-02 : f32
    %6 = vector.broadcast %cst_2 : f32 to vector<192x1024xf32>
    %7 = arith.mulf %6, %5 : vector<192x1024xf32>
    %cst_3 = arith.constant 1.000000e+00 : f32
    %8 = vector.broadcast %cst_3 : f32 to vector<192x1024xf32>
    %9 = arith.addf %8, %7 : vector<192x1024xf32>
    %10 = arith.mulf %4, %9 : vector<192x1024xf32>
    %11 = math.tanh %10 : vector<192x1024xf32>
    %cst_4 = arith.constant 1.000000e+00 : f32
    %12 = vector.broadcast %cst_4 : f32 to vector<192x1024xf32>
    %13 = arith.addf %12, %11 : vector<192x1024xf32>
    %14 = arith.mulf %2, %13 : vector<192x1024xf32>
    %15 = arith.truncf %14 : vector<192x1024xf32> to vector<192x1024xbf16>
    %c0_5 = arith.constant 0 : index
    %c0_6 = arith.constant 0 : index
    %16 = vector.load %arg2[%c0_5, %c0_6] : memref<1024x256xbf16, #tpu.memory_space<vmem>>, vector<1024x256xbf16>
    %cst_7 = arith.constant dense<0.000000e+00> : vector<192x256xf32>
    %17 = tpu.matmul %15, %16, %cst_7 {dimension_numbers = #tpu.dot_dimension_numbers<[1], [0], [0], [1], [0, 0, 1, 1], [], []>} : vector<192x1024xbf16>, vector<1024x256xbf16>, vector<192x256xf32> -> vector<192x256xf32>
    %c0_8 = arith.constant 0 : index
    %c0_9 = arith.constant 0 : index
    %18 = vector.load %arg3[%c0_8, %c0_9] : memref<1x256xf32, #tpu.memory_space<vmem>>, vector<1x256xf32>
    %19 = vector.broadcast %18 : vector<1x256xf32> to vector<192x256xf32>
    %20 = arith.addf %17, %19 : vector<192x256xf32>
    %c0_10 = arith.constant 0 : index
    %c0_11 = arith.constant 0 : index
    %21 = vector.load %arg4[%c0_10, %c0_11] : memref<192x256xf32, #tpu.memory_space<vmem>>, vector<192x256xf32>
    tpu.vector_store %arg4[%c0_10, %c0_11], %20 {strides = array<i32>} : memref<192x256xf32, #tpu.memory_space<vmem>>, vector<192x256xf32>,
    return
  }
  func.func @transform_0(%arg0: i32) -> (i32, i32) {
    %c0_i32 = arith.constant 0 : i32
    %c0_i32_0 = arith.constant 0 : i32
    return %arg0, %c0_i32 : i32, i32
  }
  func.func @transform_1(%arg0: i32) -> (i32, i32) {
    %c0_i32 = arith.constant 0 : i32
    %c0_i32_0 = arith.constant 0 : i32
    %c0_i32_1 = arith.constant 0 : i32
    return %c0_i32, %c0_i32_0 : i32, i32
  }
  func.func @transform_2(%arg0: i32) -> (i32, i32) {
    %c0_i32 = arith.constant 0 : i32
    %c0_i32_0 = arith.constant 0 : i32
    %c0_i32_1 = arith.constant 0 : i32
    return %c0_i32, %c0_i32_0 : i32, i32
  }
  func.func @transform_3(%arg0: i32) -> (i32, i32) {
    %c0_i32 = arith.constant 0 : i32
    %c0_i32_0 = arith.constant 0 : i32
    return %arg0, %c0_i32 : i32, i32
  }
}

</mosaic_0001>

<bundles_post_ra>
// kernel: tpu_custom_call.1
= control target key start
LH: loop header
LB: loop body
LE: loop exit
PB: predicated region body
PF: predicated region fallthrough
CT: control target
= control target key end

     0   :  { %8 = vsyncpa [#allocation3], 0  ;;  %s6136_s0 = inlined_call_operand.hbm [shape: f32[384,1024], index: 0, kind: input, shape index: {}]   ;;  %s6137_s1 = inlined_call_operand.hbm [shape: bf16[1024,256], index: 1, kind: input, shape index: {}]   ;;  %s6138_s2 = inlined_call_operand.hbm [shape: f32[1,256], index: 2, kind: input, shape index: {}]   ;;  %s6139_s3 = inlined_call_operand.hbm [shape: f32[384,256], index: 3, kind: output, shape index: {}]  }
   0x1   :  { %10 = vsyncpa [#allocation3 + $0x1], 0 }
   0x2   :  { %11 = vsyncpa [#allocation6], 0 }
   0x3   :  { %12 = vsyncpa [#allocation4], 0 }
   0x4   :  { %14 = vsyncpa [#allocation4 + $0x1], 0  ;;  %s4962_s12 = smov 0   ;;  %s4964_s13 = smov 0  }
   0x5   :  { %s4966_s14 = smov 0   ;;  %s4968_s15 = smov 0  }
   0x6 LB: > { %s4983_s16 = sadd.s32 4294967295, %s4930_s15   ;;  %s3782_s17 = sadd.s32 4294967294, %s4930_s15   ;;  %s4930_s15 = sphi %s4968_s15, %s6159_s15   ;;  %s4926_s14 = sphi %s4966_s14, %s6158_s14   ;;  %s4922_s13 = sphi %s4964_s13, %s6157_s13   ;;  %s4918_s12 = sphi %s4962_s12, %s6156_s12  }
   0x7   : > { %p40_p0 = scmp.ne.s32.totalorder %s4922_s13, %s4918_s12  ;;  %p6140_p1 = scmp.eq.s32.totalorder %s4983_s16, 0 }
   0x8   : > { %p112_p3 = scmp.eq.s32.totalorder %s3782_s17, 1  ;;  %p3783_p5 = scmp.ge.s32.totalorder %s4930_s15, 1 }
   0x9   : > { %p4992_p4 = por %p6140_p1, %p40_p0  ;;  %p119_p7 = scmp.lt.s32.totalorder %s4930_s15, 3 }
   0xa   : > { %p4997_p6 = por %p112_p3, %p40_p0  ;;  %s4932_s21 = smov [#allocation5]  }
   0xb   : > { %s6143_s18 = scalar_select %p4992_p4, 1, 0 }
   0xc   : > { %s6144_s19 = scalar_select %p4997_p6, 1, 0 }
   0xd   : > { %p5002_p8 = pnand %p3783_p5, %p119_p7  ;;  %s131_s22 = sshll.u32 %s4932_s21, 4  ;;  %s5006_s22 = int_to_ptr.vmem [resolvable:$true] %s131_s22 }
   0xe   : > { %s4933_s24 = smov [#allocation7]   ;;  %s4774_s28 = scalar_lea.hbm %s6137_s1, 16384 }
   0xf   : > { %p4137_p9 = pneg %p5002_p8  ;;  %s145_s25 = sshll.u32 %s4933_s24, 4  ;;  %s5017_s25 = int_to_ptr.vmem [resolvable:$true] %s145_s25 }
  0x10   : > { %p4775_p12 = scmp.ne.s32.totalorder %s6137_s1, %s4774_s28  ;;  %p4781_p5 = scmp.lt.u32.totalorder %s4774_s28, %s6137_s1 }
  0x11   : > { %p5013_p11 = pnand %p4137_p9, %p6140_p1 }
  0x13   : > { %p4776_p13 = pneg %p5013_p11 }
  0x15   : > { %p4777_p0 = pnand %p4776_p13, %p4775_p12 }
  0x17   : > { %p4778_p3 = pneg %p4777_p0 }
  0x19   : > { %p4783_p7 = pnand %p4781_p5, %p4778_p3 }
  0x1b   : > { %4786 = shalt.err (!%p4783_p7)
}
  0x1c   : > { %s4787_s6 = scalar_lea.vmem %s5006_s22, 16384  ;;  %p4795_p2 = scmp.lt.s32.totalorder %s5006_s22, %s5006_s22 }
  0x1d   : > { %p4788_p9 = scmp.ne.s32.totalorder %s5006_s22, %s4787_s6  ;;  %p4796_p12 = scmp.lt.s32.totalorder %s4787_s6, %s4787_s6 }
  0x1f   : > { %p4790_p10 = pnand %p4788_p9, %p4776_p13  ;;  %p4797_p0 = por %p4796_p12, %p4795_p2 }
  0x21   : > { %p4791_p1 = pneg %p4790_p10 }
  0x23   : > { %p4798_p6 = pnand %p4797_p0, %p4791_p1 }
  0x25   : > { %4801 = shalt.err (!%p4798_p6)
}
  0x26   : > { %s4934_s7 = smov 128   ;;  %s4935_s8 = smov 8  }
  0x27   : > { %4140 = dma.hbm_to_vmem [thread:$0]  (!%p5013_p11), %s6137_s1, 16384, %s5006_s22, [#allocation6], %s4934_s7, %s4934_s7, %s4935_s8  }
  0x28   : > { %s4802_s21 = scalar_lea.hbm %s6138_s2, 32 }
  0x29   : > { %p4803_p2 = scmp.ne.s32.totalorder %s6138_s2, %s4802_s21  ;;  %p4809_p10 = scmp.lt.u32.totalorder %s4802_s21, %s6138_s2 }
  0x2b   : > { %p4805_p1 = pnand %p4803_p2, %p4776_p13 }
  0x2d   : > { %p4806_p6 = pneg %p4805_p1 }
  0x2f   : > { %p4811_p3 = pnand %p4809_p10, %p4806_p6 }
  0x31   : > { %4814 = shalt.err (!%p4811_p3)
}
  0x32   : > { %s4815_s22 = scalar_lea.vmem %s5017_s25, 32  ;;  %p4823_p12 = scmp.lt.s32.totalorder %s5017_s25, %s5017_s25 }
  0x33   : > { %p4816_p5 = scmp.ne.s32.totalorder %s5017_s25, %s4815_s22  ;;  %p4824_p0 = scmp.lt.s32.totalorder %s4815_s22, %s4815_s22 }
  0x35   : > { %p4818_p7 = pnand %p4816_p5, %p4776_p13  ;;  %p4825_p2 = por %p4824_p0, %p4823_p12 }
  0x37   : > { %p4819_p9 = pneg %p4818_p7 }
  0x39   : > { %p4826_p1 = pnand %p4825_p2, %p4819_p9 }
  0x3b   : > { %4829 = shalt.err (!%p4826_p1)
}
  0x3c   : > { %4143 = dma.hbm_to_vmem [thread:$0]  (!%p5013_p11), %s6138_s2, 32, %s5017_s25, [#allocation6]  }
  0x3d   : > { %s5072_s4 = sadd.s32 1, %s4930_s15   ;;  %s27_s23 = sadd.s32 1, %s4926_s14 }
  0x3e   : > { %s24_s5 = ssub.s32 %s4930_s15, %s5072_s4  ;;  %p34_p13 = scmp.ne.s32.totalorder %s4926_s14, %s4922_s13 }
  0x3f   : > { %p25_p6 = scmp.eq.s32.totalorder %s24_s5, 0  ;;  %p35_p10 = scmp.eq.s32.totalorder %s4930_s15, 0 }
  0x40   : > { %p6147_p3 = scmp.eq.s32.totalorder %s4983_s16, 1  ;;  %p4154_p7 = scmp.lt.s32.totalorder %s4930_s15, 2 }
  0x41   : > { %s5088_s7 = scalar_select %p25_p6, %s4926_s14, %s27_s23  }
  0x42   : > { %p5082_p5 = por %p6147_p3, %p34_p13  ;;  %p36_p9 = por %p35_p10, %p34_p13 }
  0x43   : > { %s156_s8 = sand.u32 1, %s4926_s14   ;;  %s3928_s25 = smul.u32 24576, %s4930_s15 }
  0x44   : > { %s6148_s6 = scalar_select %p5082_p5, 1, 0 }
  0x45   : > { %s4122_s9 = smul.u32 1536, %s156_s8  ;;  %p5092_p11 = pnand %p4154_p7, %p36_p9 }
  0x46   : > { %s5099_s21 = scalar_lea.hbm %s6136_s0, %s3928_s25  ;;  %s5103_s27 = scalar_lea.sflag [#allocation3], %s156_s8 }
  0x47   : > { %s160_s24 = scalar_lea.vmem [#allocation2], %s4122_s9  ;;  %s4830_s28 = scalar_lea.hbm %s5099_s21, 24576 }
  0x48   : > { %s168_s26 = sshll.u32 %s160_s24, 4  ;;  %p4831_p12 = scmp.ne.s32.totalorder %s5099_s21, %s4830_s28  ;;  %s5101_s26 = int_to_ptr.vmem [resolvable:$true] %s168_s26 }
  0x49   : > { %p4832_p0 = pneg %p5092_p11  ;;  %s4835_s30 = scalar_lea.hbm %s6136_s0, 49152 }
  0x4a   : > { %p4836_p13 = scmp.lt.u32.totalorder %s5099_s21, %s6136_s0  ;;  %p4837_p6 = scmp.lt.u32.totalorder %s4835_s30, %s4830_s28 }
  0x4b   : > { %p4833_p2 = pnand %p4832_p0, %p4831_p12  ;;  %p4839_p3 = scmp.lt.u32.totalorder %s4830_s28, %s5099_s21 }
  0x4c   : > { %p4838_p10 = por %p4837_p6, %p4836_p13 }
  0x4d   : > { %p4834_p1 = pneg %p4833_p2 }
  0x4e   : > { %p4840_p7 = por %p4839_p3, %p4838_p10 }
  0x50   : > { %p4841_p9 = pnand %p4840_p7, %p4834_p1 }
  0x52   : > { %4844 = shalt.err (!%p4841_p9)
}
  0x53   : > { %s4845_s8 = scalar_lea.vmem %s5101_s26, 24576  ;;  %s4936_s9 = smov [#allocation2]  }
  0x54   : > { %p4846_p12 = scmp.ne.s32.totalorder %s5101_s26, %s4845_s8  ;;  %s4850_s25 = sshll.u32 %s4936_s9, 4  ;;  %s4851_s25 = int_to_ptr.vmem [resolvable:$false] %s4850_s25 }
  0x55   : > { %s4852_s11 = scalar_lea.vmem %s4851_s25, 49152  ;;  %p4853_p4 = scmp.lt.s32.totalorder %s5101_s26, %s4851_s25 }
  0x56   : > { %p4848_p2 = pnand %p4846_p12, %p4832_p0  ;;  %p4854_p13 = scmp.lt.s32.totalorder %s4852_s11, %s4845_s8 }
  0x58   : > { %p4849_p5 = pneg %p4848_p2  ;;  %p4855_p6 = por %p4854_p13, %p4853_p4 }
  0x5a   : > { %p4856_p10 = pnand %p4855_p6, %p4849_p5 }
  0x5c   : > { %4859 = shalt.err (!%p4856_p10)
}
  0x5d   : > { %s4937_s17 = smov 1024   ;;  %s4938_s24 = smov 64  }
  0x5e   : > { %4147 = dma.hbm_to_vmem [thread:$0]  (!%p5092_p11), %s5099_s21, 24576, %s5101_s26, %s5103_s27, %s4937_s17, %s4937_s17, %s4938_s24  }
  0x5f   : > { %180 = sbr.rel (%p5002_p8) target bundleno = 841 (0x349), region = 32  ;;  %s5134_s28 = sand.u32 (!%p5002_p8), 1, %s4922_s13  }
  0x60   : > { %s4123_s22 = smul.u32 (!%p5002_p8), 1536, %s5134_s28  ;;  %s183_s29 = scalar_lea.sflag (!%p5002_p8), [#allocation3], %s5134_s28 }
  0x61   : > { %p6150_p4 = scmp.ne.s32.totalorder (!%p5002_p8), %s6143_s18, 0 }
  0x62   : > { %s5138_s30 = scalar_lea.vmem (!%p5002_p8), [#allocation2], %s4123_s22 }
  0x66   : > { %4905 = dma.done.wait (%p6150_p4), %s183_s29, 24576  }
  0x67   : > { %4907 = vsyncadd (%p6150_p4), %s183_s29, 4294942720  ;;  %p6151_p5 = scmp.eq.s32.totalorder %s4983_s16, 0 }
  0x69   : > { %4909 = dma.done.wait (%p6151_p5), [#allocation6], 16416   ;;  %p6152_p8 = pmov %p6151_p5 }
  0x6a   : > { %v4198_v0 = vld [vmem:[#allocation5 + $0x4] ss:$8 sps:$4 sm:$0xff]   ;;  %v4202_v2 = vld [vmem:[#allocation5] ss:$8 sps:$4 sm:$0xff]   ;;  %v4204_v4 = vld [vmem:[#allocation5 + $0x14] ss:$8 sps:$4 sm:$0xff]  }
  0x6b   : > { %4911 = vsyncadd (%p6152_p8), [#allocation6], 4294950880  ;;  %v4200_v1 = vld [vmem:[#allocation5 + $0x204] ss:$8 sps:$4 sm:$0xff]   ;;  %3015 = vmatprep.subr.bf16.mxu1 %v4198_v0  ;;  %v4203_v3 = vld [vmem:[#allocation5 + $0x200] ss:$8 sps:$4 sm:$0xff]  }
  0x6c   : > { %3321 = vmatprep.subr.bf16.mxu0 %v4200_v1  ;;  %3016 = vmatpush1.bf16.msra.mxu1 %v4202_v2  ;;  %v4206_v5 = vld [vmem:[#allocation5 + $0x214] ss:$8 sps:$4 sm:$0xff]   ;;  %v4208_v6 = vld [vmem:[#allocation5 + $0x10] ss:$8 sps:$4 sm:$0xff]   ;;  %v4210_v8 = vld [vmem:[#allocation5 + $0x24] ss:$8 sps:$4 sm:$0xff]  }
  0x6d   : > { %3322 = vmatpush1.bf16.msra.mxu0 %v4203_v3  ;;  %3017 = vmatprep.subr.bf16.mxu1 %v4204_v4  ;;  %v4209_v7 = vld [vmem:[#allocation5 + $0x210] ss:$8 sps:$4 sm:$0xff]   ;;  %v4212_v9 = vld [vmem:[#allocation5 + $0x224] ss:$8 sps:$4 sm:$0xff]   ;;  %v4214_v10 = vld [vmem:[#allocation5 + $0x20] ss:$8 sps:$4 sm:$0xff]  }
  0x6e   : > { %3323 = vmatprep.subr.bf16.mxu0 %v4206_v5  ;;  %v4215_v11 = vld [vmem:[#allocation5 + $0x220] ss:$8 sps:$4 sm:$0xff]   ;;  %v4216_v12 = vld [vmem:[#allocation5 + $0x34] ss:$8 sps:$4 sm:$0xff]   ;;  %v4220_v14 = vld [vmem:[#allocation5 + $0x30] ss:$8 sps:$4 sm:$0xff]  }
  0x6f   : > { %v4218_v13 = vld [vmem:[#allocation5 + $0x234] ss:$8 sps:$4 sm:$0xff]   ;;  %v4221_v15 = vld [vmem:[#allocation5 + $0x230] ss:$8 sps:$4 sm:$0xff]   ;;  %v4222_v16 = vld [vmem:[#allocation5 + $0x44] ss:$8 sps:$4 sm:$0xff]  }
  0x70   : > { %3018 = vmatpush1.bf16.msra.mxu1 %v4208_v6  ;;  %v4224_v17 = vld [vmem:[#allocation5 + $0x244] ss:$8 sps:$4 sm:$0xff]   ;;  %v4226_v18 = vld [vmem:[#allocation5 + $0x40] ss:$8 sps:$4 sm:$0xff]   ;;  %v4228_v20 = vld [vmem:[#allocation5 + $0x54] ss:$8 sps:$4 sm:$0xff]  }
  0x71   : > { %3324 = vmatpush1.bf16.msra.mxu0 %v4209_v7  ;;  %3019 = vmatprep.subr.bf16.mxu1 %v4210_v8  ;;  %v4227_v19 = vld [vmem:[#allocation5 + $0x240] ss:$8 sps:$4 sm:$0xff]   ;;  %v4230_v21 = vld [vmem:[#allocation5 + $0x254] ss:$8 sps:$4 sm:$0xff]   ;;  %v4232_v22 = vld [vmem:[#allocation5 + $0x50] ss:$8 sps:$4 sm:$0xff]  }
  0x72   : > { %3325 = vmatprep.subr.bf16.mxu0 %v4212_v9  ;;  %v4233_v23 = vld [vmem:[#allocation5 + $0x250] ss:$8 sps:$4 sm:$0xff]   ;;  %v4234_v24 = vld [vmem:[#allocation5 + $0x64] ss:$8 sps:$4 sm:$0xff]   ;;  %v4238_v26 = vld [vmem:[#allocation5 + $0x60] ss:$8 sps:$4 sm:$0xff]  }
  0x73   : > { %v4236_v25 = vld [vmem:[#allocation5 + $0x264] ss:$8 sps:$4 sm:$0xff]   ;;  %v4239_v27 = vld [vmem:[#allocation5 + $0x260] ss:$8 sps:$4 sm:$0xff]   ;;  %v4240_v28 = vld [vmem:[#allocation5 + $0x74] ss:$8 sps:$4 sm:$0xff]  }
  0x74   : > { %3020 = vmatpush1.bf16.msra.mxu1 %v4214_v10  ;;  %v4242_v29 = vld [vmem:[#allocation5 + $0x274] ss:$8 sps:$4 sm:$0xff]   ;;  %v4244_v30 = vld [vmem:[#allocation5 + $0x70] ss:$8 sps:$4 sm:$0xff]   ;;  %v4246_v32 = vld [vmem:[#allocation5 + $0x84] ss:$8 sps:$4 sm:$0xff]  }
  0x75   : > { %3326 = vmatpush1.bf16.msra.mxu0 %v4215_v11  ;;  %3021 = vmatprep.subr.bf16.mxu1 %v4216_v12  ;;  %v4245_v31 = vld [vmem:[#allocation5 + $0x270] ss:$8 sps:$4 sm:$0xff]   ;;  %v4248_v33 = vld [vmem:[#allocation5 + $0x284] ss:$8 sps:$4 sm:$0xff]   ;;  %v4250_v34 = vld [vmem:[#allocation5 + $0x80] ss:$8 sps:$4 sm:$0xff]  }
  0x76   : > { %3327 = vmatprep.subr.bf16.mxu0 %v4218_v13  ;;  %v4251_v35 = vld [vmem:[#allocation5 + $0x280] ss:$8 sps:$4 sm:$0xff]   ;;  %v4252_v36 = vld [vmem:[#allocation5 + $0x94] ss:$8 sps:$4 sm:$0xff]   ;;  %v4256_v38 = vld [vmem:[#allocation5 + $0x90] ss:$8 sps:$4 sm:$0xff]  }
  0x77   : > { %v4254_v37 = vld [vmem:[#allocation5 + $0x294] ss:$8 sps:$4 sm:$0xff]   ;;  %v4257_v39 = vld [vmem:[#allocation5 + $0x290] ss:$8 sps:$4 sm:$0xff]   ;;  %v4258_v40 = vld [vmem:[#allocation5 + $0xa4] ss:$8 sps:$4 sm:$0xff]  }
  0x78   : > { %3022 = vmatpush1.bf16.msra.mxu1 %v4220_v14  ;;  %v4260_v41 = vld [vmem:[#allocation5 + $0x2a4] ss:$8 sps:$4 sm:$0xff]   ;;  %v4262_v42 = vld [vmem:[#allocation5 + $0xa0] ss:$8 sps:$4 sm:$0xff]   ;;  %v4264_v44 = vld [vmem:[#allocation5 + $0xb4] ss:$8 sps:$4 sm:$0xff]  }
  0x79   : > { %3328 = vmatpush1.bf16.msra.mxu0 %v4221_v15  ;;  %3023 = vmatprep.subr.bf16.mxu1 %v4222_v16  ;;  %v4263_v43 = vld [vmem:[#allocation5 + $0x2a0] ss:$8 sps:$4 sm:$0xff]   ;;  %v4266_v45 = vld [vmem:[#allocation5 + $0x2b4] ss:$8 sps:$4 sm:$0xff]   ;;  %v4268_v46 = vld [vmem:[#allocation5 + $0xb0] ss:$8 sps:$4 sm:$0xff]  }
  0x7a   : > { %3329 = vmatprep.subr.bf16.mxu0 %v4224_v17  ;;  %v4269_v47 = vld [vmem:[#allocation5 + $0x2b0] ss:$8 sps:$4 sm:$0xff]   ;;  %v220_v48 = vld [vmem:[%s5138_s30 + $0x8] sm:$0xff]  ;;  %v219_v61 = vld [vmem:[%s5138_s30] sm:$0xff]  ;;  %s4124_s18 = smul.u32 384, %s5134_s28  ;;  %p6153_p0 = scmp.ne.s32.totalorder %s6148_s6, 0 }
  0x7b   : > { %v4270_v49 = vld [vmem:[#allocation5 + $0xc4] ss:$8 sps:$4 sm:$0xff]   ;;  %v5150_v52 = vmul.f32 0.5, %v220_v48  ;;  %v604_v53 = vmul.f32 0.7978846, %v220_v48  ;;  %v796_v54 = vmul.f32 %v220_v48, %v220_v48  ;;  %v5162_v8 = vmul.f32 0.5, %v219_v61 }
  0x7c   : > { %3024 = vmatpush1.bf16.msra.mxu1 %v4226_v18  ;;  %v4272_v50 = vld [vmem:[#allocation5 + $0x2c4] ss:$8 sps:$4 sm:$0xff]   ;;  %v4274_v3 = vld [vmem:[#allocation5 + $0xc0] ss:$8 sps:$4 sm:$0xff]   ;;  %v603_v12 = vmul.f32 0.7978846, %v219_v61  ;;  %v795_v16 = vmul.f32 %v219_v61, %v219_v61 }
  0x7d   : > { %3330 = vmatpush1.bf16.msra.mxu0 %v4227_v19  ;;  %3025 = vmatprep.subr.bf16.mxu1 %v4228_v20  ;;  %v228_v51 = vld [vmem:[%s5138_s30 + $0x48] sm:$0xff]  ;;  %v227_v62 = vld [vmem:[%s5138_s30 + $0x40] sm:$0xff]  ;;  %v988_v63 = vmul.f32 0.044715, %v796_v54  ;;  %v4276_v18 = vld [vmem:[#allocation5 + $0xd4] ss:$8 sps:$4 sm:$0xff]  }
  0x7e   : > { %3331 = vmatprep.subr.bf16.mxu0 %v4230_v21  ;;  %v224_v55 = vld [vmem:[%s5138_s30 + $0x28] sm:$0xff]  ;;  %v5154_v57 = vmul.f32 0.5, %v228_v51  ;;  %v612_v58 = vmul.f32 0.7978846, %v228_v51  ;;  %v804_v59 = vmul.f32 %v228_v51, %v228_v51  ;;  %v5164_v11 = vmul.f32 0.5, %v227_v62  ;;  %v223_v17 = vld [vmem:[%s5138_s30 + $0x20] sm:$0xff] }
  0x7f   : > { %v232_v56 = vld [vmem:[%s5138_s30 + $0x68] sm:$0xff]  ;;  %v5156_v60 = vmul.f32 0.5, %v224_v55  ;;  %v608_v1 = vmul.f32 0.7978846, %v224_v55  ;;  %v800_v2 = vmul.f32 %v224_v55, %v224_v55  ;;  %v1180_v9 = vadd.f32 1.0, %v988_v63  ;;  %s5991_s20 = scalar_lea.vmem [#allocation8], %s4124_s18 }
  0x80   : > { %3026 = vmatpush1.bf16.msra.mxu1 %v4232_v22  ;;  %v5160_v0 = vmul.f32 0.5, %v232_v56  ;;  %v4275_v4 = vld [vmem:[#allocation5 + $0x2c0] ss:$8 sps:$4 sm:$0xff]   ;;  %v996_v5 = vmul.f32 0.044715, %v804_v59  ;;  %v808_v7 = vmul.f32 %v232_v56, %v232_v56  ;;  %v803_v22 = vmul.f32 %v227_v62, %v227_v62  ;;  %s3929_s10 = smul.u32 6144, %s4983_s16 }
  0x81   : > { %3332 = vmatpush1.bf16.msra.mxu0 %v4233_v23  ;;  %3027 = vmatprep.subr.bf16.mxu1 %v4234_v24  ;;  %v616_v6 = vmul.f32 0.7978846, %v232_v56  ;;  %v992_v10 = vmul.f32 0.044715, %v800_v2  ;;  %v611_v15 = vmul.f32 0.7978846, %v227_v62  ;;  %v1372_v20 = vmul.f32 %v1180_v9, %v604_v53 }
  0x82   : > { %3333 = vmatprep.subr.bf16.mxu0 %v4236_v25  ;;  %v1188_v13 = vadd.f32 1.0, %v996_v5  ;;  %v1000_v14 = vmul.f32 0.044715, %v808_v7  ;;  %v4278_v19 = vld [vmem:[#allocation5 + $0x2d4] ss:$8 sps:$4 sm:$0xff]   ;;  %v231_v23 = vld [vmem:[%s5138_s30 + $0x60] sm:$0xff]  ;;  %v799_v24 = vmul.f32 %v223_v17, %v223_v17  ;;  %s6087_s23 = scalar_lea.hbm %s6139_s3, %s3929_s10 }
  0x83   : > { %v1184_v21 = vadd.f32 1.0, %v992_v10  ;;  %v4280_v25 = vld [vmem:[#allocation5 + $0xd0] ss:$8 sps:$4 sm:$0xff]   ;;  %4390 = vtanh.f32 %v1372_v20  ;;  %v4288_v54 = vld [vmem:[#allocation5 + $0xf4] ss:$8 sps:$4 sm:$0xff]   ;;  %v240_v59 = vld [vmem:[%s5138_s30 + $0xa8] sm:$0xff] }
  0x84   : > { %3028 = vmatpush1.bf16.msra.mxu1 %v4238_v26  ;;  %v1380_v26 = vmul.f32 %v1188_v13, %v612_v58  ;;  %v4290_v61 = vld [vmem:[#allocation5 + $0x2f4] ss:$8 sps:$4 sm:$0xff]   ;;  %v5180_v2 = vmul.f32 0.5, %v240_v59  ;;  %v624_v9 = vmul.f32 0.7978846, %v240_v59  ;;  %s3690_s21 = sshll.u32 %s5991_s20, 4  ;;  %s6090_s21 = int_to_ptr.vmem [resolvable:$true] %s3690_s21 }
  0x85   : > { %3334 = vmatpush1.bf16.msra.mxu0 %v4239_v27  ;;  %3029 = vmatprep.subr.bf16.mxu1 %v4240_v28  ;;  %v1192_v27 = vadd.f32 1.0, %v1000_v14  ;;  %v987_v28 = vmul.f32 0.044715, %v795_v16  ;;  %v4296_v10 = vld [vmem:[#allocation5 + $0x104] ss:$8 sps:$4 sm:$0xff]   ;;  %s3676_s16 = scalar_lea.sflag [#allocation4], %s5134_s28 }
  0x86   : > { %3335 = vmatprep.subr.bf16.mxu0 %v4242_v29  ;;  %v5168_v29 = vmul.f32 0.5, %v223_v17  ;;  %4392 = vtanh.f32 %v1380_v26  ;;  %v235_v16 = vld [vmem:[%s5138_s30 + $0x80] sm:$0xff]  ;;  %s4860_s5 = scalar_lea.vmem %s6090_s21, 6144  ;;  %s4939_s8 = smov [#allocation8]  }
  0x87   : > { %v5186_v20 = vmul.f32 0.5, %v235_v16  ;;  %p4861_p11 = scmp.ne.s32.totalorder %s6090_s21, %s4860_s5  ;;  %s4864_s9 = sshll.u32 %s4939_s8, 4  ;;  %s4865_s9 = int_to_ptr.vmem [resolvable:$false] %s4864_s9 }
  0x88   : > { %3030 = vmatpush1.bf16.msra.mxu1 %v4244_v30  ;;  %v4281_v30 = vld [vmem:[#allocation5 + $0x2d0] ss:$8 sps:$4 sm:$0xff]   ;;  %s4866_s25 = scalar_lea.vmem %s4865_s9, 12288  ;;  %p4867_p7 = scmp.lt.s32.totalorder %s6090_s21, %s4865_s9 }
  0x89   : > { %3336 = vmatpush1.bf16.msra.mxu0 %v4245_v31  ;;  %3031 = vmatprep.subr.bf16.mxu1 %v4246_v32  ;;  %v1376_v31 = vmul.f32 %v1184_v21, %v608_v1  ;;  %v995_v32 = vmul.f32 0.044715, %v803_v22  ;;  %v248_v1 = vld [vmem:[%s5138_s30 + $0xe8] sm:$0xff]  ;;  %p4862_p1 = pnand %p4861_p11, %p6153_p0  ;;  %p4868_p9 = scmp.lt.s32.totalorder %s4866_s25, %s4860_s5 }
  0x8a   : > { %3337 = vmatprep.subr.bf16.mxu0 %v4248_v33  ;;  %v5170_v33 = vmul.f32 0.5, %v231_v23  ;;  %v5182_v7 = vmul.f32 0.5, %v248_v1  ;;  %v632_v14 = vmul.f32 0.7978846, %v248_v1  ;;  %v4299_v22 = vld [vmem:[#allocation5 + $0x304] ss:$8 sps:$4 sm:$0xff]  }
  0x8b   : > { %4394 = vtanh.f32 %v1376_v31  ;;  %v619_v31 = vmul.f32 0.7978846, %v235_v16  ;;  %p4863_p3 = pneg %p4862_p1  ;;  %p4869_p12 = por %p4868_p9, %p4867_p7 }
  0x8c   : > { %3032 = vmatpush1.bf16.msra.mxu1 %v4250_v34  ;;  %v4282_v34 = vld [vmem:[#allocation5 + $0xe4] ss:$8 sps:$4 sm:$0xff]  }
  0x8d   : > { %3338 = vmatpush1.bf16.msra.mxu0 %v4251_v35  ;;  %3033 = vmatprep.subr.bf16.mxu1 %v4252_v36  ;;  %v1384_v35 = vmul.f32 %v1192_v27, %v616_v6  ;;  %v1179_v36 = vadd.f32 1.0, %v987_v28  ;;  %v4391_v21 = vpop.eup %4390  ;;  %p4870_p2 = pnand %p4869_p12, %p4863_p3 }
  0x8e   : > { %3339 = vmatprep.subr.bf16.mxu0 %v4254_v37  ;;  %v607_v37 = vmul.f32 0.7978846, %v223_v17  ;;  %v1756_v27 = vadd.f32 1.0, %v4391_v21  ;;  %v252_v21 = vld [vmem:[%s5138_s30 + $0x108] sm:$0xff] }
  0x8f   : > { %4396 = vtanh.f32 %v1384_v35 }
  0x90   : > { %3034 = vmatpush1.bf16.msra.mxu1 %v4256_v38  ;;  %v4284_v38 = vld [vmem:[#allocation5 + $0x2e4] ss:$8 sps:$4 sm:$0xff]   ;;  %v4393_v26 = vpop.eup %4392 }
  0x91   : > { %3340 = vmatpush1.bf16.msra.mxu0 %v4257_v39  ;;  %3035 = vmatprep.subr.bf16.mxu1 %v4258_v40  ;;  %v1187_v39 = vadd.f32 1.0, %v995_v32  ;;  %v615_v40 = vmul.f32 0.7978846, %v231_v23 }
  0x92   : > { %3341 = vmatprep.subr.bf16.mxu0 %v4260_v41  ;;  %v807_v41 = vmul.f32 %v231_v23, %v231_v23 }
  0x94   : > { %3036 = vmatpush1.bf16.msra.mxu1 %v4262_v42  ;;  %v236_v42 = vld [vmem:[%s5138_s30 + $0x88] sm:$0xff] }
  0x95   : > { %3342 = vmatpush1.bf16.msra.mxu0 %v4263_v43  ;;  %3037 = vmatprep.subr.bf16.mxu1 %v4264_v44  ;;  %v4286_v43 = vld [vmem:[#allocation5 + $0xe0] ss:$8 sps:$4 sm:$0xff]   ;;  %v5174_v48 = vmul.f32 0.5, %v236_v42  ;;  %v620_v53 = vmul.f32 0.7978846, %v236_v42  ;;  %v812_v58 = vmul.f32 %v236_v42, %v236_v42  ;;  %v4395_v32 = vpop.eup %4394 }
  0x96   : > { %3343 = vmatprep.subr.bf16.mxu0 %v4266_v45  ;;  %v4287_v44 = vld [vmem:[#allocation5 + $0x2e0] ss:$8 sps:$4 sm:$0xff]   ;;  %v1371_v45 = vmul.f32 %v1179_v36, %v603_v12 }
  0x97   : > { %v1004_v6 = vmul.f32 0.044715, %v812_v58 }
  0x98   : > { %3038 = vmatpush1.bf16.msra.mxu1 %v4268_v46  ;;  %v991_v46 = vmul.f32 0.044715, %v799_v24  ;;  %4398 = vtanh.f32 %v1371_v45 }
  0x99   : > { %3344 = vmatpush1.bf16.msra.mxu0 %v4269_v47  ;;  %3039 = vmatprep.subr.bf16.mxu1 %v4270_v49  ;;  %v244_v47 = vld [vmem:[%s5138_s30 + $0xc8] sm:$0xff]  ;;  %v1379_v49 = vmul.f32 %v1187_v39, %v611_v15  ;;  %v816_v15 = vmul.f32 %v240_v59, %v240_v59  ;;  %v1196_v17 = vadd.f32 1.0, %v1004_v6  ;;  %v1948_v39 = vmul.f32 %v1756_v27, %v5150_v52 }
  0x9a   : > { %3345 = vmatprep.subr.bf16.mxu0 %v4272_v50  ;;  %v999_v50 = vmul.f32 0.044715, %v807_v41  ;;  %v5176_v51 = vmul.f32 0.5, %v244_v47  ;;  %v1183_v55 = vadd.f32 1.0, %v991_v46  ;;  %v628_v56 = vmul.f32 0.7978846, %v244_v47 }
  0x9b   : > { %4400 = vtanh.f32 %v1379_v49  ;;  %v820_v63 = vmul.f32 %v244_v47, %v244_v47  ;;  %v1008_v24 = vmul.f32 0.044715, %v816_v15  ;;  %v1388_v28 = vmul.f32 %v1196_v17, %v620_v53  ;;  %v4302_v17 = vld [vmem:[#allocation5 + $0x114] ss:$8 sps:$4 sm:$0xff]  }
  0x9c   : > { %3040 = vmatpush1.bf16.msra.mxu1 %v4274_v3  ;;  %v1191_v62 = vadd.f32 1.0, %v999_v50  ;;  %v4292_v3 = vld [vmem:[#allocation5 + $0xf0] ss:$8 sps:$4 sm:$0xff]   ;;  %v1375_v5 = vmul.f32 %v1183_v55, %v607_v37  ;;  %v811_v49 = vmul.f32 %v235_v16, %v235_v16  ;;  %v5205_v27 = vmul.f32 0.5, %v252_v21 }
  0x9d   : > { %3346 = vmatpush1.bf16.msra.mxu0 %v4275_v4  ;;  %3041 = vmatprep.subr.bf16.mxu1 %v4276_v18  ;;  %v4293_v4 = vld [vmem:[#allocation5 + $0x2f0] ss:$8 sps:$4 sm:$0xff]   ;;  %v1012_v13 = vmul.f32 0.044715, %v820_v63  ;;  %v824_v18 = vmul.f32 %v248_v1, %v248_v1  ;;  %v1200_v36 = vadd.f32 1.0, %v1008_v24 }
  0x9e   : > { %3347 = vmatprep.subr.bf16.mxu0 %v4278_v19  ;;  %v1383_v12 = vmul.f32 %v1191_v62, %v615_v40  ;;  %4402 = vtanh.f32 %v1375_v5  ;;  %v243_v19 = vld [vmem:[%s5138_s30 + $0xc0] sm:$0xff]  ;;  %v1760_v40 = vadd.f32 1.0, %v4395_v32  ;;  %v1003_v59 = vmul.f32 0.044715, %v811_v49  ;;  %v4300_v32 = vld [vmem:[#allocation5 + $0x110] ss:$8 sps:$4 sm:$0xff]  }
  0x9f   : > { %v1204_v23 = vadd.f32 1.0, %v1012_v13  ;;  %v627_v37 = vmul.f32 0.7978846, %v243_v19  ;;  %v819_v50 = vmul.f32 %v243_v19, %v243_v19  ;;  %v4306_v49 = vld [vmem:[#allocation5 + $0x120] ss:$8 sps:$4 sm:$0xff]  }
  0xa0   : > { %3042 = vmatpush1.bf16.msra.mxu1 %v4280_v25  ;;  %4404 = vtanh.f32 %v1383_v12  ;;  %v5188_v25 = vmul.f32 0.5, %v243_v19  ;;  %v1952_v46 = vmul.f32 %v1760_v40, %v5156_v60 }
  0xa1   : > { %3348 = vmatpush1.bf16.msra.mxu0 %v4281_v30  ;;  %3043 = vmatprep.subr.bf16.mxu1 %v4282_v34  ;;  %v1016_v30 = vmul.f32 0.044715, %v824_v18  ;;  %v1764_v34 = vadd.f32 1.0, %v4393_v26  ;;  %v1396_v35 = vmul.f32 %v1204_v23, %v628_v56  ;;  %4406 = vtanh.f32 %v1388_v28  ;;  %v247_v56 = vld [vmem:[%s5138_s30 + $0xe0] sm:$0xff]  ;;  %v260_v26 = vld [vmem:[%s5138_s30 + $0x148] sm:$0xff] }
  0xa2   : > { %3349 = vmatprep.subr.bf16.mxu0 %v4284_v38  ;;  %v4397_v38 = vpop.eup %4396  ;;  %v5199_v1 = vmul.f32 0.5, %v247_v56  ;;  %v631_v13 = vmul.f32 0.7978846, %v247_v56  ;;  %v823_v15 = vmul.f32 %v247_v56, %v247_v56  ;;  %v264_v56 = vld [vmem:[%s5138_s30 + $0x168] sm:$0xff] }
  0xa3   : > { %v1208_v41 = vadd.f32 1.0, %v1016_v30  ;;  %v1956_v42 = vmul.f32 %v1764_v34, %v5154_v57  ;;  %4408 = vtanh.f32 %v1396_v35  ;;  %v4399_v45 = vpop.eup %4398  ;;  %v239_v57 = vld [vmem:[%s5138_s30 + $0xa0] sm:$0xff]  ;;  %v5208_v34 = vmul.f32 0.5, %v260_v26 }
  0xa4   : > { %3044 = vmatpush1.bf16.msra.mxu1 %v4286_v43  ;;  %v1768_v43 = vadd.f32 1.0, %v4397_v38  ;;  %v1755_v55 = vadd.f32 1.0, %v4399_v45  ;;  %v5197_v60 = vmul.f32 0.5, %v239_v57  ;;  %v623_v6 = vmul.f32 0.7978846, %v239_v57 }
  0xa5   : > { %3350 = vmatpush1.bf16.msra.mxu0 %v4287_v44  ;;  %3045 = vmatprep.subr.bf16.mxu1 %v4288_v54  ;;  %v1392_v44 = vmul.f32 %v1200_v36, %v624_v9  ;;  %v1400_v47 = vmul.f32 %v1208_v41, %v632_v14  ;;  %v4401_v53 = vpop.eup %4400  ;;  %v2140_v52 = vpack.c.bf16 %v1956_v42, %v1948_v39  ;;  %v1015_v24 = vmul.f32 0.044715, %v823_v15  ;;  %v4305_v38 = vld [vmem:[#allocation5 + $0x314] ss:$8 sps:$4 sm:$0xff]   ;;  %v4308_v41 = vld [vmem:[#allocation5 + $0x124] ss:$8 sps:$4 sm:$0xff]  }
  0xa6   : > { %3351 = vmatprep.subr.bf16.mxu0 %v4290_v61  ;;  %v1960_v54 = vmul.f32 %v1768_v43, %v5160_v0  ;;  %v1763_v58 = vadd.f32 1.0, %v4401_v53  ;;  %v1011_v61 = vmul.f32 0.044715, %v819_v50  ;;  %v1947_v63 = vmul.f32 %v1755_v55, %v5162_v8  ;;  %v256_v53 = vld [vmem:[%s5138_s30 + $0x128] sm:$0xff] }
  0xa7   : > { %4410 = vtanh.f32 %v1392_v44  ;;  %3047 = vmatprep.mubr.bf16.mxu1 %v2140_v52  ;;  %v1195_v0 = vadd.f32 1.0, %v1003_v59  ;;  %v815_v14 = vmul.f32 %v239_v57, %v239_v57  ;;  %v636_v35 = vmul.f32 0.7978846, %v252_v21 }
  0xa8   : > { %3046 = vmatpush1.bf16.msra.mxu1 %v4292_v3  ;;  %4412 = vtanh.f32 %v1400_v47  ;;  %v2144_v62 = vpack.c.bf16 %v1960_v54, %v1952_v46  ;;  %v4403_v3 = vpop.eup %4402  ;;  %v1203_v5 = vadd.f32 1.0, %v1011_v61  ;;  %v644_v42 = vmul.f32 0.7978846, %v260_v26  ;;  %v4303_v47 = vld [vmem:[#allocation5 + $0x310] ss:$8 sps:$4 sm:$0xff]  }
  0xa9   : > { %3352 = vmatpush1.bf16.msra.mxu0 %v4293_v4  ;;  %3168 = vmatprep.subr.bf16.mxu1 %v4296_v10  ;;  %v1955_v4 = vmul.f32 %v1763_v58, %v5164_v11  ;;  %v4294_v10 = vld [vmem:[#allocation5 + $0x100] ss:$8 sps:$4 sm:$0xff]   ;;  %v1759_v12 = vadd.f32 1.0, %v4403_v3  ;;  %v1387_v18 = vmul.f32 %v1195_v0, %v619_v31  ;;  %v1007_v23 = vmul.f32 0.044715, %v815_v14 }
  0xaa   : > { %3474 = vmatprep.subr.bf16.mxu0 %v4299_v22  ;;  %v4405_v9 = vpop.eup %4404  ;;  %3353 = vmatprep.mubr.bf16.mxu0 %v2144_v62  ;;  %v1395_v19 = vmul.f32 %v1203_v5, %v627_v37  ;;  %v4297_v22 = vld [vmem:[#allocation5 + $0x300] ss:$8 sps:$4 sm:$0xff]   ;;  %v1207_v37 = vadd.f32 1.0, %v1015_v24  ;;  %v836_v50 = vmul.f32 %v260_v26, %v260_v26  ;;  %v5214_v58 = vmul.f32 0.5, %v256_v53 }
  0xab   : > { %v2139_v8 = vpack.c.bf16 %v1955_v4, %v1947_v63  ;;  %v1767_v16 = vadd.f32 1.0, %v4405_v9  ;;  %v1951_v11 = vmul.f32 %v1759_v12, %v5168_v29  ;;  %v4407_v28 = vpop.eup %4406  ;;  %4414 = vtanh.f32 %v1387_v18  ;;  %v4314_v4 = vld [vmem:[#allocation5 + $0x134] ss:$8 sps:$4 sm:$0xff]   ;;  %v4309_v5 = vld [vmem:[#allocation5 + $0x320] ss:$8 sps:$4 sm:$0xff]  }
  0xac   : > { %v1772_v36 = vadd.f32 1.0, %v4407_v28  ;;  %4416 = vtanh.f32 %v1395_v19  ;;  %v1199_v29 = vadd.f32 1.0, %v1007_v23  ;;  %v1399_v46 = vmul.f32 %v1207_v37, %v631_v13  ;;  %v251_v12 = vld [vmem:[%s5138_s30 + $0x100] sm:$0xff] }
  0xad   : > { %3048 = vmatmul.mubr.bf16.vlgmr.msra.gmra.mrb[0].mxu1 %v2139_v8  ;;  %v1959_v30 = vmul.f32 %v1767_v16, %v5170_v33  ;;  %v4409_v31 = vpop.eup %4408  ;;  %v828_v33 = vmul.f32 %v252_v21, %v252_v21  ;;  %v1028_v61 = vmul.f32 0.044715, %v836_v50  ;;  %v5216_v62 = vmul.f32 0.5, %v264_v56  ;;  %v259_v8 = vld [vmem:[%s5138_s30 + $0x140] sm:$0xff]  ;;  %v4312_v16 = vld [vmem:[#allocation5 + $0x130] ss:$8 sps:$4 sm:$0xff]  }
  0xae   : > { %3169 = vmatpush1.bf16.msra.mxu1 %v4294_v10  ;;  %v1780_v40 = vadd.f32 1.0, %v4409_v31  ;;  %v1964_v44 = vmul.f32 %v1772_v36, %v5174_v48  ;;  %v1391_v45 = vmul.f32 %v1199_v29, %v623_v6  ;;  %v4311_v48 = vld [vmem:[#allocation5 + $0x324] ss:$8 sps:$4 sm:$0xff]   ;;  %v640_v9 = vmul.f32 0.7978846, %v256_v53 }
  0xaf   : > { %v2143_v39 = vpack.c.bf16 %v1959_v30, %v1951_v11  ;;  %3170 = vmatprep.subr.bf16.mxu1 %v4302_v17  ;;  %v1020_v57 = vmul.f32 0.044715, %v828_v33  ;;  %v1220_v6 = vadd.f32 1.0, %v1028_v61  ;;  %v648_v10 = vmul.f32 0.7978846, %v264_v56  ;;  %v255_v11 = vld [vmem:[%s5138_s30 + $0x120] sm:$0xff] }
  0xb0   : > { %v1972_v54 = vmul.f32 %v1780_v40, %v5176_v51  ;;  %4418 = vtanh.f32 %v1391_v45  ;;  %v832_v14 = vmul.f32 %v256_v53, %v256_v53  ;;  %v840_v15 = vmul.f32 %v264_v56, %v264_v56  ;;  %v4317_v17 = vld [vmem:[#allocation5 + $0x334] ss:$8 sps:$4 sm:$0xff]   ;;  %v263_v30 = vld [vmem:[%s5138_s30 + $0x160] sm:$0xff]  ;;  %v4315_v29 = vld [vmem:[#allocation5 + $0x330] ss:$8 sps:$4 sm:$0xff]  }
  0xb1   : > { %v4411_v43 = vpop.eup %4410  ;;  %3354 = vmatmul.mubr.bf16.vlgmr.msra.gmra.mrb[0].mxu0 %v2143_v39  ;;  %4420 = vtanh.f32 %v1399_v46  ;;  %v1212_v51 = vadd.f32 1.0, %v1020_v57  ;;  %v5224_v19 = vmul.f32 0.5, %v259_v8  ;;  %v635_v21 = vmul.f32 0.7978846, %v251_v12  ;;  %v4318_v37 = vld [vmem:[#allocation5 + $0x140] ss:$8 sps:$4 sm:$0xff]  }
  0xb2   : > { %v4413_v52 = vpop.eup %4412  ;;  %v1776_v55 = vadd.f32 1.0, %v4411_v43  ;;  %3475 = vmatpush1.bf16.msra.mxu0 %v4297_v22  ;;  %3171 = vmatpush1.bf16.msra.mxu1 %v4300_v32  ;;  %v2148_v63 = vpack.c.bf16 %v1972_v54, %v1964_v44  ;;  %v4320_v22 = vld [vmem:[#allocation5 + $0x144] ss:$8 sps:$4 sm:$0xff]   ;;  %v1024_v24 = vmul.f32 0.044715, %v832_v14  ;;  %v827_v31 = vmul.f32 %v251_v12, %v251_v12 }
  0xb3   : > { %v1784_v59 = vadd.f32 1.0, %v4413_v52  ;;  %3476 = vmatprep.subr.bf16.mxu0 %v4305_v38  ;;  %3172 = vmatprep.subr.bf16.mxu1 %v4308_v41  ;;  %v1404_v13 = vmul.f32 %v1212_v51, %v636_v35  ;;  %v1032_v26 = vmul.f32 0.044715, %v840_v15  ;;  %v643_v28 = vmul.f32 0.7978846, %v259_v8 }
  0xb4   : > { %v1968_v3 = vmul.f32 %v1776_v55, %v5180_v2  ;;  %3057 = vmatprep.mubr.bf16.mxu1 %v2148_v63  ;;  %v5222_v2 = vmul.f32 0.5, %v251_v12  ;;  %v835_v36 = vmul.f32 %v259_v8, %v259_v8  ;;  %v1216_v39 = vadd.f32 1.0, %v1024_v24  ;;  %v4323_v50 = vld [vmem:[#allocation5 + $0x344] ss:$8 sps:$4 sm:$0xff]   ;;  %v4326_v57 = vld [vmem:[#allocation5 + $0x154] ss:$8 sps:$4 sm:$0xff]  }
  0xb5   : > { %v1976_v0 = vmul.f32 %v1784_v59, %v5182_v7  ;;  %v1412_v7 = vmul.f32 %v1220_v6, %v644_v42  ;;  %v4415_v23 = vpop.eup %4414  ;;  %4422 = vtanh.f32 %v1404_v13  ;;  %v1224_v40 = vadd.f32 1.0, %v1032_v26  ;;  %v4321_v63 = vld [vmem:[#allocation5 + $0x340] ss:$8 sps:$4 sm:$0xff]   ;;  %v4329_v6 = vld [vmem:[#allocation5 + $0x354] ss:$8 sps:$4 sm:$0xff]  }
  0xb6   : > { %3477 = vmatpush1.bf16.msra.mxu0 %v4303_v47  ;;  %3173 = vmatpush1.bf16.msra.mxu1 %v4306_v49  ;;  %v4417_v32 = vpop.eup %4416  ;;  %v1771_v35 = vadd.f32 1.0, %v4415_v23  ;;  %v5228_v41 = vmul.f32 0.5, %v255_v11  ;;  %v1019_v33 = vmul.f32 0.044715, %v827_v31  ;;  %v1027_v43 = vmul.f32 0.044715, %v835_v36 }
  0xb7   : > { %v2152_v18 = vpack.c.bf16 %v1976_v0, %v1968_v3  ;;  %3478 = vmatprep.subr.bf16.mxu0 %v4311_v48  ;;  %3174 = vmatprep.subr.bf16.mxu1 %v4314_v4  ;;  %4424 = vtanh.f32 %v1412_v7  ;;  %v1779_v38 = vadd.f32 1.0, %v4417_v32  ;;  %v5231_v44 = vmul.f32 0.5, %v263_v30  ;;  %v276_v0 = vld [vmem:[%s5138_s30 + $0x1c8] sm:$0xff] }
  0xb8   : > { %v1963_v42 = vmul.f32 %v1771_v35, %v5186_v20  ;;  %v1408_v46 = vmul.f32 %v1216_v39, %v640_v9  ;;  %v1416_v47 = vmul.f32 %v1224_v40, %v648_v10  ;;  %v639_v49 = vmul.f32 0.7978846, %v255_v11  ;;  %v4332_v13 = vld [vmem:[#allocation5 + $0x164] ss:$8 sps:$4 sm:$0xff]  }
  0xb9   : > { %3363 = vmatprep.mubr.bf16.mxu0 %v2152_v18  ;;  %v1971_v45 = vmul.f32 %v1779_v38, %v5188_v25  ;;  %v1211_v52 = vadd.f32 1.0, %v1019_v33  ;;  %v1219_v54 = vadd.f32 1.0, %v1027_v43  ;;  %v647_v20 = vmul.f32 0.7978846, %v263_v30  ;;  %v268_v25 = vld [vmem:[%s5138_s30 + $0x188] sm:$0xff] }
  0xba   : > { %3479 = vmatpush1.bf16.msra.mxu0 %v4309_v5  ;;  %3175 = vmatpush1.bf16.msra.mxu1 %v4312_v16  ;;  %v4419_v53 = vpop.eup %4418  ;;  %v831_v55 = vmul.f32 %v255_v11, %v255_v11  ;;  %4426 = vtanh.f32 %v1408_v46  ;;  %v839_v61 = vmul.f32 %v263_v30, %v263_v30  ;;  %v4324_v5 = vld [vmem:[#allocation5 + $0x150] ss:$8 sps:$4 sm:$0xff]   ;;  %v5238_v15 = vmul.f32 0.5, %v268_v25  ;;  %v4330_v11 = vld [vmem:[#allocation5 + $0x160] ss:$8 sps:$4 sm:$0xff]  }
  0xbb   : > { %3480 = vmatprep.subr.bf16.mxu0 %v4317_v17  ;;  %3176 = vmatprep.subr.bf16.mxu1 %v4320_v22  ;;  %v4421_v56 = vpop.eup %4420  ;;  %v2147_v59 = vpack.c.bf16 %v1971_v45, %v1963_v42  ;;  %v1775_v48 = vadd.f32 1.0, %v4419_v53  ;;  %4428 = vtanh.f32 %v1416_v47  ;;  %v1403_v51 = vmul.f32 %v1211_v52, %v635_v21  ;;  %v4327_v16 = vld [vmem:[#allocation5 + $0x350] ss:$8 sps:$4 sm:$0xff]   ;;  %v272_v21 = vld [vmem:[%s5138_s30 + $0x1a8] sm:$0xff]  ;;  %v267_v45 = vld [vmem:[%s5138_s30 + $0x180] sm:$0xff] }
  0xbc   : > { %v1783_v3 = vadd.f32 1.0, %v4421_v56  ;;  %v1411_v4 = vmul.f32 %v1219_v54, %v643_v28  ;;  %v1023_v10 = vmul.f32 0.044715, %v831_v55  ;;  %v1031_v12 = vmul.f32 0.044715, %v839_v61  ;;  %v280_v36 = vld [vmem:[%s5138_s30 + $0x1e8] sm:$0xff] }
  0xbd   : > { %3058 = vmatmul.mubr.bf16.gmra.mrb[4].mxu1 %v2147_v59  ;;  %v1967_v9 = vmul.f32 %v1775_v48, %v5197_v60  ;;  %4430 = vtanh.f32 %v1403_v51  ;;  %v5240_v8 = vmul.f32 0.5, %v276_v0  ;;  %v652_v60 = vmul.f32 0.7978846, %v268_v25  ;;  %v4335_v28 = vld [vmem:[#allocation5 + $0x364] ss:$8 sps:$4 sm:$0xff]  }
  0xbe   : > { %3481 = vmatpush1.bf16.msra.mxu0 %v4315_v29  ;;  %3177 = vmatpush1.bf16.msra.mxu1 %v4318_v37  ;;  %v1975_v14 = vmul.f32 %v1783_v3, %v5199_v1  ;;  %4432 = vtanh.f32 %v1411_v4  ;;  %v1215_v18 = vadd.f32 1.0, %v1023_v10  ;;  %v1223_v7 = vadd.f32 1.0, %v1031_v12  ;;  %v4338_v29 = vld [vmem:[#allocation5 + $0x174] ss:$8 sps:$4 sm:$0xff]   ;;  %v275_v55 = vld [vmem:[%s5138_s30 + $0x1c0] sm:$0xff] }
  0xbf   : > { %3482 = vmatprep.subr.bf16.mxu0 %v4323_v50  ;;  %3178 = vmatprep.subr.bf16.mxu1 %v4326_v57  ;;  %v4423_v17 = vpop.eup %4422  ;;  %v844_v26 = vmul.f32 %v268_v25, %v268_v25  ;;  %v852_v1 = vmul.f32 %v276_v0, %v276_v0  ;;  %v660_v31 = vmul.f32 0.7978846, %v276_v0  ;;  %v5245_v40 = vmul.f32 0.5, %v272_v21  ;;  %v4333_v50 = vld [vmem:[#allocation5 + $0x360] ss:$8 sps:$4 sm:$0xff]  }
  0xc0   : > { %v2151_v23 = vpack.c.bf16 %v1975_v14, %v1967_v9  ;;  %v1788_v24 = vadd.f32 1.0, %v4423_v17  ;;  %v1407_v32 = vmul.f32 %v1215_v18, %v639_v49  ;;  %v1415_v35 = vmul.f32 %v1223_v7, %v647_v20  ;;  %v4341_v57 = vld [vmem:[#allocation5 + $0x374] ss:$8 sps:$4 sm:$0xff]   ;;  %v4342_v12 = vld [vmem:[#allocation5 + $0x180] ss:$8 sps:$4 sm:$0xff]  }
  0xc1   : > { %v4425_v22 = vpop.eup %4424  ;;  %v1036_v38 = vmul.f32 0.044715, %v844_v26  ;;  %v1044_v39 = vmul.f32 0.044715, %v852_v1  ;;  %v5248_v33 = vmul.f32 0.5, %v280_v36  ;;  %v848_v49 = vmul.f32 %v272_v21, %v272_v21 }
  0xc2   : > { %3483 = vmatpush1.bf16.msra.mxu0 %v4321_v63  ;;  %3179 = vmatpush1.bf16.msra.mxu1 %v4324_v5  ;;  %v1796_v30 = vadd.f32 1.0, %v4425_v22  ;;  %v1980_v37 = vmul.f32 %v1788_v24, %v5205_v27  ;;  %4434 = vtanh.f32 %v1407_v32  ;;  %v656_v43 = vmul.f32 0.7978846, %v272_v21  ;;  %v4336_v27 = vld [vmem:[#allocation5 + $0x170] ss:$8 sps:$4 sm:$0xff]   ;;  %v279_v32 = vld [vmem:[%s5138_s30 + $0x1e0] sm:$0xff] }
  0xc3   : > { %3484 = vmatprep.subr.bf16.mxu0 %v4329_v6  ;;  %3180 = vmatprep.subr.bf16.mxu1 %v4332_v13  ;;  %4436 = vtanh.f32 %v1415_v35  ;;  %v1228_v46 = vadd.f32 1.0, %v1036_v38  ;;  %v1236_v47 = vadd.f32 1.0, %v1044_v39  ;;  %v664_v54 = vmul.f32 0.7978846, %v280_v36  ;;  %v4339_v63 = vld [vmem:[#allocation5 + $0x370] ss:$8 sps:$4 sm:$0xff]  }
  0xc4   : > { %3364 = vmatmul.mubr.bf16.gmra.mrb[4].mxu0 %v2151_v23  ;;  %v1988_v42 = vmul.f32 %v1796_v30, %v5208_v34  ;;  %v4427_v53 = vpop.eup %4426  ;;  %v856_v20 = vmul.f32 %v280_v36, %v280_v36  ;;  %v5252_v34 = vmul.f32 0.5, %v267_v45  ;;  %v1040_v25 = vmul.f32 0.044715, %v848_v49  ;;  %v4344_v18 = vld [vmem:[#allocation5 + $0x184] ss:$8 sps:$4 sm:$0xff]  }
  0xc5   : > { %v4429_v56 = vpop.eup %4428  ;;  %v1792_v59 = vadd.f32 1.0, %v4427_v53  ;;  %v1420_v48 = vmul.f32 %v1228_v46, %v652_v60  ;;  %v1428_v61 = vmul.f32 %v1236_v47, %v660_v31  ;;  %v5254_v4 = vmul.f32 0.5, %v275_v55  ;;  %v4347_v1 = vld [vmem:[#allocation5 + $0x384] ss:$8 sps:$4 sm:$0xff]   ;;  %v4345_v35 = vld [vmem:[#allocation5 + $0x380] ss:$8 sps:$4 sm:$0xff]  }
  0xc6   : > { %3485 = vmatpush1.bf16.msra.mxu0 %v4327_v16  ;;  %3181 = vmatpush1.bf16.msra.mxu1 %v4330_v11  ;;  %v2156_v52 = vpack.c.bf16 %v1988_v42, %v1980_v37  ;;  %v1800_v3 = vadd.f32 1.0, %v4429_v56  ;;  %v1048_v51 = vmul.f32 0.044715, %v856_v20  ;;  %v843_v0 = vmul.f32 %v267_v45, %v267_v45  ;;  %v271_v11 = vld [vmem:[%s5138_s30 + $0x1a0] sm:$0xff]  ;;  %v292_v53 = vld [vmem:[%s5138_s30 + $0x248] sm:$0xff] }
  0xc7   : > { %3486 = vmatprep.subr.bf16.mxu0 %v4335_v28  ;;  %3182 = vmatprep.subr.bf16.mxu1 %v4338_v29  ;;  %v4431_v5 = vpop.eup %4430  ;;  %v1984_v6 = vmul.f32 %v1792_v59, %v5214_v58  ;;  %4438 = vtanh.f32 %v1420_v48  ;;  %v1232_v9 = vadd.f32 1.0, %v1040_v25  ;;  %v651_v10 = vmul.f32 0.7978846, %v267_v45  ;;  %v4350_v45 = vld [vmem:[#allocation5 + $0x194] ss:$8 sps:$4 sm:$0xff]  }
  0xc8   : > { %3067 = vmatprep.mubr.bf16.mxu1 %v2156_v52  ;;  %v4433_v13 = vpop.eup %4432  ;;  %v1992_v14 = vmul.f32 %v1800_v3, %v5216_v62  ;;  %v1787_v16 = vadd.f32 1.0, %v4431_v5  ;;  %4440 = vtanh.f32 %v1428_v61  ;;  %v1240_v17 = vadd.f32 1.0, %v1048_v51  ;;  %v288_v3 = vld [vmem:[%s5138_s30 + $0x228] sm:$0xff]  ;;  %v4353_v51 = vld [vmem:[#allocation5 + $0x394] ss:$8 sps:$4 sm:$0xff]  }
  0xc9   : > { %v1795_v7 = vadd.f32 1.0, %v4433_v13  ;;  %v1424_v60 = vmul.f32 %v1232_v9, %v656_v43  ;;  %v851_v21 = vmul.f32 %v275_v55, %v275_v55  ;;  %v1035_v58 = vmul.f32 0.044715, %v843_v0  ;;  %v4348_v43 = vld [vmem:[#allocation5 + $0x190] ss:$8 sps:$4 sm:$0xff]  }
  0xca   : > { %3487 = vmatpush1.bf16.msra.mxu0 %v4333_v50  ;;  %3183 = vmatpush1.bf16.msra.mxu1 %v4336_v27  ;;  %v2160_v22 = vpack.c.bf16 %v1992_v14, %v1984_v6  ;;  %v1979_v23 = vmul.f32 %v1787_v16, %v5222_v2  ;;  %v1432_v24 = vmul.f32 %v1240_v17, %v664_v54  ;;  %v659_v26 = vmul.f32 0.7978846, %v275_v55  ;;  %v284_v27 = vld [vmem:[%s5138_s30 + $0x208] sm:$0xff] }
  0xcb   : > { %3488 = vmatprep.subr.bf16.mxu0 %v4341_v57  ;;  %3184 = vmatprep.subr.bf16.mxu1 %v4344_v18  ;;  %v1987_v62 = vmul.f32 %v1795_v7, %v5224_v19  ;;  %4442 = vtanh.f32 %v1424_v60  ;;  %v1043_v28 = vmul.f32 0.044715, %v851_v21  ;;  %v1227_v30 = vadd.f32 1.0, %v1035_v58  ;;  %v4354_v21 = vld [vmem:[#allocation5 + $0x1a0] ss:$8 sps:$4 sm:$0xff]  }
  0xcc   : > { %v4435_v31 = vpop.eup %4434  ;;  %3373 = vmatprep.mubr.bf16.mxu0 %v2160_v22  ;;  %4444 = vtanh.f32 %v1432_v24  ;;  %v5262_v36 = vmul.f32 0.5, %v271_v11  ;;  %v5264_v2 = vmul.f32 0.5, %v279_v32  ;;  %v655_v29 = vmul.f32 0.7978846, %v271_v11  ;;  %v4356_v58 = vld [vmem:[#allocation5 + $0x1a4] ss:$8 sps:$4 sm:$0xff]  }
  0xcd   : > { %v4437_v37 = vpop.eup %4436  ;;  %v2155_v19 = vpack.c.bf16 %v1987_v62, %v1979_v23  ;;  %v1791_v38 = vadd.f32 1.0, %v4435_v31  ;;  %v1235_v39 = vadd.f32 1.0, %v1043_v28  ;;  %v1419_v42 = vmul.f32 %v1227_v30, %v651_v10 }
  0xce   : > { %3489 = vmatpush1.bf16.msra.mxu0 %v4339_v63  ;;  %3185 = vmatpush1.bf16.msra.mxu1 %v4342_v12  ;;  %v1799_v46 = vadd.f32 1.0, %v4437_v37  ;;  %v663_v47 = vmul.f32 0.7978846, %v279_v32  ;;  %v847_v49 = vmul.f32 %v271_v11, %v271_v11  ;;  %v855_v50 = vmul.f32 %v279_v32, %v279_v32  ;;  %v4359_v32 = vld [vmem:[#allocation5 + $0x3a4] ss:$8 sps:$4 sm:$0xff]  }
  0xcf   : > { %3490 = vmatprep.subr.bf16.mxu0 %v4347_v1  ;;  %3068 = vmatmul.mubr.bf16.gmra.mrb[8].mxu1 %v2155_v19  ;;  %v1983_v52 = vmul.f32 %v1791_v38, %v5228_v41  ;;  %v1427_v54 = vmul.f32 %v1235_v39, %v659_v26  ;;  %4446 = vtanh.f32 %v1419_v42  ;;  %v5269_v20 = vmul.f32 0.5, %v284_v27  ;;  %v4351_v41 = vld [vmem:[#allocation5 + $0x390] ss:$8 sps:$4 sm:$0xff]   ;;  %v4357_v1 = vld [vmem:[#allocation5 + $0x3a0] ss:$8 sps:$4 sm:$0xff]  }
  0xd0   : > { %v1991_v55 = vmul.f32 %v1799_v46, %v5231_v44  ;;  %v1039_v57 = vmul.f32 0.044715, %v847_v49  ;;  %v1047_v56 = vmul.f32 0.044715, %v855_v50  ;;  %v668_v59 = vmul.f32 0.7978846, %v284_v27  ;;  %3186 = vmatprep.subr.bf16.mxu1 %v4350_v45 }
  0xd1   : > { %v4439_v48 = vpop.eup %4438  ;;  %4448 = vtanh.f32 %v1427_v54  ;;  %v676_v61 = vmul.f32 0.7978846, %v292_v53  ;;  %v860_v25 = vmul.f32 %v284_v27, %v284_v27  ;;  %v868_v63 = vmul.f32 %v292_v53, %v292_v53  ;;  %v296_v44 = vld [vmem:[%s5138_s30 + $0x268] sm:$0xff]  ;;  %v283_v39 = vld [vmem:[%s5138_s30 + $0x200] sm:$0xff] }
  0xd2   : > { %3491 = vmatpush1.bf16.msra.mxu0 %v4345_v35  ;;  %3187 = vmatpush1.bf16.msra.mxu1 %v4348_v43  ;;  %v4441_v0 = vpop.eup %4440  ;;  %v2159_v5 = vpack.c.bf16 %v1991_v55, %v1983_v52  ;;  %v1804_v6 = vadd.f32 1.0, %v4439_v48  ;;  %v1231_v9 = vadd.f32 1.0, %v1039_v57  ;;  %v1239_v10 = vadd.f32 1.0, %v1047_v56  ;;  %v291_v46 = vld [vmem:[%s5138_s30 + $0x240] sm:$0xff] }
  0xd3   : > { %v1812_v12 = vadd.f32 1.0, %v4441_v0  ;;  %v5274_v13 = vmul.f32 0.5, %v292_v53  ;;  %v1052_v14 = vmul.f32 0.044715, %v860_v25  ;;  %v1060_v16 = vmul.f32 0.044715, %v868_v63  ;;  %3492 = vmatprep.subr.bf16.mxu0 %v4353_v51  ;;  %3188 = vmatprep.subr.bf16.mxu1 %v4356_v58 }
  0xd4   : > { %3374 = vmatmul.mubr.bf16.gmra.mrb[8].mxu0 %v2159_v5  ;;  %v1996_v17 = vmul.f32 %v1804_v6, %v5238_v15  ;;  %v1423_v18 = vmul.f32 %v1231_v9, %v655_v29  ;;  %v1431_v7 = vmul.f32 %v1239_v10, %v663_v47  ;;  %v5277_v60 = vmul.f32 0.5, %v288_v3  ;;  %v287_v27 = vld [vmem:[%s5138_s30 + $0x220] sm:$0xff]  ;;  %v4360_v53 = vld [vmem:[#allocation5 + $0x1b0] ss:$8 sps:$4 sm:$0xff]   ;;  %v4365_v6 = vld [vmem:[#allocation5 + $0x3b4] ss:$8 sps:$4 sm:$0xff]  }
  0xd5   : > { %v4443_v11 = vpop.eup %4442  ;;  %v2004_v22 = vmul.f32 %v1812_v12, %v5240_v8  ;;  %v1244_v23 = vadd.f32 1.0, %v1052_v14  ;;  %v1252_v24 = vadd.f32 1.0, %v1060_v16  ;;  %v5280_v26 = vmul.f32 0.5, %v296_v44  ;;  %v300_v58 = vld [vmem:[%s5138_s30 + $0x288] sm:$0xff] }
  0xd6   : > { %3493 = vmatpush1.bf16.msra.mxu0 %v4351_v41  ;;  %v4445_v62 = vpop.eup %4444  ;;  %v1808_v28 = vadd.f32 1.0, %v4443_v11  ;;  %4450 = vtanh.f32 %v1423_v18  ;;  %v672_v15 = vmul.f32 0.7978846, %v288_v3  ;;  %v864_v30 = vmul.f32 %v288_v3, %v288_v3  ;;  %3189 = vmatpush1.bf16.msra.mxu1 %v4354_v21  ;;  %v4363_v3 = vld [vmem:[#allocation5 + $0x3b0] ss:$8 sps:$4 sm:$0xff]  }
  0xd7   : > { %v2164_v35 = vpack.c.bf16 %v2004_v22, %v1996_v17  ;;  %v1816_v31 = vadd.f32 1.0, %v4445_v62  ;;  %4452 = vtanh.f32 %v1431_v7  ;;  %v1436_v29 = vmul.f32 %v1244_v23, %v668_v59  ;;  %3494 = vmatprep.subr.bf16.mxu0 %v4359_v32  ;;  %v295_v59 = vld [vmem:[%s5138_s30 + $0x260] sm:$0xff] }
  0xd8   : > { %v2000_v8 = vmul.f32 %v1808_v28, %v5245_v40  ;;  %v1444_v37 = vmul.f32 %v1252_v24, %v676_v61  ;;  %v872_v19 = vmul.f32 %v296_v44, %v296_v44  ;;  %v1056_v38 = vmul.f32 0.044715, %v864_v30 }
  0xd9   : > { %v4447_v42 = vpop.eup %4446  ;;  %3077 = vmatprep.mubr.bf16.mxu1 %v2164_v35  ;;  %v2008_v43 = vmul.f32 %v1816_v31, %v5248_v33  ;;  %4454 = vtanh.f32 %v1436_v29  ;;  %v680_v45 = vmul.f32 0.7978846, %v296_v44  ;;  %v5286_v47 = vmul.f32 0.5, %v283_v39  ;;  %v4362_v33 = vld [vmem:[#allocation5 + $0x1b4] ss:$8 sps:$4 sm:$0xff]  }
  0xda   : > { %3495 = vmatpush1.bf16.msra.mxu0 %v4357_v1  ;;  %v1803_v49 = vadd.f32 1.0, %v4447_v42  ;;  %4456 = vtanh.f32 %v1444_v37  ;;  %v1064_v40 = vmul.f32 0.044715, %v872_v19  ;;  %v1248_v50 = vadd.f32 1.0, %v1056_v38  ;;  %3190 = vmatprep.subr.bf16.mxu1 %v4362_v33  ;;  %v308_v1 = vld [vmem:[%s5138_s30 + $0x2c8] sm:$0xff] }
  0xdb   : > { %v4449_v52 = vpop.eup %4448  ;;  %v2168_v54 = vpack.c.bf16 %v2008_v43, %v2000_v8  ;;  %v667_v55 = vmul.f32 0.7978846, %v283_v39  ;;  %v675_v57 = vmul.f32 0.7978846, %v291_v46  ;;  %v859_v56 = vmul.f32 %v283_v39, %v283_v39  ;;  %3191 = vmatpush1.bf16.msra.mxu1 %v4360_v53  ;;  %3496 = vmatprep.subr.bf16.mxu0 %v4365_v6  ;;  %v4366_v8 = vld [vmem:[#allocation5 + $0x1c0] ss:$8 sps:$4 sm:$0xff]  }
  0xdc   : > { %v1811_v48 = vadd.f32 1.0, %v4449_v52  ;;  %v1995_v61 = vmul.f32 %v1803_v49, %v5252_v34  ;;  %v1256_v25 = vadd.f32 1.0, %v1064_v40  ;;  %v1440_v63 = vmul.f32 %v1248_v50, %v672_v15  ;;  %v4368_v37 = vld [vmem:[#allocation5 + $0x1c4] ss:$8 sps:$4 sm:$0xff]   ;;  %v4369_v40 = vld [vmem:[#allocation5 + $0x3c0] ss:$8 sps:$4 sm:$0xff]  }
  0xdd   : > { %3383 = vmatprep.mubr.bf16.mxu0 %v2168_v54  ;;  %v5291_v41 = vmul.f32 0.5, %v291_v46  ;;  %v867_v51 = vmul.f32 %v291_v46, %v291_v46  ;;  %v1051_v0 = vmul.f32 0.044715, %v859_v56  ;;  %v5293_v5 = vmul.f32 0.5, %v287_v27  ;;  %3192 = vmatprep.subr.bf16.mxu1 %v4368_v37  ;;  %v4372_v54 = vld [vmem:[#allocation5 + $0x1d0] ss:$8 sps:$4 sm:$0xff]  }
  0xde   : > { %v2003_v9 = vmul.f32 %v1811_v48, %v5254_v4  ;;  %v1448_v10 = vmul.f32 %v1256_v25, %v680_v45  ;;  %4458 = vtanh.f32 %v1440_v63  ;;  %v5296_v44 = vmul.f32 0.5, %v295_v59  ;;  %3497 = vmatpush1.bf16.msra.mxu0 %v4363_v3  ;;  %v312_v33 = vld [vmem:[%s5138_s30 + $0x2e8] sm:$0xff] }
  0xdf   : > { %v1059_v34 = vmul.f32 0.044715, %v867_v51  ;;  %v1243_v12 = vadd.f32 1.0, %v1051_v0  ;;  %v671_v14 = vmul.f32 0.7978846, %v287_v27  ;;  %v863_v16 = vmul.f32 %v287_v27, %v287_v27  ;;  %3193 = vmatpush1.bf16.msra.mxu1 %v4366_v8 }
  0xe0   : > { %v4451_v17 = vpop.eup %4450  ;;  %v2163_v18 = vpack.c.bf16 %v2003_v9, %v1995_v61  ;;  %4460 = vtanh.f32 %v1448_v10  ;;  %v679_v7 = vmul.f32 0.7978846, %v295_v59  ;;  %v871_v21 = vmul.f32 %v295_v59, %v295_v59  ;;  %v304_v59 = vld [vmem:[%s5138_s30 + $0x2a8] sm:$0xff] }
  0xe1   : > { %v4453_v11 = vpop.eup %4452  ;;  %v1807_v4 = vadd.f32 1.0, %v4451_v17  ;;  %v1251_v22 = vadd.f32 1.0, %v1059_v34  ;;  %v1435_v23 = vmul.f32 %v1243_v12, %v667_v55  ;;  %v1055_v24 = vmul.f32 0.044715, %v863_v16  ;;  %v299_v12 = vld [vmem:[%s5138_s30 + $0x280] sm:$0xff] }
  0xe2   : > { %3078 = vmatmul.mubr.bf16.gmra.mrb[12].mxu1 %v2163_v18  ;;  %v1815_v62 = vadd.f32 1.0, %v4453_v11  ;;  %v1063_v28 = vmul.f32 0.044715, %v871_v21  ;;  %v5300_v15 = vmul.f32 0.5, %v300_v58  ;;  %v5302_v30 = vmul.f32 0.5, %v308_v1 }
  0xe3   : > { %v4455_v32 = vpop.eup %4454  ;;  %v1999_v35 = vmul.f32 %v1807_v4, %v5262_v36  ;;  %v1443_v31 = vmul.f32 %v1251_v22, %v675_v57  ;;  %4462 = vtanh.f32 %v1435_v23  ;;  %v1247_v29 = vadd.f32 1.0, %v1055_v24  ;;  %v4371_v36 = vld [vmem:[#allocation5 + $0x3c4] ss:$8 sps:$4 sm:$0xff]  }
  0xe4   : > { %v4457_v19 = vpop.eup %4456  ;;  %v2007_v38 = vmul.f32 %v1815_v62, %v5264_v2  ;;  %v1820_v39 = vadd.f32 1.0, %v4455_v32  ;;  %v1255_v42 = vadd.f32 1.0, %v1063_v28  ;;  %v684_v43 = vmul.f32 0.7978846, %v300_v58  ;;  %v4374_v2 = vld [vmem:[#allocation5 + $0x1d4] ss:$8 sps:$4 sm:$0xff]   ;;  %3498 = vmatprep.subr.bf16.mxu0 %v4371_v36 }
  0xe5   : > { %v1828_v45 = vadd.f32 1.0, %v4457_v19  ;;  %4464 = vtanh.f32 %v1443_v31  ;;  %v1439_v46 = vmul.f32 %v1247_v29, %v671_v14  ;;  %v876_v49 = vmul.f32 %v300_v58, %v300_v58  ;;  %3194 = vmatprep.subr.bf16.mxu1 %v4374_v2  ;;  %3499 = vmatpush1.bf16.msra.mxu0 %v4369_v40  ;;  %v307_v14 = vld [vmem:[%s5138_s30 + $0x2c0] sm:$0xff]  ;;  %v4375_v62 = vld [vmem:[#allocation5 + $0x3d0] ss:$8 sps:$4 sm:$0xff]   ;;  %v4377_v28 = vld [vmem:[#allocation5 + $0x3d4] ss:$8 sps:$4 sm:$0xff]  }
  0xe6   : > { %v2167_v50 = vpack.c.bf16 %v2007_v38, %v1999_v35  ;;  %v2012_v27 = vmul.f32 %v1820_v39, %v5269_v20  ;;  %v1447_v53 = vmul.f32 %v1255_v42, %v679_v7  ;;  %v884_v52 = vmul.f32 %v308_v1, %v308_v1  ;;  %3195 = vmatpush1.bf16.msra.mxu1 %v4372_v54  ;;  %v303_v31 = vld [vmem:[%s5138_s30 + $0x2a0] sm:$0xff] }
  0xe7   : > { %v2020_v55 = vmul.f32 %v1828_v45, %v5274_v13  ;;  %4466 = vtanh.f32 %v1439_v46  ;;  %v692_v57 = vmul.f32 0.7978846, %v308_v1  ;;  %v1068_v56 = vmul.f32 0.044715, %v876_v49  ;;  %v4378_v29 = vld [vmem:[#allocation5 + $0x1e0] ss:$8 sps:$4 sm:$0xff]   ;;  %3500 = vmatprep.subr.bf16.mxu0 %v4377_v28 }
  0xe8   : > { %v4459_v48 = vpop.eup %4458  ;;  %3384 = vmatmul.mubr.bf16.gmra.mrb[12].mxu0 %v2167_v50  ;;  %4468 = vtanh.f32 %v1447_v53  ;;  %v1076_v61 = vmul.f32 0.044715, %v884_v52  ;;  %v5310_v20 = vmul.f32 0.5, %v304_v59  ;;  %v5312_v25 = vmul.f32 0.5, %v312_v33  ;;  %v311_v49 = vld [vmem:[%s5138_s30 + $0x2e0] sm:$0xff] }
  0xe9   : > { %v2172_v63 = vpack.c.bf16 %v2020_v55, %v2012_v27  ;;  %v1824_v3 = vadd.f32 1.0, %v4459_v48  ;;  %v1260_v13 = vadd.f32 1.0, %v1068_v56  ;;  %v688_v51 = vmul.f32 0.7978846, %v304_v59  ;;  %3501 = vmatpush1.bf16.msra.mxu0 %v4375_v62  ;;  %v4381_v40 = vld [vmem:[#allocation5 + $0x3e0] ss:$8 sps:$4 sm:$0xff]  }
  0xea   : > { %v4461_v0 = vpop.eup %4460  ;;  %v1268_v6 = vadd.f32 1.0, %v1076_v61  ;;  %v696_v9 = vmul.f32 0.7978846, %v312_v33  ;;  %v880_v10 = vmul.f32 %v304_v59, %v304_v59  ;;  %v888_v34 = vmul.f32 %v312_v33, %v312_v33  ;;  %v4383_v36 = vld [vmem:[#allocation5 + $0x3e4] ss:$8 sps:$4 sm:$0xff]  }
  0xeb   : > { %3087 = vmatprep.mubr.bf16.mxu1 %v2172_v63  ;;  %v1832_v16 = vadd.f32 1.0, %v4461_v0  ;;  %v2016_v17 = vmul.f32 %v1824_v3, %v5277_v60  ;;  %v1452_v18 = vmul.f32 %v1260_v13, %v684_v43  ;;  %v5317_v7 = vmul.f32 0.5, %v299_v12  ;;  %3502 = vmatprep.subr.bf16.mxu0 %v4383_v36  ;;  %v316_v48 = vld [vmem:[%s5138_s30 + $0x308] sm:$0xff] }
  0xec   : > { %v1460_v21 = vmul.f32 %v1268_v6, %v692_v57  ;;  %v1072_v58 = vmul.f32 0.044715, %v880_v10  ;;  %v1080_v11 = vmul.f32 0.044715, %v888_v34  ;;  %v683_v4 = vmul.f32 0.7978846, %v299_v12 }
  0xed   : > { %v4463_v22 = vpop.eup %4462  ;;  %v2024_v23 = vmul.f32 %v1832_v16, %v5280_v26  ;;  %4470 = vtanh.f32 %v1452_v18  ;;  %v691_v24 = vmul.f32 0.7978846, %v307_v14  ;;  %v875_v1 = vmul.f32 %v299_v12, %v299_v12  ;;  %v4380_v26 = vld [vmem:[#allocation5 + $0x1e4] ss:$8 sps:$4 sm:$0xff]   ;;  %3503 = vmatpush1.bf16.msra.mxu0 %v4381_v40 }
  0xee   : > { %v1819_v32 = vadd.f32 1.0, %v4463_v22  ;;  %4472 = vtanh.f32 %v1460_v21  ;;  %v1264_v60 = vadd.f32 1.0, %v1072_v58  ;;  %v1272_v35 = vadd.f32 1.0, %v1080_v11  ;;  %3196 = vmatprep.subr.bf16.mxu1 %v4380_v26  ;;  %v324_v6 = vld [vmem:[%s5138_s30 + $0x348] sm:$0xff] }
  0xef   : > { %v4465_v8 = vpop.eup %4464  ;;  %v2176_v37 = vpack.c.bf16 %v2024_v23, %v2016_v17  ;;  %v5321_v19 = vmul.f32 0.5, %v307_v14  ;;  %v883_v38 = vmul.f32 %v307_v14, %v307_v14  ;;  %v1067_v39 = vmul.f32 0.044715, %v875_v1  ;;  %3197 = vmatpush1.bf16.msra.mxu1 %v4378_v29  ;;  %v328_v22 = vld [vmem:[%s5138_s30 + $0x368] sm:$0xff] }
  0xf0   : > { %v1827_v42 = vadd.f32 1.0, %v4465_v8  ;;  %v2011_v43 = vmul.f32 %v1819_v32, %v5286_v47  ;;  %v1456_v45 = vmul.f32 %v1264_v60, %v688_v51  ;;  %v1464_v46 = vmul.f32 %v1272_v35, %v696_v9 }
  0xf1   : > { %v4467_v50 = vpop.eup %4466  ;;  %3393 = vmatprep.mubr.bf16.mxu0 %v2176_v37  ;;  %v1075_v27 = vmul.f32 0.044715, %v883_v38  ;;  %v1259_v53 = vadd.f32 1.0, %v1067_v39  ;;  %v5325_v52 = vmul.f32 0.5, %v303_v31  ;;  %v5327_v54 = vmul.f32 0.5, %v311_v49 }
  0xf2   : > { %v4469_v2 = vpop.eup %4468  ;;  %v2019_v55 = vmul.f32 %v1827_v42, %v5291_v41  ;;  %v1823_v47 = vadd.f32 1.0, %v4467_v50  ;;  %4474 = vtanh.f32 %v1456_v45  ;;  %v687_v57 = vmul.f32 0.7978846, %v303_v31 }
  0xf3   : > { %v1831_v56 = vadd.f32 1.0, %v4469_v2  ;;  %4476 = vtanh.f32 %v1464_v46  ;;  %v1267_v59 = vadd.f32 1.0, %v1075_v27  ;;  %v1451_v33 = vmul.f32 %v1259_v53, %v683_v4  ;;  %v320_v4 = vld [vmem:[%s5138_s30 + $0x328] sm:$0xff] }
  0xf4   : > { %v2171_v61 = vpack.c.bf16 %v2019_v55, %v2011_v43  ;;  %v2015_v63 = vmul.f32 %v1823_v47, %v5293_v5  ;;  %v879_v3 = vmul.f32 %v303_v31, %v303_v31  ;;  %v887_v13 = vmul.f32 %v311_v49, %v311_v49 }
  0xf5   : > { %v2023_v51 = vmul.f32 %v1831_v56, %v5296_v44  ;;  %v1459_v41 = vmul.f32 %v1267_v59, %v691_v24  ;;  %4478 = vtanh.f32 %v1451_v33  ;;  %v695_v0 = vmul.f32 0.7978846, %v311_v49  ;;  %v315_v49 = vld [vmem:[%s5138_s30 + $0x300] sm:$0xff]  ;;  %v4386_v56 = vld [vmem:[#allocation5 + $0x1f4] ss:$8 sps:$4 sm:$0xff]  }
  0xf6   : > { %3088 = vmatmul.mubr.bf16.gmra.mrb[16].mxu1 %v2171_v61  ;;  %v1071_v9 = vmul.f32 0.044715, %v879_v3  ;;  %v1079_v10 = vmul.f32 0.044715, %v887_v13  ;;  %v5334_v34 = vmul.f32 0.5, %v316_v48  ;;  %v892_v12 = vmul.f32 %v316_v48, %v316_v48  ;;  %3198 = vmatprep.subr.bf16.mxu1 %v4386_v56 }
  0xf7   : > { %v4471_v14 = vpop.eup %4470  ;;  %v2175_v16 = vpack.c.bf16 %v2023_v51, %v2015_v63  ;;  %4480 = vtanh.f32 %v1459_v41  ;;  %v5336_v5 = vmul.f32 0.5, %v324_v6  ;;  %v700_v17 = vmul.f32 0.7978846, %v316_v48  ;;  %v4387_v61 = vld [vmem:[#allocation5 + $0x3f0] ss:$8 sps:$4 sm:$0xff]  }
  0xf8   : > { %v4473_v18 = vpop.eup %4472  ;;  %v1836_v44 = vadd.f32 1.0, %v4471_v14  ;;  %v1263_v21 = vadd.f32 1.0, %v1071_v9  ;;  %v1271_v58 = vadd.f32 1.0, %v1079_v10  ;;  %v900_v11 = vmul.f32 %v324_v6, %v324_v6  ;;  %v4389_v63 = vld [vmem:[#allocation5 + $0x3f4] ss:$8 sps:$4 sm:$0xff]  }
  0xf9   : > { %3394 = vmatmul.mubr.bf16.gmra.mrb[16].mxu0 %v2175_v16  ;;  %v1844_v23 = vadd.f32 1.0, %v4473_v18  ;;  %v708_v24 = vmul.f32 0.7978846, %v324_v6  ;;  %v1084_v1 = vmul.f32 0.044715, %v892_v12  ;;  %v5340_v62 = vmul.f32 0.5, %v320_v4  ;;  %3504 = vmatprep.subr.bf16.mxu0 %v4389_v63 }
  0xfa   : > { %v2028_v28 = vmul.f32 %v1836_v44, %v5300_v15  ;;  %v1455_v32 = vmul.f32 %v1263_v21, %v687_v57  ;;  %v1463_v60 = vmul.f32 %v1271_v58, %v695_v0  ;;  %v1092_v35 = vmul.f32 0.044715, %v900_v11  ;;  %v4384_v57 = vld [vmem:[#allocation5 + $0x1f0] ss:$8 sps:$4 sm:$0xff]   ;;  %v327_v18 = vld [vmem:[%s5138_s30 + $0x360] sm:$0xff]  ;;  %3505 = vmatpush1.bf16.msra.mxu0 %v4387_v61 }
  0xfb   : > { %v2036_v31 = vmul.f32 %v1844_v23, %v5302_v30  ;;  %v1276_v29 = vadd.f32 1.0, %v1084_v1  ;;  %v704_v8 = vmul.f32 0.7978846, %v320_v4  ;;  %v712_v37 = vmul.f32 0.7978846, %v328_v22  ;;  %v323_v30 = vld [vmem:[%s5138_s30 + $0x340] sm:$0xff]  ;;  %3199 = vmatpush1.bf16.msra.mxu1 %v4384_v57 }
  0xfc   : > { %v4475_v38 = vpop.eup %4474  ;;  %4482 = vtanh.f32 %v1455_v32  ;;  %v1284_v39 = vadd.f32 1.0, %v1092_v35  ;;  %v896_v26 = vmul.f32 %v320_v4, %v320_v4  ;;  %v904_v42 = vmul.f32 %v328_v22, %v328_v22  ;;  %v332_v32 = vld [vmem:[%s5138_s30 + $0x388] sm:$0xff] }
  0xfd   : > { %v4477_v43 = vpop.eup %4476  ;;  %v2180_v45 = vpack.c.bf16 %v2036_v31, %v2028_v28  ;;  %v1840_v46 = vadd.f32 1.0, %v4475_v38  ;;  %4484 = vtanh.f32 %v1463_v60  ;;  %v1468_v15 = vmul.f32 %v1276_v29, %v700_v17  ;;  %v319_v17 = vld [vmem:[%s5138_s30 + $0x320] sm:$0xff]  ;;  %v340_v29 = vld [vmem:[%s5138_s30 + $0x3c8] sm:$0xff] }
  0xfe   : > { %v1848_v40 = vadd.f32 1.0, %v4477_v43  ;;  %v1476_v36 = vmul.f32 %v1284_v39, %v708_v24  ;;  %v1088_v50 = vmul.f32 0.044715, %v896_v26  ;;  %v1096_v27 = vmul.f32 0.044715, %v904_v42 }
  0xff   : > { %v4479_v53 = vpop.eup %4478  ;;  %3097 = vmatprep.mubr.bf16.mxu1 %v2180_v45  ;;  %v2032_v2 = vmul.f32 %v1840_v46, %v5310_v20  ;;  %4486 = vtanh.f32 %v1468_v15  ;;  %v5347_v55 = vmul.f32 0.5, %v328_v22  ;;  %v5349_v47 = vmul.f32 0.5, %v315_v49 }
 0x100   : > { %v2040_v59 = vmul.f32 %v1848_v40, %v5312_v25  ;;  %v1835_v33 = vadd.f32 1.0, %v4479_v53  ;;  %4488 = vtanh.f32 %v1476_v36  ;;  %v1280_v48 = vadd.f32 1.0, %v1088_v50 }
 0x101   : > { %v4481_v3 = vpop.eup %4480  ;;  %v1288_v13 = vadd.f32 1.0, %v1096_v27  ;;  %v5352_v51 = vmul.f32 0.5, %v323_v30  ;;  %v699_v20 = vmul.f32 0.7978846, %v315_v49  ;;  %v891_v41 = vmul.f32 %v315_v49, %v315_v49 }
 0x102   : > { %v2184_v0 = vpack.c.bf16 %v2040_v59, %v2032_v2  ;;  %v1843_v6 = vadd.f32 1.0, %v4481_v3  ;;  %v2027_v9 = vmul.f32 %v1835_v33, %v5317_v7  ;;  %v1472_v10 = vmul.f32 %v1280_v48, %v704_v8  ;;  %v336_v59 = vld [vmem:[%s5138_s30 + $0x3a8] sm:$0xff] }
 0x103   : > { %v1480_v25 = vmul.f32 %v1288_v13, %v712_v37  ;;  %v707_v12 = vmul.f32 0.7978846, %v323_v30  ;;  %v899_v14 = vmul.f32 %v323_v30, %v323_v30  ;;  %v1083_v16 = vmul.f32 0.044715, %v891_v41  ;;  %v344_v33 = vld [vmem:[%s5138_s30 + $0x3e8] sm:$0xff] }
 0x104   : > { %3403 = vmatprep.mubr.bf16.mxu0 %v2184_v0  ;;  %v2035_v44 = vmul.f32 %v1843_v6, %v5321_v19  ;;  %4490 = vtanh.f32 %v1472_v10  ;;  %v5358_v21 = vmul.f32 0.5, %v319_v17  ;;  %v5360_v58 = vmul.f32 0.5, %v327_v18 }
 0x105   : > { %4492 = vtanh.f32 %v1480_v25  ;;  %v1091_v7 = vmul.f32 0.044715, %v899_v14  ;;  %v1275_v11 = vadd.f32 1.0, %v1083_v16  ;;  %v703_v4 = vmul.f32 0.7978846, %v319_v17  ;;  %v331_v14 = vld [vmem:[%s5138_s30 + $0x380] sm:$0xff] }
 0x106   : > { %v4483_v22 = vpop.eup %4482  ;;  %v2179_v23 = vpack.c.bf16 %v2035_v44, %v2027_v9  ;;  %v711_v24 = vmul.f32 0.7978846, %v327_v18  ;;  %v895_v1 = vmul.f32 %v319_v17, %v319_v17  ;;  %v903_v28 = vmul.f32 %v327_v18, %v327_v18 }
 0x107   : > { %v4485_v60 = vpop.eup %4484  ;;  %v1839_v35 = vadd.f32 1.0, %v4483_v22  ;;  %v1283_v31 = vadd.f32 1.0, %v1091_v7  ;;  %v1467_v19 = vmul.f32 %v1275_v11, %v699_v20  ;;  %v5364_v8 = vmul.f32 0.5, %v332_v32 }
 0x108   : > { %3098 = vmatmul.mubr.bf16.gmra.mrb[20].mxu1 %v2179_v23  ;;  %v1847_v37 = vadd.f32 1.0, %v4485_v60  ;;  %v1087_v38 = vmul.f32 0.044715, %v895_v1  ;;  %v1095_v39 = vmul.f32 0.044715, %v903_v28  ;;  %v5366_v26 = vmul.f32 0.5, %v340_v29 }
 0x109   : > { %v4487_v42 = vpop.eup %4486  ;;  %v2031_v43 = vmul.f32 %v1839_v35, %v5325_v52  ;;  %v1475_v45 = vmul.f32 %v1283_v31, %v707_v12  ;;  %4494 = vtanh.f32 %v1467_v19  ;;  %v908_v46 = vmul.f32 %v332_v32, %v332_v32  ;;  %v339_v23 = vld [vmem:[%s5138_s30 + $0x3c0] sm:$0xff] }
 0x10a   : > { %v4489_v15 = vpop.eup %4488  ;;  %v2039_v49 = vmul.f32 %v1847_v37, %v5327_v54  ;;  %v1852_v40 = vadd.f32 1.0, %v4487_v42  ;;  %v1279_v36 = vadd.f32 1.0, %v1087_v38  ;;  %v1287_v50 = vadd.f32 1.0, %v1095_v39  ;;  %v335_v38 = vld [vmem:[%s5138_s30 + $0x3a0] sm:$0xff] }
 0x10b   : > { %v1860_v27 = vadd.f32 1.0, %v4489_v15  ;;  %4496 = vtanh.f32 %v1475_v45  ;;  %v716_v30 = vmul.f32 0.7978846, %v332_v32  ;;  %v916_v53 = vmul.f32 %v340_v29, %v340_v29  ;;  %v343_v45 = vld [vmem:[%s5138_s30 + $0x3e0] sm:$0xff] }
 0x10c   : > { %v2183_v2 = vpack.c.bf16 %v2039_v49, %v2031_v43  ;;  %v2044_v57 = vmul.f32 %v1852_v40, %v5334_v34  ;;  %v1471_v56 = vmul.f32 %v1279_v36, %v703_v4  ;;  %v1479_v52 = vmul.f32 %v1287_v50, %v711_v24 }
 0x10d   : > { %v2052_v48 = vmul.f32 %v1860_v27, %v5336_v5  ;;  %v724_v61 = vmul.f32 0.7978846, %v340_v29  ;;  %v1100_v63 = vmul.f32 0.044715, %v908_v46  ;;  %v1108_v3 = vmul.f32 0.044715, %v916_v53 }
 0x10e   : > { %v4491_v54 = vpop.eup %4490  ;;  %3404 = vmatmul.mubr.bf16.gmra.mrb[20].mxu0 %v2183_v2  ;;  %4498 = vtanh.f32 %v1471_v56  ;;  %v5374_v13 = vmul.f32 0.5, %v336_v59  ;;  %v5376_v20 = vmul.f32 0.5, %v344_v33  ;;  %v720_v41 = vmul.f32 0.7978846, %v336_v59 }
 0x10f   : > { %v4493_v0 = vpop.eup %4492  ;;  %v2188_v34 = vpack.c.bf16 %v2052_v48, %v2044_v57  ;;  %v1856_v6 = vadd.f32 1.0, %v4491_v54  ;;  %4500 = vtanh.f32 %v1479_v52  ;;  %v1292_v9 = vadd.f32 1.0, %v1100_v63 }
 0x110   : > { %v1864_v10 = vadd.f32 1.0, %v4493_v0  ;;  %v1300_v5 = vadd.f32 1.0, %v1108_v3  ;;  %v912_v25 = vmul.f32 %v336_v59, %v336_v59  ;;  %v920_v12 = vmul.f32 %v344_v33, %v344_v33 }
 0x111   : > { %3107 = vmatprep.mubr.bf16.mxu1 %v2188_v34  ;;  %v2048_v16 = vmul.f32 %v1856_v6, %v5340_v62  ;;  %v1484_v17 = vmul.f32 %v1292_v9, %v716_v30  ;;  %v728_v18 = vmul.f32 0.7978846, %v344_v33  ;;  %v5380_v44 = vmul.f32 0.5, %v331_v14  ;;  %v356_v34 = vld [vmem:[%s5138_s30 + $0x448] sm:$0xff] }
 0x112   : > { %v2056_v7 = vmul.f32 %v1864_v10, %v5347_v55  ;;  %v1492_v11 = vmul.f32 %v1300_v5, %v724_v61  ;;  %v1104_v4 = vmul.f32 0.044715, %v912_v25  ;;  %v1112_v22 = vmul.f32 0.044715, %v920_v12  ;;  %v348_v61 = vld [vmem:[%s5138_s30 + $0x408] sm:$0xff] }
 0x113   : > { %v4495_v24 = vpop.eup %4494  ;;  %4502 = vtanh.f32 %v1484_v17  ;;  %v5384_v1 = vmul.f32 0.5, %v339_v23  ;;  %v715_v28 = vmul.f32 0.7978846, %v331_v14  ;;  %v907_v32 = vmul.f32 %v331_v14, %v331_v14 }
 0x114   : > { %v2192_v60 = vpack.c.bf16 %v2056_v7, %v2048_v16  ;;  %v1851_v62 = vadd.f32 1.0, %v4495_v24  ;;  %4504 = vtanh.f32 %v1492_v11  ;;  %v1296_v35 = vadd.f32 1.0, %v1104_v4 }
 0x115   : > { %v4497_v31 = vpop.eup %4496  ;;  %v1304_v19 = vadd.f32 1.0, %v1112_v22  ;;  %v723_v29 = vmul.f32 0.7978846, %v339_v23  ;;  %v915_v55 = vmul.f32 %v339_v23, %v339_v23  ;;  %v1099_v37 = vmul.f32 0.044715, %v907_v32  ;;  %v360_v22 = vld [vmem:[%s5138_s30 + $0x468] sm:$0xff] }
 0x116   : > { %3413 = vmatprep.mubr.bf16.mxu0 %v2192_v60  ;;  %v1859_v39 = vadd.f32 1.0, %v4497_v31  ;;  %v2043_v42 = vmul.f32 %v1851_v62, %v5349_v47  ;;  %v1488_v43 = vmul.f32 %v1296_v35, %v720_v41  ;;  %v5389_v46 = vmul.f32 0.5, %v335_v38 }
 0x117   : > { %v1496_v15 = vmul.f32 %v1304_v19, %v728_v18  ;;  %v1107_v49 = vmul.f32 0.044715, %v915_v55  ;;  %v1291_v40 = vadd.f32 1.0, %v1099_v37  ;;  %v5391_v36 = vmul.f32 0.5, %v343_v45  ;;  %v352_v18 = vld [vmem:[%s5138_s30 + $0x428] sm:$0xff] }
 0x118   : > { %v4499_v50 = vpop.eup %4498  ;;  %v2051_v27 = vmul.f32 %v1859_v39, %v5352_v51  ;;  %4506 = vtanh.f32 %v1488_v43  ;;  %v719_v30 = vmul.f32 0.7978846, %v335_v38  ;;  %v911_v53 = vmul.f32 %v335_v38, %v335_v38  ;;  %v347_v43 = vld [vmem:[%s5138_s30 + $0x400] sm:$0xff] }
 0x119   : > { %v4501_v2 = vpop.eup %4500  ;;  %v1855_v57 = vadd.f32 1.0, %v4499_v50  ;;  %4508 = vtanh.f32 %v1496_v15  ;;  %v1299_v47 = vadd.f32 1.0, %v1107_v49  ;;  %v1483_v56 = vmul.f32 %v1291_v40, %v715_v28 }
 0x11a   : > { %v2187_v52 = vpack.c.bf16 %v2051_v27, %v2043_v42  ;;  %v1863_v59 = vadd.f32 1.0, %v4501_v2  ;;  %v919_v33 = vmul.f32 %v343_v45, %v343_v45  ;;  %v1103_v48 = vmul.f32 0.044715, %v911_v53 }
 0x11b   : > { %v2047_v63 = vmul.f32 %v1855_v57, %v5358_v21  ;;  %v1491_v3 = vmul.f32 %v1299_v47, %v723_v29  ;;  %4510 = vtanh.f32 %v1483_v56  ;;  %v727_v54 = vmul.f32 0.7978846, %v343_v45  ;;  %v355_v56 = vld [vmem:[%s5138_s30 + $0x440] sm:$0xff] }
 0x11c   : > { %3108 = vmatmul.mubr.bf16.gmra.mrb[24].mxu1 %v2187_v52  ;;  %v2055_v51 = vmul.f32 %v1863_v59, %v5360_v58  ;;  %v1111_v41 = vmul.f32 0.044715, %v919_v33  ;;  %v1295_v0 = vadd.f32 1.0, %v1103_v48  ;;  %v5398_v6 = vmul.f32 0.5, %v348_v61 }
 0x11d   : > { %v4503_v9 = vpop.eup %4502  ;;  %4512 = vtanh.f32 %v1491_v3  ;;  %v5400_v10 = vmul.f32 0.5, %v356_v34  ;;  %v732_v5 = vmul.f32 0.7978846, %v348_v61  ;;  %v924_v25 = vmul.f32 %v348_v61, %v348_v61 }
 0x11e   : > { %v4505_v21 = vpop.eup %4504  ;;  %v2191_v12 = vpack.c.bf16 %v2055_v51, %v2047_v63  ;;  %v1868_v14 = vadd.f32 1.0, %v4503_v9  ;;  %v1303_v16 = vadd.f32 1.0, %v1111_v41  ;;  %v1487_v17 = vmul.f32 %v1295_v0, %v719_v30  ;;  %v351_v0 = vld [vmem:[%s5138_s30 + $0x420] sm:$0xff] }
 0x11f   : > { %v1876_v7 = vadd.f32 1.0, %v4505_v21  ;;  %v740_v58 = vmul.f32 0.7978846, %v356_v34  ;;  %v932_v11 = vmul.f32 %v356_v34, %v356_v34  ;;  %v1116_v4 = vmul.f32 0.044715, %v924_v25  ;;  %v359_v34 = vld [vmem:[%s5138_s30 + $0x460] sm:$0xff] }
 0x120   : > { %3414 = vmatmul.mubr.bf16.gmra.mrb[24].mxu0 %v2191_v12  ;;  %v2060_v23 = vmul.f32 %v1868_v14, %v5364_v8  ;;  %v1495_v24 = vmul.f32 %v1303_v16, %v727_v54  ;;  %4514 = vtanh.f32 %v1487_v17  ;;  %v5405_v28 = vmul.f32 0.5, %v352_v18 }
 0x121   : > { %v2068_v32 = vmul.f32 %v1876_v7, %v5366_v26  ;;  %v1124_v60 = vmul.f32 0.044715, %v932_v11  ;;  %v1308_v62 = vadd.f32 1.0, %v1116_v4  ;;  %v736_v35 = vmul.f32 0.7978846, %v352_v18 }
 0x122   : > { %v4507_v31 = vpop.eup %4506  ;;  %4516 = vtanh.f32 %v1495_v24  ;;  %v744_v19 = vmul.f32 0.7978846, %v360_v22  ;;  %v928_v29 = vmul.f32 %v352_v18, %v352_v18  ;;  %v936_v55 = vmul.f32 %v360_v22, %v360_v22  ;;  %v372_v24 = vld [vmem:[%s5138_s30 + $0x4c8] sm:$0xff] }
 0x123   : > { %v4509_v37 = vpop.eup %4508  ;;  %v2196_v38 = vpack.c.bf16 %v2068_v32, %v2060_v23  ;;  %v1872_v39 = vadd.f32 1.0, %v4507_v31  ;;  %v1316_v42 = vadd.f32 1.0, %v1124_v60  ;;  %v1500_v8 = vmul.f32 %v1308_v62, %v732_v5  ;;  %v364_v23 = vld [vmem:[%s5138_s30 + $0x488] sm:$0xff] }
 0x124   : > { %v1880_v45 = vadd.f32 1.0, %v4509_v37  ;;  %v5409_v15 = vmul.f32 0.5, %v360_v22  ;;  %v1120_v49 = vmul.f32 0.044715, %v928_v29  ;;  %v1128_v26 = vmul.f32 0.044715, %v936_v55 }
 0x125   : > { %v4511_v40 = vpop.eup %4510  ;;  %3117 = vmatprep.mubr.bf16.mxu1 %v2196_v38  ;;  %v2064_v50 = vmul.f32 %v1872_v39, %v5374_v13  ;;  %v1508_v27 = vmul.f32 %v1316_v42, %v740_v58  ;;  %4518 = vtanh.f32 %v1500_v8  ;;  %v5412_v30 = vmul.f32 0.5, %v347_v43 }
 0x126   : > { %v2072_v53 = vmul.f32 %v1880_v45, %v5376_v20  ;;  %v1867_v2 = vadd.f32 1.0, %v4511_v40  ;;  %v1312_v57 = vadd.f32 1.0, %v1120_v49  ;;  %v1320_v47 = vadd.f32 1.0, %v1128_v26 }
 0x127   : > { %v4513_v52 = vpop.eup %4512  ;;  %4520 = vtanh.f32 %v1508_v27  ;;  %v5416_v59 = vmul.f32 0.5, %v355_v56  ;;  %v731_v33 = vmul.f32 0.7978846, %v347_v43  ;;  %v923_v48 = vmul.f32 %v347_v43, %v347_v43  ;;  %v376_v27 = vld [vmem:[%s5138_s30 + $0x4e8] sm:$0xff] }
 0x128   : > { %v2200_v61 = vpack.c.bf16 %v2072_v53, %v2064_v50  ;;  %v1875_v13 = vadd.f32 1.0, %v4513_v52  ;;  %v2059_v63 = vmul.f32 %v1867_v2, %v5380_v44  ;;  %v1504_v3 = vmul.f32 %v1312_v57, %v736_v35 }
 0x129   : > { %v1512_v54 = vmul.f32 %v1320_v47, %v744_v19  ;;  %v739_v51 = vmul.f32 0.7978846, %v355_v56  ;;  %v931_v20 = vmul.f32 %v355_v56, %v355_v56  ;;  %v1115_v41 = vmul.f32 0.044715, %v923_v48 }
 0x12a   : > { %v4515_v9 = vpop.eup %4514  ;;  %3423 = vmatprep.mubr.bf16.mxu0 %v2200_v61  ;;  %v2067_v5 = vmul.f32 %v1875_v13, %v5384_v1  ;;  %4522 = vtanh.f32 %v1504_v3  ;;  %v5422_v25 = vmul.f32 0.5, %v351_v0  ;;  %v735_v21 = vmul.f32 0.7978846, %v351_v0 }
 0x12b   : > { %v1871_v12 = vadd.f32 1.0, %v4515_v9  ;;  %4524 = vtanh.f32 %v1512_v54  ;;  %v1123_v44 = vmul.f32 0.044715, %v931_v20  ;;  %v1307_v14 = vadd.f32 1.0, %v1115_v41  ;;  %v363_v41 = vld [vmem:[%s5138_s30 + $0x480] sm:$0xff] }
 0x12c   : > { %v4517_v16 = vpop.eup %4516  ;;  %v2195_v17 = vpack.c.bf16 %v2067_v5, %v2059_v63  ;;  %v743_v18 = vmul.f32 0.7978846, %v359_v34  ;;  %v927_v7 = vmul.f32 %v351_v0, %v351_v0  ;;  %v935_v58 = vmul.f32 %v359_v34, %v359_v34 }
 0x12d   : > { %v1879_v11 = vadd.f32 1.0, %v4517_v16  ;;  %v2063_v4 = vmul.f32 %v1871_v12, %v5389_v46  ;;  %v1315_v22 = vadd.f32 1.0, %v1123_v44  ;;  %v1499_v1 = vmul.f32 %v1307_v14, %v731_v33  ;;  %v371_v44 = vld [vmem:[%s5138_s30 + $0x4c0] sm:$0xff] }
 0x12e   : > { %3118 = vmatmul.mubr.bf16.gmra.mrb[28].mxu1 %v2195_v17  ;;  %v5427_v32 = vmul.f32 0.5, %v359_v34  ;;  %v1119_v60 = vmul.f32 0.044715, %v927_v7  ;;  %v1127_v62 = vmul.f32 0.044715, %v935_v58  ;;  %v5429_v35 = vmul.f32 0.5, %v364_v23 }
 0x12f   : > { %v4519_v31 = vpop.eup %4518  ;;  %v2071_v19 = vmul.f32 %v1879_v11, %v5391_v36  ;;  %v1507_v29 = vmul.f32 %v1315_v22, %v739_v51  ;;  %4526 = vtanh.f32 %v1499_v1  ;;  %v748_v55 = vmul.f32 0.7978846, %v364_v23  ;;  %v368_v36 = vld [vmem:[%s5138_s30 + $0x4a8] sm:$0xff] }
 0x130   : > { %v1884_v46 = vadd.f32 1.0, %v4519_v31  ;;  %v1311_v37 = vadd.f32 1.0, %v1119_v60  ;;  %v1319_v38 = vadd.f32 1.0, %v1127_v62  ;;  %v756_v39 = vmul.f32 0.7978846, %v372_v24 }
 0x131   : > { %v4521_v42 = vpop.eup %4520  ;;  %v2199_v8 = vpack.c.bf16 %v2071_v19, %v2063_v4  ;;  %4528 = vtanh.f32 %v1507_v29  ;;  %v940_v43 = vmul.f32 %v364_v23, %v364_v23  ;;  %v948_v45 = vmul.f32 %v372_v24, %v372_v24  ;;  %v375_v19 = vld [vmem:[%s5138_s30 + $0x4e0] sm:$0xff] }
 0x132   : > { %v1892_v49 = vadd.f32 1.0, %v4521_v42  ;;  %v2076_v26 = vmul.f32 %v1884_v46, %v5398_v6  ;;  %v1503_v40 = vmul.f32 %v1311_v37, %v735_v21  ;;  %v1511_v50 = vmul.f32 %v1319_v38, %v743_v18 }
 0x133   : > { %3424 = vmatmul.mubr.bf16.gmra.mrb[28].mxu0 %v2199_v8  ;;  %v5435_v53 = vmul.f32 0.5, %v372_v24  ;;  %v1132_v2 = vmul.f32 0.044715, %v940_v43  ;;  %v1140_v57 = vmul.f32 0.044715, %v948_v45  ;;  %v5437_v47 = vmul.f32 0.5, %v368_v36 }
 0x134   : > { %v4523_v56 = vpop.eup %4522  ;;  %v2084_v52 = vmul.f32 %v1892_v49, %v5400_v10  ;;  %4530 = vtanh.f32 %v1503_v40  ;;  %v5440_v33 = vmul.f32 0.5, %v376_v27  ;;  %v752_v48 = vmul.f32 0.7978846, %v368_v36  ;;  %v367_v24 = vld [vmem:[%s5138_s30 + $0x4a0] sm:$0xff] }
 0x135   : > { %v4525_v6 = vpop.eup %4524  ;;  %v1888_v61 = vadd.f32 1.0, %v4523_v56  ;;  %4532 = vtanh.f32 %v1511_v50  ;;  %v1324_v13 = vadd.f32 1.0, %v1132_v2  ;;  %v1332_v63 = vadd.f32 1.0, %v1140_v57  ;;  %v380_v2 = vld [vmem:[%s5138_s30 + $0x508] sm:$0xff] }
 0x136   : > { %v2204_v3 = vpack.c.bf16 %v2084_v52, %v2076_v26  ;;  %v1896_v54 = vadd.f32 1.0, %v4525_v6  ;;  %v944_v51 = vmul.f32 %v368_v36, %v368_v36  ;;  %v952_v20 = vmul.f32 %v376_v27, %v376_v27 }
 0x137   : > { %v2080_v0 = vmul.f32 %v1888_v61, %v5405_v28  ;;  %v1516_v34 = vmul.f32 %v1324_v13, %v748_v55  ;;  %v1524_v9 = vmul.f32 %v1332_v63, %v756_v39  ;;  %v760_v10 = vmul.f32 0.7978846, %v376_v27  ;;  %v388_v61 = vld [vmem:[%s5138_s30 + $0x548] sm:$0xff] }
 0x138   : > { %3127 = vmatprep.mubr.bf16.mxu1 %v2204_v3  ;;  %v2088_v5 = vmul.f32 %v1896_v54, %v5409_v15  ;;  %v1136_v21 = vmul.f32 0.044715, %v944_v51  ;;  %v1144_v12 = vmul.f32 0.044715, %v952_v20  ;;  %v5446_v14 = vmul.f32 0.5, %v363_v41 }
 0x139   : > { %v4527_v16 = vpop.eup %4526  ;;  %4534 = vtanh.f32 %v1516_v34  ;;  %v5448_v17 = vmul.f32 0.5, %v371_v44  ;;  %v747_v18 = vmul.f32 0.7978846, %v363_v41  ;;  %v939_v7 = vmul.f32 %v363_v41, %v363_v41 }
 0x13a   : > { %v2208_v28 = vpack.c.bf16 %v2088_v5, %v2080_v0  ;;  %v1883_v58 = vadd.f32 1.0, %v4527_v16  ;;  %4536 = vtanh.f32 %v1524_v9  ;;  %v1328_v11 = vadd.f32 1.0, %v1136_v21  ;;  %v384_v9 = vld [vmem:[%s5138_s30 + $0x528] sm:$0xff] }
 0x13b   : > { %v4529_v4 = vpop.eup %4528  ;;  %v1336_v22 = vadd.f32 1.0, %v1144_v12  ;;  %v755_v15 = vmul.f32 0.7978846, %v371_v44  ;;  %v947_v1 = vmul.f32 %v371_v44, %v371_v44  ;;  %v1131_v23 = vmul.f32 0.044715, %v939_v7  ;;  %v392_v12 = vld [vmem:[%s5138_s30 + $0x568] sm:$0xff] }
 0x13c   : > { %3433 = vmatprep.mubr.bf16.mxu0 %v2208_v28  ;;  %v1891_v60 = vadd.f32 1.0, %v4529_v4  ;;  %v2075_v62 = vmul.f32 %v1883_v58, %v5412_v30  ;;  %v1520_v31 = vmul.f32 %v1328_v11, %v752_v48  ;;  %v5453_v29 = vmul.f32 0.5, %v367_v24 }
 0x13d   : > { %v1528_v55 = vmul.f32 %v1336_v22, %v760_v10  ;;  %v1139_v46 = vmul.f32 0.044715, %v947_v1  ;;  %v1323_v37 = vadd.f32 1.0, %v1131_v23  ;;  %v5455_v38 = vmul.f32 0.5, %v375_v19 }
 0x13e   : > { %v4531_v39 = vpop.eup %4530  ;;  %v2083_v42 = vmul.f32 %v1891_v60, %v5416_v59  ;;  %4538 = vtanh.f32 %v1520_v31  ;;  %v751_v8 = vmul.f32 0.7978846, %v367_v24  ;;  %v943_v43 = vmul.f32 %v367_v24, %v367_v24  ;;  %v379_v31 = vld [vmem:[%s5138_s30 + $0x500] sm:$0xff] }
 0x13f   : > { %v4533_v45 = vpop.eup %4532  ;;  %v1887_v49 = vadd.f32 1.0, %v4531_v39  ;;  %4540 = vtanh.f32 %v1528_v55  ;;  %v1331_v30 = vadd.f32 1.0, %v1139_v46  ;;  %v1515_v26 = vmul.f32 %v1323_v37, %v747_v18 }
 0x140   : > { %v2203_v40 = vpack.c.bf16 %v2083_v42, %v2075_v62  ;;  %v1895_v50 = vadd.f32 1.0, %v4533_v45  ;;  %v951_v36 = vmul.f32 %v375_v19, %v375_v19  ;;  %v1135_v27 = vmul.f32 0.044715, %v943_v43 }
 0x141   : > { %v2079_v57 = vmul.f32 %v1887_v49, %v5422_v25  ;;  %v1523_v56 = vmul.f32 %v1331_v30, %v755_v15  ;;  %4542 = vtanh.f32 %v1515_v26  ;;  %v759_v52 = vmul.f32 0.7978846, %v375_v19  ;;  %v387_v26 = vld [vmem:[%s5138_s30 + $0x540] sm:$0xff] }
 0x142   : > { %3128 = vmatmul.mubr.bf16.gmra.mrb[32].mxu1 %v2203_v40  ;;  %v2087_v59 = vmul.f32 %v1895_v50, %v5427_v32  ;;  %v1143_v48 = vmul.f32 0.044715, %v951_v36  ;;  %v1327_v6 = vadd.f32 1.0, %v1135_v27  ;;  %v5462_v13 = vmul.f32 0.5, %v380_v2 }
 0x143   : > { %v4535_v63 = vpop.eup %4534  ;;  %4544 = vtanh.f32 %v1523_v56  ;;  %v5464_v3 = vmul.f32 0.5, %v388_v61  ;;  %v764_v54 = vmul.f32 0.7978846, %v380_v2  ;;  %v956_v51 = vmul.f32 %v380_v2, %v380_v2 }
 0x144   : > { %v4537_v25 = vpop.eup %4536  ;;  %v2207_v20 = vpack.c.bf16 %v2087_v59, %v2079_v57  ;;  %v1900_v41 = vadd.f32 1.0, %v4535_v63  ;;  %v1335_v0 = vadd.f32 1.0, %v1143_v48  ;;  %v1519_v34 = vmul.f32 %v1327_v6, %v751_v8  ;;  %v383_v6 = vld [vmem:[%s5138_s30 + $0x520] sm:$0xff] }
 0x145   : > { %v1908_v10 = vadd.f32 1.0, %v4537_v25  ;;  %v772_v32 = vmul.f32 0.7978846, %v388_v61  ;;  %v964_v5 = vmul.f32 %v388_v61, %v388_v61  ;;  %v1148_v21 = vmul.f32 0.044715, %v956_v51  ;;  %v391_v61 = vld [vmem:[%s5138_s30 + $0x560] sm:$0xff] }
 0x146   : > { %3434 = vmatmul.mubr.bf16.gmra.mrb[32].mxu0 %v2207_v20  ;;  %v2092_v44 = vmul.f32 %v1900_v41, %v5429_v35  ;;  %v1527_v16 = vmul.f32 %v1335_v0, %v759_v52  ;;  %4546 = vtanh.f32 %v1519_v34  ;;  %v5469_v18 = vmul.f32 0.5, %v384_v9 }
 0x147   : > { %v2100_v7 = vmul.f32 %v1908_v10, %v5435_v53  ;;  %v1156_v28 = vmul.f32 0.044715, %v964_v5  ;;  %v1340_v58 = vadd.f32 1.0, %v1148_v21  ;;  %v768_v11 = vmul.f32 0.7978846, %v384_v9 }
 0x148   : > { %v4539_v4 = vpop.eup %4538  ;;  %4548 = vtanh.f32 %v1527_v16  ;;  %v776_v22 = vmul.f32 0.7978846, %v392_v12  ;;  %v960_v15 = vmul.f32 %v384_v9, %v384_v9  ;;  %v968_v1 = vmul.f32 %v392_v12, %v392_v12  ;;  %v404_v16 = vld [vmem:[%s5138_s30 + $0x5c8] sm:$0xff] }
 0x149   : > { %v4541_v23 = vpop.eup %4540  ;;  %v2212_v24 = vpack.c.bf16 %v2100_v7, %v2092_v44  ;;  %v1904_v60 = vadd.f32 1.0, %v4539_v4  ;;  %v1348_v62 = vadd.f32 1.0, %v1156_v28  ;;  %v1532_v35 = vmul.f32 %v1340_v58, %v764_v54  ;;  %v396_v44 = vld [vmem:[%s5138_s30 + $0x588] sm:$0xff] }
 0x14a   : > { %v1912_v19 = vadd.f32 1.0, %v4541_v23  ;;  %v5473_v55 = vmul.f32 0.5, %v392_v12  ;;  %v1152_v46 = vmul.f32 0.044715, %v960_v15  ;;  %v1160_v53 = vmul.f32 0.044715, %v968_v1 }
 0x14b   : > { %v4543_v37 = vpop.eup %4542  ;;  %3137 = vmatprep.mubr.bf16.mxu1 %v2212_v24  ;;  %v2096_v39 = vmul.f32 %v1904_v60, %v5437_v47  ;;  %v1540_v42 = vmul.f32 %v1348_v62, %v772_v32  ;;  %4550 = vtanh.f32 %v1532_v35  ;;  %v5476_v8 = vmul.f32 0.5, %v379_v31 }
 0x14c   : > { %v2104_v43 = vmul.f32 %v1912_v19, %v5440_v33  ;;  %v1899_v45 = vadd.f32 1.0, %v4543_v37  ;;  %v1344_v49 = vadd.f32 1.0, %v1152_v46  ;;  %v1352_v30 = vadd.f32 1.0, %v1160_v53 }
 0x14d   : > { %v4545_v40 = vpop.eup %4544  ;;  %4552 = vtanh.f32 %v1540_v42  ;;  %v5480_v50 = vmul.f32 0.5, %v387_v26  ;;  %v763_v36 = vmul.f32 0.7978846, %v379_v31  ;;  %v955_v27 = vmul.f32 %v379_v31, %v379_v31  ;;  %v408_v42 = vld [vmem:[%s5138_s30 + $0x5e8] sm:$0xff] }
 0x14e   : > { %v2216_v2 = vpack.c.bf16 %v2104_v43, %v2096_v39  ;;  %v1907_v47 = vadd.f32 1.0, %v4545_v40  ;;  %v2091_v57 = vmul.f32 %v1899_v45, %v5446_v14  ;;  %v1536_v56 = vmul.f32 %v1344_v49, %v768_v11 }
 0x14f   : > { %v1544_v52 = vmul.f32 %v1352_v30, %v776_v22  ;;  %v771_v59 = vmul.f32 0.7978846, %v387_v26  ;;  %v963_v33 = vmul.f32 %v387_v26, %v387_v26  ;;  %v1147_v48 = vmul.f32 0.044715, %v955_v27 }
 0x150   : > { %v4547_v63 = vpop.eup %4546  ;;  %3443 = vmatprep.mubr.bf16.mxu0 %v2216_v2  ;;  %v2099_v54 = vmul.f32 %v1907_v47, %v5448_v17  ;;  %4554 = vtanh.f32 %v1536_v56  ;;  %v5486_v51 = vmul.f32 0.5, %v383_v6  ;;  %v767_v25 = vmul.f32 0.7978846, %v383_v6 }
 0x151   : > { %v1903_v20 = vadd.f32 1.0, %v4547_v63  ;;  %4556 = vtanh.f32 %v1544_v52  ;;  %v1155_v14 = vmul.f32 0.044715, %v963_v33  ;;  %v1339_v41 = vadd.f32 1.0, %v1147_v48  ;;  %v395_v48 = vld [vmem:[%s5138_s30 + $0x580] sm:$0xff] }
 0x152   : > { %v4549_v0 = vpop.eup %4548  ;;  %v2211_v34 = vpack.c.bf16 %v2099_v54, %v2091_v57  ;;  %v775_v9 = vmul.f32 0.7978846, %v391_v61  ;;  %v959_v10 = vmul.f32 %v383_v6, %v383_v6  ;;  %v967_v32 = vmul.f32 %v391_v61, %v391_v61 }
 0x153   : > { %v1911_v5 = vadd.f32 1.0, %v4549_v0  ;;  %v2095_v21 = vmul.f32 %v1903_v20, %v5453_v29  ;;  %v1347_v12 = vadd.f32 1.0, %v1155_v14  ;;  %v1531_v17 = vmul.f32 %v1339_v41, %v763_v36  ;;  %v403_v14 = vld [vmem:[%s5138_s30 + $0x5c0] sm:$0xff] }
 0x154   : > { %3138 = vmatmul.mubr.bf16.gmra.mrb[36].mxu1 %v2211_v34  ;;  %v5491_v7 = vmul.f32 0.5, %v391_v61  ;;  %v1151_v28 = vmul.f32 0.044715, %v959_v10  ;;  %v1159_v58 = vmul.f32 0.044715, %v967_v32  ;;  %v5493_v11 = vmul.f32 0.5, %v396_v44 }
 0x155   : > { %v4551_v4 = vpop.eup %4550  ;;  %v2103_v22 = vmul.f32 %v1911_v5, %v5455_v38  ;;  %v1539_v15 = vmul.f32 %v1347_v12, %v771_v59  ;;  %4558 = vtanh.f32 %v1531_v17  ;;  %v780_v1 = vmul.f32 0.7978846, %v396_v44  ;;  %v400_v38 = vld [vmem:[%s5138_s30 + $0x5a8] sm:$0xff] }
 0x156   : > { %v1916_v29 = vadd.f32 1.0, %v4551_v4  ;;  %v1343_v23 = vadd.f32 1.0, %v1151_v28  ;;  %v1351_v24 = vadd.f32 1.0, %v1159_v58  ;;  %v788_v60 = vmul.f32 0.7978846, %v404_v16 }
 0x157   : > { %v4553_v62 = vpop.eup %4552  ;;  %v2215_v35 = vpack.c.bf16 %v2103_v22, %v2095_v21  ;;  %4560 = vtanh.f32 %v1539_v15  ;;  %v972_v31 = vmul.f32 %v396_v44, %v396_v44  ;;  %v980_v19 = vmul.f32 %v404_v16, %v404_v16  ;;  %v407_v22 = vld [vmem:[%s5138_s30 + $0x5e0] sm:$0xff] }
 0x158   : > { %v1924_v46 = vadd.f32 1.0, %v4553_v62  ;;  %v2108_v53 = vmul.f32 %v1916_v29, %v5462_v13  ;;  %v1535_v37 = vmul.f32 %v1343_v23, %v767_v25  ;;  %v1543_v39 = vmul.f32 %v1351_v24, %v775_v9 }
 0x159   : > { %3444 = vmatmul.mubr.bf16.gmra.mrb[36].mxu0 %v2215_v35  ;;  %v5499_v43 = vmul.f32 0.5, %v404_v16  ;;  %v1164_v45 = vmul.f32 0.044715, %v972_v31  ;;  %v1172_v49 = vmul.f32 0.044715, %v980_v19  ;;  %v5501_v30 = vmul.f32 0.5, %v400_v38 }
 0x15a   : > { %v4555_v26 = vpop.eup %4554  ;;  %v2116_v40 = vmul.f32 %v1924_v46, %v5464_v3  ;;  %4562 = vtanh.f32 %v1535_v37  ;;  %v5504_v36 = vmul.f32 0.5, %v408_v42  ;;  %v784_v27 = vmul.f32 0.7978846, %v400_v38  ;;  %v399_v16 = vld [vmem:[%s5138_s30 + $0x5a0] sm:$0xff] }
 0x15b   : > { %v4557_v13 = vpop.eup %4556  ;;  %v1920_v2 = vadd.f32 1.0, %v4555_v26  ;;  %4564 = vtanh.f32 %v1543_v39  ;;  %v1356_v47 = vadd.f32 1.0, %v1164_v45  ;;  %v1364_v57 = vadd.f32 1.0, %v1172_v49  ;;  %v222_v45 = vld [vmem:[%s5138_s30 + $0x18] sm:$0xff] }
 0x15c   : > { %v2220_v56 = vpack.c.bf16 %v2116_v40, %v2108_v53  ;;  %v1928_v52 = vadd.f32 1.0, %v4557_v13  ;;  %v976_v59 = vmul.f32 %v400_v38, %v400_v38  ;;  %v984_v33 = vmul.f32 %v408_v42, %v408_v42 }
 0x15d   : > { %v2112_v6 = vmul.f32 %v1920_v2, %v5469_v18  ;;  %v1548_v61 = vmul.f32 %v1356_v47, %v780_v1  ;;  %v1556_v63 = vmul.f32 %v1364_v57, %v788_v60  ;;  %v792_v3 = vmul.f32 0.7978846, %v408_v42  ;;  %v230_v2 = vld [vmem:[%s5138_s30 + $0x58] sm:$0xff] }
 0x15e   : > { %3147 = vmatprep.mubr.bf16.mxu1 %v2220_v56  ;;  %v2120_v54 = vmul.f32 %v1928_v52, %v5473_v55  ;;  %v1168_v25 = vmul.f32 0.044715, %v976_v59  ;;  %v1176_v20 = vmul.f32 0.044715, %v984_v33  ;;  %v5510_v41 = vmul.f32 0.5, %v395_v48 }
 0x15f   : > { %v4559_v0 = vpop.eup %4558  ;;  %4566 = vtanh.f32 %v1548_v61  ;;  %v5512_v34 = vmul.f32 0.5, %v403_v14  ;;  %v779_v9 = vmul.f32 0.7978846, %v395_v48  ;;  %v971_v10 = vmul.f32 %v395_v48, %v395_v48 }
 0x160   : > { %v2224_v18 = vpack.c.bf16 %v2120_v54, %v2112_v6  ;;  %v1915_v32 = vadd.f32 1.0, %v4559_v0  ;;  %4568 = vtanh.f32 %v1556_v63  ;;  %v1360_v5 = vadd.f32 1.0, %v1168_v25  ;;  %v226_v63 = vld [vmem:[%s5138_s30 + $0x38] sm:$0xff] }
 0x161   : > { %v4561_v21 = vpop.eup %4560  ;;  %v1368_v12 = vadd.f32 1.0, %v1176_v20  ;;  %v787_v55 = vmul.f32 0.7978846, %v403_v14  ;;  %v979_v17 = vmul.f32 %v403_v14, %v403_v14  ;;  %v1163_v44 = vmul.f32 0.044715, %v971_v10  ;;  %v234_v20 = vld [vmem:[%s5138_s30 + $0x78] sm:$0xff] }
 0x162   : > { %3453 = vmatprep.mubr.bf16.mxu0 %v2224_v18  ;;  %v1923_v28 = vadd.f32 1.0, %v4561_v21  ;;  %v2107_v58 = vmul.f32 %v1915_v32, %v5476_v8  ;;  %v1552_v4 = vmul.f32 %v1360_v5, %v784_v27  ;;  %v5517_v15 = vmul.f32 0.5, %v399_v16 }
 0x163   : > { %v1560_v1 = vmul.f32 %v1368_v12, %v792_v3  ;;  %v1171_v29 = vmul.f32 0.044715, %v979_v17  ;;  %v1355_v23 = vadd.f32 1.0, %v1163_v44  ;;  %v5519_v24 = vmul.f32 0.5, %v407_v22 }
 0x164   : > { %v4563_v60 = vpop.eup %4562  ;;  %v2115_v62 = vmul.f32 %v1923_v28, %v5480_v50  ;;  %4570 = vtanh.f32 %v1552_v4  ;;  %v783_v35 = vmul.f32 0.7978846, %v399_v16  ;;  %v975_v31 = vmul.f32 %v399_v16, %v399_v16  ;;  %v221_v4 = vld [vmem:[%s5138_s30 + $0x10] sm:$0xff] }
 0x165   : > { %v4565_v19 = vpop.eup %4564  ;;  %v1919_v46 = vadd.f32 1.0, %v4563_v60  ;;  %4572 = vtanh.f32 %v1560_v1  ;;  %v1363_v8 = vadd.f32 1.0, %v1171_v29  ;;  %v1547_v53 = vmul.f32 %v1355_v23, %v779_v9 }
 0x166   : > { %v2219_v37 = vpack.c.bf16 %v2115_v62, %v2107_v58  ;;  %v1927_v39 = vadd.f32 1.0, %v4565_v19  ;;  %v983_v38 = vmul.f32 %v407_v22, %v407_v22  ;;  %v1167_v42 = vmul.f32 0.044715, %v975_v31 }
 0x167   : > { %v2111_v49 = vmul.f32 %v1919_v46, %v5486_v51  ;;  %v1555_v26 = vmul.f32 %v1363_v8, %v787_v55  ;;  %4574 = vtanh.f32 %v1547_v53  ;;  %v791_v40 = vmul.f32 0.7978846, %v407_v22  ;;  %v229_v53 = vld [vmem:[%s5138_s30 + $0x50] sm:$0xff] }
 0x168   : > { %3148 = vmatmul.mubr.bf16.gmra.mrb[40].mxu1 %v2219_v37  ;;  %v2119_v50 = vmul.f32 %v1927_v39, %v5491_v7  ;;  %v1175_v27 = vmul.f32 0.044715, %v983_v38  ;;  %v1359_v13 = vadd.f32 1.0, %v1167_v42  ;;  %v5526_v47 = vmul.f32 0.5, %v222_v45 }
 0x169   : > { %v4567_v57 = vpop.eup %4566  ;;  %4576 = vtanh.f32 %v1555_v26  ;;  %v5528_v56 = vmul.f32 0.5, %v230_v2  ;;  %v606_v52 = vmul.f32 0.7978846, %v222_v45  ;;  %v798_v59 = vmul.f32 %v222_v45, %v222_v45 }
 0x16a   : > { %v4569_v51 = vpop.eup %4568  ;;  %v2223_v33 = vpack.c.bf16 %v2119_v50, %v2111_v49  ;;  %v1932_v48 = vadd.f32 1.0, %v4567_v57  ;;  %v1367_v6 = vadd.f32 1.0, %v1175_v27  ;;  %v1551_v61 = vmul.f32 %v1359_v13, %v783_v35  ;;  %v225_v13 = vld [vmem:[%s5138_s30 + $0x30] sm:$0xff] }
 0x16b   : > { %v1940_v3 = vadd.f32 1.0, %v4569_v51  ;;  %v614_v7 = vmul.f32 0.7978846, %v230_v2  ;;  %v806_v54 = vmul.f32 %v230_v2, %v230_v2  ;;  %v990_v25 = vmul.f32 0.044715, %v798_v59  ;;  %v233_v2 = vld [vmem:[%s5138_s30 + $0x70] sm:$0xff] }
 0x16c   : > { %3454 = vmatmul.mubr.bf16.gmra.mrb[40].mxu0 %v2223_v33  ;;  %v2124_v14 = vmul.f32 %v1932_v48, %v5493_v11  ;;  %v1559_v0 = vmul.f32 %v1367_v6, %v791_v40  ;;  %4578 = vtanh.f32 %v1551_v61  ;;  %v5533_v9 = vmul.f32 0.5, %v226_v63 }
 0x16d   : > { %v2132_v10 = vmul.f32 %v1940_v3, %v5499_v43  ;;  %v998_v18 = vmul.f32 0.044715, %v806_v54  ;;  %v1182_v32 = vadd.f32 1.0, %v990_v25  ;;  %v610_v5 = vmul.f32 0.7978846, %v226_v63 }
 0x16e   : > { %v4571_v21 = vpop.eup %4570  ;;  %4580 = vtanh.f32 %v1559_v0  ;;  %v618_v12 = vmul.f32 0.7978846, %v234_v20  ;;  %v802_v55 = vmul.f32 %v226_v63, %v226_v63  ;;  %v810_v17 = vmul.f32 %v234_v20, %v234_v20  ;;  %v246_v0 = vld [vmem:[%s5138_s30 + $0xd8] sm:$0xff] }
 0x16f   : > { %v4573_v44 = vpop.eup %4572  ;;  %v2228_v16 = vpack.c.bf16 %v2132_v10, %v2124_v14  ;;  %v1936_v28 = vadd.f32 1.0, %v4571_v21  ;;  %v1190_v58 = vadd.f32 1.0, %v998_v18  ;;  %v1374_v11 = vmul.f32 %v1182_v32, %v606_v52  ;;  %v238_v14 = vld [vmem:[%s5138_s30 + $0x98] sm:$0xff] }
 0x170   : > { %v1944_v22 = vadd.f32 1.0, %v4573_v44  ;;  %v5537_v1 = vmul.f32 0.5, %v234_v20  ;;  %v994_v29 = vmul.f32 0.044715, %v802_v55  ;;  %v1002_v43 = vmul.f32 0.044715, %v810_v17 }
 0x171   : > { %v4575_v23 = vpop.eup %4574  ;;  %3157 = vmatprep.mubr.bf16.mxu1 %v2228_v16  ;;  %v2128_v60 = vmul.f32 %v1936_v28, %v5501_v30  ;;  %v1382_v62 = vmul.f32 %v1190_v58, %v614_v7  ;;  %4582 = vtanh.f32 %v1374_v11  ;;  %v5540_v35 = vmul.f32 0.5, %v221_v4 }
 0x172   : > { %v2136_v31 = vmul.f32 %v1944_v22, %v5504_v36  ;;  %v1931_v19 = vadd.f32 1.0, %v4575_v23  ;;  %v1186_v46 = vadd.f32 1.0, %v994_v29  ;;  %v1194_v8 = vadd.f32 1.0, %v1002_v43 }
 0x173   : > { %v4577_v37 = vpop.eup %4576  ;;  %4584 = vtanh.f32 %v1382_v62  ;;  %v5544_v39 = vmul.f32 0.5, %v229_v53  ;;  %v605_v38 = vmul.f32 0.7978846, %v221_v4  ;;  %v797_v42 = vmul.f32 %v221_v4, %v221_v4  ;;  %v250_v62 = vld [vmem:[%s5138_s30 + $0xf8] sm:$0xff] }
 0x174   : > { %v2232_v45 = vpack.c.bf16 %v2136_v31, %v2128_v60  ;;  %v1939_v30 = vadd.f32 1.0, %v4577_v37  ;;  %v2123_v49 = vmul.f32 %v1931_v19, %v5510_v41  ;;  %v1378_v26 = vmul.f32 %v1186_v46, %v610_v5 }
 0x175   : > { %v1386_v40 = vmul.f32 %v1194_v8, %v618_v12  ;;  %v613_v50 = vmul.f32 0.7978846, %v229_v53  ;;  %v805_v36 = vmul.f32 %v229_v53, %v229_v53  ;;  %v989_v27 = vmul.f32 0.044715, %v797_v42 }
 0x176   : > { %v4579_v57 = vpop.eup %4578  ;;  %3463 = vmatprep.mubr.bf16.mxu0 %v2232_v45  ;;  %v2131_v52 = vmul.f32 %v1939_v30, %v5512_v34  ;;  %4586 = vtanh.f32 %v1378_v26  ;;  %v5550_v59 = vmul.f32 0.5, %v225_v13  ;;  %v609_v51 = vmul.f32 0.7978846, %v225_v13 }
 0x177   : > { %v1935_v33 = vadd.f32 1.0, %v4579_v57  ;;  %4588 = vtanh.f32 %v1386_v40  ;;  %v997_v41 = vmul.f32 0.044715, %v805_v36  ;;  %v1181_v48 = vadd.f32 1.0, %v989_v27  ;;  %v237_v27 = vld [vmem:[%s5138_s30 + $0x90] sm:$0xff] }
 0x178   : > { %v4581_v6 = vpop.eup %4580  ;;  %v2227_v61 = vpack.c.bf16 %v2131_v52, %v2123_v49  ;;  %v617_v63 = vmul.f32 0.7978846, %v233_v2  ;;  %v801_v3 = vmul.f32 %v225_v13, %v225_v13  ;;  %v809_v7 = vmul.f32 %v233_v2, %v233_v2 }
 0x179   : > { %v1943_v54 = vadd.f32 1.0, %v4581_v6  ;;  %v2127_v25 = vmul.f32 %v1935_v33, %v5517_v15  ;;  %v1189_v20 = vadd.f32 1.0, %v997_v41  ;;  %v1373_v34 = vmul.f32 %v1181_v48, %v605_v38  ;;  %v245_v41 = vld [vmem:[%s5138_s30 + $0xd0] sm:$0xff] }
 0x17a   : > { %3158 = vmatmul.mubr.bf16.gmra.mrb[44].mxu1 %v2227_v61  ;;  %v5555_v10 = vmul.f32 0.5, %v233_v2  ;;  %v993_v18 = vmul.f32 0.044715, %v801_v3  ;;  %v1001_v32 = vmul.f32 0.044715, %v809_v7  ;;  %v5557_v5 = vmul.f32 0.5, %v238_v14 }
 0x17b   : > { %v4583_v21 = vpop.eup %4582  ;;  %v2135_v12 = vmul.f32 %v1943_v54, %v5519_v24  ;;  %v1381_v55 = vmul.f32 %v1189_v20, %v613_v50  ;;  %4590 = vtanh.f32 %v1373_v34  ;;  %v622_v17 = vmul.f32 0.7978846, %v238_v14  ;;  %v242_v24 = vld [vmem:[%s5138_s30 + $0xb8] sm:$0xff] }
 0x17c   : > { %v1758_v15 = vadd.f32 1.0, %v4583_v21  ;;  %v1185_v44 = vadd.f32 1.0, %v993_v18  ;;  %v1193_v16 = vadd.f32 1.0, %v1001_v32  ;;  %v630_v28 = vmul.f32 0.7978846, %v246_v0 }
 0x17d   : > { %v4585_v58 = vpop.eup %4584  ;;  %v2231_v11 = vpack.c.bf16 %v2135_v12, %v2127_v25  ;;  %4592 = vtanh.f32 %v1381_v55  ;;  %v814_v4 = vmul.f32 %v238_v14, %v238_v14  ;;  %v822_v22 = vmul.f32 %v246_v0, %v246_v0  ;;  %v249_v12 = vld [vmem:[%s5138_s30 + $0xf0] sm:$0xff] }
 0x17e   : > { %v1766_v29 = vadd.f32 1.0, %v4585_v58  ;;  %v1950_v43 = vmul.f32 %v1758_v15, %v5526_v47  ;;  %v1377_v23 = vmul.f32 %v1185_v44, %v609_v51  ;;  %v1385_v60 = vmul.f32 %v1193_v16, %v617_v63 }
 0x17f   : > { %3464 = vmatmul.mubr.bf16.gmra.mrb[44].mxu0 %v2231_v11  ;;  %v5563_v31 = vmul.f32 0.5, %v246_v0  ;;  %v1006_v19 = vmul.f32 0.044715, %v814_v4  ;;  %v1014_v46 = vmul.f32 0.044715, %v822_v22  ;;  %v5565_v8 = vmul.f32 0.5, %v242_v24 }
 0x180   : > { %v4587_v53 = vpop.eup %4586  ;;  %v1958_v37 = vmul.f32 %v1766_v29, %v5528_v56  ;;  %4594 = vtanh.f32 %v1377_v23  ;;  %v5568_v38 = vmul.f32 0.5, %v250_v62  ;;  %v626_v42 = vmul.f32 0.7978846, %v242_v24  ;;  %v241_v0 = vld [vmem:[%s5138_s30 + $0xb0] sm:$0xff] }
 0x181   : > { %v4589_v47 = vpop.eup %4588  ;;  %v1762_v45 = vadd.f32 1.0, %v4587_v53  ;;  %4596 = vtanh.f32 %v1385_v60  ;;  %v1198_v30 = vadd.f32 1.0, %v1006_v19  ;;  %v1206_v49 = vadd.f32 1.0, %v1014_v46  ;;  %v254_v19 = vld [vmem:[%s5138_s30 + $0x118] sm:$0xff] }
 0x182   : > { %v2142_v26 = vpack.c.bf16 %v1958_v37, %v1950_v43  ;;  %v1770_v40 = vadd.f32 1.0, %v4589_v47  ;;  %v818_v50 = vmul.f32 %v242_v24, %v242_v24  ;;  %v826_v36 = vmul.f32 %v250_v62, %v250_v62 }
 0x183   : > { %v1954_v13 = vmul.f32 %v1762_v45, %v5533_v9  ;;  %v1390_v2 = vmul.f32 %v1198_v30, %v622_v17  ;;  %v1398_v57 = vmul.f32 %v1206_v49, %v630_v28  ;;  %v634_v56 = vmul.f32 0.7978846, %v250_v62  ;;  %v262_v45 = vld [vmem:[%s5138_s30 + $0x158] sm:$0xff] }
 0x184   : > { %3200 = vmatprep.mubr.bf16.mxu1 %v2142_v26  ;;  %v1962_v52 = vmul.f32 %v1770_v40, %v5537_v1  ;;  %v1010_v51 = vmul.f32 0.044715, %v818_v50  ;;  %v1018_v33 = vmul.f32 0.044715, %v826_v36  ;;  %v5574_v48 = vmul.f32 0.5, %v237_v27 }
 0x185   : > { %v4591_v6 = vpop.eup %4590  ;;  %4598 = vtanh.f32 %v1390_v2  ;;  %v5576_v61 = vmul.f32 0.5, %v245_v41  ;;  %v621_v63 = vmul.f32 0.7978846, %v237_v27  ;;  %v813_v3 = vmul.f32 %v237_v27, %v237_v27 }
 0x186   : > { %v2146_v9 = vpack.c.bf16 %v1962_v52, %v1954_v13  ;;  %v1757_v7 = vadd.f32 1.0, %v4591_v6  ;;  %4600 = vtanh.f32 %v1398_v57  ;;  %v1202_v54 = vadd.f32 1.0, %v1010_v51  ;;  %v258_v57 = vld [vmem:[%s5138_s30 + $0x138] sm:$0xff] }
 0x187   : > { %v4593_v25 = vpop.eup %4592  ;;  %v1210_v20 = vadd.f32 1.0, %v1018_v33  ;;  %v629_v1 = vmul.f32 0.7978846, %v245_v41  ;;  %v821_v34 = vmul.f32 %v245_v41, %v245_v41  ;;  %v1005_v14 = vmul.f32 0.044715, %v813_v3  ;;  %v266_v33 = vld [vmem:[%s5138_s30 + $0x178] sm:$0xff] }
 0x188   : > { %3506 = vmatprep.mubr.bf16.mxu0 %v2146_v9  ;;  %v1765_v18 = vadd.f32 1.0, %v4593_v25  ;;  %v1949_v32 = vmul.f32 %v1757_v7, %v5540_v35  ;;  %v1394_v21 = vmul.f32 %v1202_v54, %v626_v42  ;;  %v5581_v55 = vmul.f32 0.5, %v241_v0 }
 0x189   : > { %v1402_v17 = vmul.f32 %v1210_v20, %v634_v56  ;;  %v1013_v15 = vmul.f32 0.044715, %v821_v34  ;;  %v1197_v44 = vadd.f32 1.0, %v1005_v14  ;;  %v5583_v16 = vmul.f32 0.5, %v249_v12 }
 0x18a   : > { %v4595_v28 = vpop.eup %4594  ;;  %v1957_v58 = vmul.f32 %v1765_v18, %v5544_v39  ;;  %4602 = vtanh.f32 %v1394_v21  ;;  %v625_v11 = vmul.f32 0.7978846, %v241_v0  ;;  %v817_v4 = vmul.f32 %v241_v0, %v241_v0  ;;  %v253_v21 = vld [vmem:[%s5138_s30 + $0x110] sm:$0xff] }
 0x18b   : > { %v4597_v22 = vpop.eup %4596  ;;  %v1761_v29 = vadd.f32 1.0, %v4595_v28  ;;  %4604 = vtanh.f32 %v1402_v17  ;;  %v1205_v35 = vadd.f32 1.0, %v1013_v15  ;;  %v1389_v43 = vmul.f32 %v1197_v44, %v621_v63 }
 0x18c   : > { %v2141_v23 = vpack.c.bf16 %v1957_v58, %v1949_v32  ;;  %v1769_v60 = vadd.f32 1.0, %v4597_v22  ;;  %v825_v24 = vmul.f32 %v249_v12, %v249_v12  ;;  %v1009_v62 = vmul.f32 0.044715, %v817_v4 }
 0x18d   : > { %v1953_v46 = vmul.f32 %v1761_v29, %v5550_v59  ;;  %v1397_v53 = vmul.f32 %v1205_v35, %v629_v1  ;;  %4606 = vtanh.f32 %v1389_v43  ;;  %v633_v37 = vmul.f32 0.7978846, %v249_v12  ;;  %v261_v43 = vld [vmem:[%s5138_s30 + $0x150] sm:$0xff] }
 0x18e   : > { %3201 = vmatmul.mubr.bf16.vlgmr.msra.gmra.mrb[0].mxu1 %v2141_v23  ;;  %v1961_v39 = vmul.f32 %v1769_v60, %v5555_v10  ;;  %v1017_v42 = vmul.f32 0.044715, %v825_v24  ;;  %v1201_v47 = vadd.f32 1.0, %v1009_v62  ;;  %v5590_v30 = vmul.f32 0.5, %v254_v19 }
 0x18f   : > { %v4599_v49 = vpop.eup %4598  ;;  %4608 = vtanh.f32 %v1397_v53  ;;  %v5592_v26 = vmul.f32 0.5, %v262_v45  ;;  %v638_v40 = vmul.f32 0.7978846, %v254_v19  ;;  %v830_v50 = vmul.f32 %v254_v19, %v254_v19 }
 0x190   : > { %v4601_v59 = vpop.eup %4600  ;;  %v2145_v36 = vpack.c.bf16 %v1961_v39, %v1953_v46  ;;  %v1774_v27 = vadd.f32 1.0, %v4599_v49  ;;  %v1209_v13 = vadd.f32 1.0, %v1017_v42  ;;  %v1393_v2 = vmul.f32 %v1201_v47, %v625_v11  ;;  %v257_v47 = vld [vmem:[%s5138_s30 + $0x130] sm:$0xff] }
 0x191   : > { %v1782_v56 = vadd.f32 1.0, %v4601_v59  ;;  %v646_v10 = vmul.f32 0.7978846, %v262_v45  ;;  %v838_v52 = vmul.f32 %v262_v45, %v262_v45  ;;  %v1022_v51 = vmul.f32 0.044715, %v830_v50  ;;  %v265_v45 = vld [vmem:[%s5138_s30 + $0x170] sm:$0xff] }
 0x192   : > { %3507 = vmatmul.mubr.bf16.vlgmr.msra.gmra.mrb[0].mxu0 %v2145_v36  ;;  %v1966_v41 = vmul.f32 %v1774_v27, %v5557_v5  ;;  %v1401_v6 = vmul.f32 %v1209_v13, %v633_v37  ;;  %4610 = vtanh.f32 %v1393_v2  ;;  %v5597_v63 = vmul.f32 0.5, %v258_v57 }
 0x193   : > { %v1974_v3 = vmul.f32 %v1782_v56, %v5563_v31  ;;  %v1030_v9 = vmul.f32 0.044715, %v838_v52  ;;  %v1214_v7 = vadd.f32 1.0, %v1022_v51  ;;  %v642_v54 = vmul.f32 0.7978846, %v258_v57 }
 0x194   : > { %v4603_v25 = vpop.eup %4602  ;;  %4612 = vtanh.f32 %v1401_v6  ;;  %v650_v20 = vmul.f32 0.7978846, %v266_v33  ;;  %v834_v1 = vmul.f32 %v258_v57, %v258_v57  ;;  %v842_v34 = vmul.f32 %v266_v33, %v266_v33  ;;  %v278_v6 = vld [vmem:[%s5138_s30 + $0x1d8] sm:$0xff] }
 0x195   : > { %v4605_v14 = vpop.eup %4604  ;;  %v2150_v0 = vpack.c.bf16 %v1974_v3, %v1966_v41  ;;  %v1778_v18 = vadd.f32 1.0, %v4603_v25  ;;  %v1222_v32 = vadd.f32 1.0, %v1030_v9  ;;  %v1406_v5 = vmul.f32 %v1214_v7, %v638_v40  ;;  %v270_v41 = vld [vmem:[%s5138_s30 + $0x198] sm:$0xff] }
 0x196   : > { %v1786_v12 = vadd.f32 1.0, %v4605_v14  ;;  %v5601_v17 = vmul.f32 0.5, %v266_v33  ;;  %v1026_v15 = vmul.f32 0.044715, %v834_v1  ;;  %v1034_v31 = vmul.f32 0.044715, %v842_v34 }
 0x197   : > { %v4607_v44 = vpop.eup %4606  ;;  %3210 = vmatprep.mubr.bf16.mxu1 %v2150_v0  ;;  %v1970_v28 = vmul.f32 %v1778_v18, %v5565_v8  ;;  %v1414_v58 = vmul.f32 %v1222_v32, %v646_v10  ;;  %4614 = vtanh.f32 %v1406_v5  ;;  %v5604_v11 = vmul.f32 0.5, %v253_v21 }
 0x198   : > { %v1978_v4 = vmul.f32 %v1786_v12, %v5568_v38  ;;  %v1773_v22 = vadd.f32 1.0, %v4607_v44  ;;  %v1218_v29 = vadd.f32 1.0, %v1026_v15  ;;  %v1226_v35 = vadd.f32 1.0, %v1034_v31 }
 0x199   : > { %v4609_v23 = vpop.eup %4608  ;;  %4616 = vtanh.f32 %v1414_v58  ;;  %v5608_v60 = vmul.f32 0.5, %v261_v43  ;;  %v637_v24 = vmul.f32 0.7978846, %v253_v21  ;;  %v829_v62 = vmul.f32 %v253_v21, %v253_v21  ;;  %v282_v58 = vld [vmem:[%s5138_s30 + $0x1f8] sm:$0xff] }
 0x19a   : > { %v2154_v19 = vpack.c.bf16 %v1978_v4, %v1970_v28  ;;  %v1781_v8 = vadd.f32 1.0, %v4609_v23  ;;  %v1965_v46 = vmul.f32 %v1773_v22, %v5574_v48  ;;  %v1410_v53 = vmul.f32 %v1218_v29, %v642_v54 }
 0x19b   : > { %v1418_v37 = vmul.f32 %v1226_v35, %v650_v20  ;;  %v645_v39 = vmul.f32 0.7978846, %v261_v43  ;;  %v837_v38 = vmul.f32 %v261_v43, %v261_v43  ;;  %v1021_v42 = vmul.f32 0.044715, %v829_v62 }
 0x19c   : > { %v4611_v49 = vpop.eup %4610  ;;  %3516 = vmatprep.mubr.bf16.mxu0 %v2154_v19  ;;  %v1973_v40 = vmul.f32 %v1781_v8, %v5576_v61  ;;  %4618 = vtanh.f32 %v1410_v53  ;;  %v5614_v50 = vmul.f32 0.5, %v257_v47  ;;  %v641_v59 = vmul.f32 0.7978846, %v257_v47 }
 0x19d   : > { %v1777_v36 = vadd.f32 1.0, %v4611_v49  ;;  %4620 = vtanh.f32 %v1418_v37  ;;  %v1029_v48 = vmul.f32 0.044715, %v837_v38  ;;  %v1213_v27 = vadd.f32 1.0, %v1021_v42  ;;  %v269_v42 = vld [vmem:[%s5138_s30 + $0x190] sm:$0xff] }
 0x19e   : > { %v4613_v13 = vpop.eup %4612  ;;  %v2149_v2 = vpack.c.bf16 %v1973_v40, %v1965_v46  ;;  %v649_v57 = vmul.f32 0.7978846, %v265_v45  ;;  %v833_v56 = vmul.f32 %v257_v47, %v257_v47  ;;  %v841_v10 = vmul.f32 %v265_v45, %v265_v45 }
 0x19f   : > { %v1785_v52 = vadd.f32 1.0, %v4613_v13  ;;  %v1969_v51 = vmul.f32 %v1777_v36, %v5581_v55  ;;  %v1221_v33 = vadd.f32 1.0, %v1029_v48  ;;  %v1405_v61 = vmul.f32 %v1213_v27, %v637_v24  ;;  %v277_v48 = vld [vmem:[%s5138_s30 + $0x1d0] sm:$0xff] }
 0x1a0   : > { %3211 = vmatmul.mubr.bf16.gmra.mrb[4].mxu1 %v2149_v2  ;;  %v5619_v3 = vmul.f32 0.5, %v265_v45  ;;  %v1025_v9 = vmul.f32 0.044715, %v833_v56  ;;  %v1033_v7 = vmul.f32 0.044715, %v841_v10  ;;  %v5621_v54 = vmul.f32 0.5, %v270_v41 }
 0x1a1   : > { %v4615_v25 = vpop.eup %4614  ;;  %v1977_v20 = vmul.f32 %v1785_v52, %v5583_v16  ;;  %v1413_v1 = vmul.f32 %v1221_v33, %v645_v39  ;;  %4622 = vtanh.f32 %v1405_v61  ;;  %v654_v34 = vmul.f32 0.7978846, %v270_v41  ;;  %v274_v16 = vld [vmem:[%s5138_s30 + $0x1b8] sm:$0xff] }
 0x1a2   : > { %v1790_v55 = vadd.f32 1.0, %v4615_v25  ;;  %v1217_v14 = vadd.f32 1.0, %v1025_v9  ;;  %v1225_v0 = vadd.f32 1.0, %v1033_v7  ;;  %v662_v18 = vmul.f32 0.7978846, %v278_v6 }
 0x1a3   : > { %v4617_v32 = vpop.eup %4616  ;;  %v2153_v5 = vpack.c.bf16 %v1977_v20, %v1969_v51  ;;  %4624 = vtanh.f32 %v1413_v1  ;;  %v846_v21 = vmul.f32 %v270_v41, %v270_v41  ;;  %v854_v12 = vmul.f32 %v278_v6, %v278_v6  ;;  %v281_v20 = vld [vmem:[%s5138_s30 + $0x1f0] sm:$0xff] }
 0x1a4   : > { %v1798_v15 = vadd.f32 1.0, %v4617_v32  ;;  %v1982_v31 = vmul.f32 %v1790_v55, %v5590_v30  ;;  %v1409_v44 = vmul.f32 %v1217_v14, %v641_v59  ;;  %v1417_v28 = vmul.f32 %v1225_v0, %v649_v57 }
 0x1a5   : > { %3517 = vmatmul.mubr.bf16.gmra.mrb[4].mxu0 %v2153_v5  ;;  %v5627_v4 = vmul.f32 0.5, %v278_v6  ;;  %v1038_v22 = vmul.f32 0.044715, %v846_v21  ;;  %v1046_v29 = vmul.f32 0.044715, %v854_v12  ;;  %v5629_v35 = vmul.f32 0.5, %v274_v16 }
 0x1a6   : > { %v4619_v43 = vpop.eup %4618  ;;  %v1990_v23 = vmul.f32 %v1798_v15, %v5592_v26  ;;  %4626 = vtanh.f32 %v1409_v44  ;;  %v5632_v24 = vmul.f32 0.5, %v282_v58  ;;  %v658_v62 = vmul.f32 0.7978846, %v274_v16  ;;  %v273_v6 = vld [vmem:[%s5138_s30 + $0x1b0] sm:$0xff] }
 0x1a7   : > { %v4621_v30 = vpop.eup %4620  ;;  %v1794_v19 = vadd.f32 1.0, %v4619_v43  ;;  %4628 = vtanh.f32 %v1417_v28  ;;  %v1230_v8 = vadd.f32 1.0, %v1038_v22  ;;  %v1238_v46 = vadd.f32 1.0, %v1046_v29  ;;  %v286_v22 = vld [vmem:[%s5138_s30 + $0x218] sm:$0xff] }
 0x1a8   : > { %v2158_v53 = vpack.c.bf16 %v1990_v23, %v1982_v31  ;;  %v1802_v37 = vadd.f32 1.0, %v4621_v30  ;;  %v850_v39 = vmul.f32 %v274_v16, %v274_v16  ;;  %v858_v38 = vmul.f32 %v282_v58, %v282_v58 }
 0x1a9   : > { %v1986_v47 = vmul.f32 %v1794_v19, %v5597_v63  ;;  %v1422_v45 = vmul.f32 %v1230_v8, %v654_v34  ;;  %v1430_v49 = vmul.f32 %v1238_v46, %v662_v18  ;;  %v666_v26 = vmul.f32 0.7978846, %v282_v58  ;;  %v294_v19 = vld [vmem:[%s5138_s30 + $0x258] sm:$0xff] }
 0x1aa   : > { %3220 = vmatprep.mubr.bf16.mxu1 %v2158_v53  ;;  %v1994_v40 = vmul.f32 %v1802_v37, %v5601_v17  ;;  %v1042_v59 = vmul.f32 0.044715, %v850_v39  ;;  %v1050_v36 = vmul.f32 0.044715, %v858_v38  ;;  %v5638_v27 = vmul.f32 0.5, %v269_v42 }
 0x1ab   : > { %v4623_v13 = vpop.eup %4622  ;;  %4630 = vtanh.f32 %v1422_v45  ;;  %v5640_v2 = vmul.f32 0.5, %v277_v48  ;;  %v653_v57 = vmul.f32 0.7978846, %v269_v42  ;;  %v845_v56 = vmul.f32 %v269_v42, %v269_v42 }
 0x1ac   : > { %v2162_v63 = vpack.c.bf16 %v1994_v40, %v1986_v47  ;;  %v1789_v10 = vadd.f32 1.0, %v4623_v13  ;;  %4632 = vtanh.f32 %v1430_v49  ;;  %v1234_v52 = vadd.f32 1.0, %v1042_v59  ;;  %v290_v49 = vld [vmem:[%s5138_s30 + $0x238] sm:$0xff] }
 0x1ad   : > { %v4625_v51 = vpop.eup %4624  ;;  %v1242_v33 = vadd.f32 1.0, %v1050_v36  ;;  %v661_v17 = vmul.f32 0.7978846, %v277_v48  ;;  %v853_v61 = vmul.f32 %v277_v48, %v277_v48  ;;  %v1037_v41 = vmul.f32 0.044715, %v845_v56  ;;  %v298_v36 = vld [vmem:[%s5138_s30 + $0x278] sm:$0xff] }
 0x1ae   : > { %3526 = vmatprep.mubr.bf16.mxu0 %v2162_v63  ;;  %v1797_v9 = vadd.f32 1.0, %v4625_v51  ;;  %v1981_v7 = vmul.f32 %v1789_v10, %v5604_v11  ;;  %v1426_v25 = vmul.f32 %v1234_v52, %v658_v62  ;;  %v5645_v1 = vmul.f32 0.5, %v273_v6 }
 0x1af   : > { %v1434_v34 = vmul.f32 %v1242_v33, %v666_v26  ;;  %v1045_v55 = vmul.f32 0.044715, %v853_v61  ;;  %v1229_v14 = vadd.f32 1.0, %v1037_v41  ;;  %v5647_v0 = vmul.f32 0.5, %v281_v20 }
 0x1b0   : > { %v4627_v18 = vpop.eup %4626  ;;  %v1989_v32 = vmul.f32 %v1797_v9, %v5608_v60  ;;  %4634 = vtanh.f32 %v1426_v25  ;;  %v657_v5 = vmul.f32 0.7978846, %v273_v6  ;;  %v849_v21 = vmul.f32 %v273_v6, %v273_v6  ;;  %v285_v25 = vld [vmem:[%s5138_s30 + $0x210] sm:$0xff] }
 0x1b1   : > { %v4629_v12 = vpop.eup %4628  ;;  %v1793_v15 = vadd.f32 1.0, %v4627_v18  ;;  %4636 = vtanh.f32 %v1434_v34  ;;  %v1237_v11 = vadd.f32 1.0, %v1045_v55  ;;  %v1421_v31 = vmul.f32 %v1229_v14, %v653_v57 }
 0x1b2   : > { %v2157_v44 = vpack.c.bf16 %v1989_v32, %v1981_v7  ;;  %v1801_v28 = vadd.f32 1.0, %v4629_v12  ;;  %v857_v16 = vmul.f32 %v281_v20, %v281_v20  ;;  %v1041_v58 = vmul.f32 0.044715, %v849_v21 }
 0x1b3   : > { %v1985_v29 = vmul.f32 %v1793_v15, %v5614_v50  ;;  %v1429_v43 = vmul.f32 %v1237_v11, %v661_v17  ;;  %4638 = vtanh.f32 %v1421_v31  ;;  %v665_v23 = vmul.f32 0.7978846, %v281_v20  ;;  %v293_v31 = vld [vmem:[%s5138_s30 + $0x250] sm:$0xff] }
 0x1b4   : > { %3221 = vmatmul.mubr.bf16.gmra.mrb[8].mxu1 %v2157_v44  ;;  %v1993_v60 = vmul.f32 %v1801_v28, %v5619_v3  ;;  %v1049_v62 = vmul.f32 0.044715, %v857_v16  ;;  %v1233_v30 = vadd.f32 1.0, %v1041_v58  ;;  %v5654_v8 = vmul.f32 0.5, %v286_v22 }
 0x1b5   : > { %v4631_v46 = vpop.eup %4630  ;;  %4640 = vtanh.f32 %v1429_v43  ;;  %v5656_v53 = vmul.f32 0.5, %v294_v19  ;;  %v670_v37 = vmul.f32 0.7978846, %v286_v22  ;;  %v862_v39 = vmul.f32 %v286_v22, %v286_v22 }
 0x1b6   : > { %v4633_v50 = vpop.eup %4632  ;;  %v2161_v38 = vpack.c.bf16 %v1993_v60, %v1985_v29  ;;  %v1806_v42 = vadd.f32 1.0, %v4631_v46  ;;  %v1241_v47 = vadd.f32 1.0, %v1049_v62  ;;  %v1425_v45 = vmul.f32 %v1233_v30, %v657_v5  ;;  %v289_v30 = vld [vmem:[%s5138_s30 + $0x230] sm:$0xff] }
 0x1b7   : > { %v1814_v26 = vadd.f32 1.0, %v4633_v50  ;;  %v678_v3 = vmul.f32 0.7978846, %v294_v19  ;;  %v870_v40 = vmul.f32 %v294_v19, %v294_v19  ;;  %v1054_v59 = vmul.f32 0.044715, %v862_v39  ;;  %v297_v19 = vld [vmem:[%s5138_s30 + $0x270] sm:$0xff] }
 0x1b8   : > { %3527 = vmatmul.mubr.bf16.gmra.mrb[8].mxu0 %v2161_v38  ;;  %v1998_v48 = vmul.f32 %v1806_v42, %v5621_v54  ;;  %v1433_v13 = vmul.f32 %v1241_v47, %v665_v23  ;;  %4642 = vtanh.f32 %v1425_v45  ;;  %v5661_v57 = vmul.f32 0.5, %v290_v49 }
 0x1b9   : > { %v2006_v56 = vmul.f32 %v1814_v26, %v5627_v4  ;;  %v1062_v63 = vmul.f32 0.044715, %v870_v40  ;;  %v1246_v10 = vadd.f32 1.0, %v1054_v59  ;;  %v674_v52 = vmul.f32 0.7978846, %v290_v49 }
 0x1ba   : > { %v4635_v51 = vpop.eup %4634  ;;  %4644 = vtanh.f32 %v1433_v13  ;;  %v682_v33 = vmul.f32 0.7978846, %v298_v36  ;;  %v866_v17 = vmul.f32 %v290_v49, %v290_v49  ;;  %v874_v61 = vmul.f32 %v298_v36, %v298_v36  ;;  %v310_v13 = vld [vmem:[%s5138_s30 + $0x2d8] sm:$0xff] }
 0x1bb   : > { %v4637_v41 = vpop.eup %4636  ;;  %v2166_v6 = vpack.c.bf16 %v2006_v56, %v1998_v48  ;;  %v1810_v9 = vadd.f32 1.0, %v4635_v51  ;;  %v1254_v7 = vadd.f32 1.0, %v1062_v63  ;;  %v1438_v54 = vmul.f32 %v1246_v10, %v670_v37  ;;  %v302_v48 = vld [vmem:[%s5138_s30 + $0x298] sm:$0xff] }
 0x1bc   : > { %v1818_v20 = vadd.f32 1.0, %v4637_v41  ;;  %v5665_v34 = vmul.f32 0.5, %v298_v36  ;;  %v1058_v55 = vmul.f32 0.044715, %v866_v17  ;;  %v1066_v4 = vmul.f32 0.044715, %v874_v61 }
 0x1bd   : > { %v4639_v14 = vpop.eup %4638  ;;  %3230 = vmatprep.mubr.bf16.mxu1 %v2166_v6  ;;  %v2002_v18 = vmul.f32 %v1810_v9, %v5629_v35  ;;  %v1446_v32 = vmul.f32 %v1254_v7, %v678_v3  ;;  %4646 = vtanh.f32 %v1438_v54  ;;  %v5668_v5 = vmul.f32 0.5, %v285_v25 }
 0x1be   : > { %v2010_v21 = vmul.f32 %v1818_v20, %v5632_v24  ;;  %v1805_v12 = vadd.f32 1.0, %v4639_v14  ;;  %v1250_v15 = vadd.f32 1.0, %v1058_v55  ;;  %v1258_v11 = vadd.f32 1.0, %v1066_v4  ;;  %v306_v14 = vld [vmem:[%s5138_s30 + $0x2b8] sm:$0xff] }
 0x1bf   : > { %v4641_v44 = vpop.eup %4640  ;;  %4648 = vtanh.f32 %v1446_v32  ;;  %v5672_v28 = vmul.f32 0.5, %v293_v31  ;;  %v669_v16 = vmul.f32 0.7978846, %v285_v25  ;;  %v861_v58 = vmul.f32 %v285_v25, %v285_v25 }
 0x1c0   : > { %v2170_v22 = vpack.c.bf16 %v2010_v21, %v2002_v18  ;;  %v1813_v35 = vadd.f32 1.0, %v4641_v44  ;;  %v1997_v29 = vmul.f32 %v1805_v12, %v5638_v27  ;;  %v1442_v43 = vmul.f32 %v1250_v15, %v674_v52  ;;  %v314_v18 = vld [vmem:[%s5138_s30 + $0x2f8] sm:$0xff] }
 0x1c1   : > { %v1450_v23 = vmul.f32 %v1258_v11, %v682_v33  ;;  %v677_v60 = vmul.f32 0.7978846, %v293_v31  ;;  %v869_v24 = vmul.f32 %v293_v31, %v293_v31  ;;  %v1053_v62 = vmul.f32 0.044715, %v861_v58 }
 0x1c2   : > { %v4643_v46 = vpop.eup %4642  ;;  %3536 = vmatprep.mubr.bf16.mxu0 %v2170_v22  ;;  %v2005_v37 = vmul.f32 %v1813_v35, %v5640_v2  ;;  %4650 = vtanh.f32 %v1442_v43  ;;  %v5678_v39 = vmul.f32 0.5, %v289_v30  ;;  %v5680_v50 = vmul.f32 0.5, %v297_v19 }
 0x1c3   : > { %v1809_v38 = vadd.f32 1.0, %v4643_v46  ;;  %4652 = vtanh.f32 %v1450_v23  ;;  %v1061_v27 = vmul.f32 0.044715, %v869_v24  ;;  %v1245_v42 = vadd.f32 1.0, %v1053_v62 }
 0x1c4   : > { %v4645_v47 = vpop.eup %4644  ;;  %v2165_v45 = vpack.c.bf16 %v2005_v37, %v1997_v29  ;;  %v673_v49 = vmul.f32 0.7978846, %v289_v30  ;;  %v865_v26 = vmul.f32 %v289_v30, %v289_v30  ;;  %v873_v3 = vmul.f32 %v297_v19, %v297_v19 }
 0x1c5   : > { %v1817_v40 = vadd.f32 1.0, %v4645_v47  ;;  %v2001_v59 = vmul.f32 %v1809_v38, %v5645_v1  ;;  %v1253_v2 = vadd.f32 1.0, %v1061_v27  ;;  %v1437_v36 = vmul.f32 %v1245_v42, %v669_v16 }
 0x1c6   : > { %3231 = vmatmul.mubr.bf16.gmra.mrb[12].mxu1 %v2165_v45  ;;  %v681_v56 = vmul.f32 0.7978846, %v297_v19  ;;  %v1057_v63 = vmul.f32 0.044715, %v865_v26  ;;  %v1065_v10 = vmul.f32 0.044715, %v873_v3  ;;  %v878_v54 = vmul.f32 %v302_v48, %v302_v48 }
 0x1c7   : > { %v4647_v52 = vpop.eup %4646  ;;  %v2009_v51 = vmul.f32 %v1817_v40, %v5647_v0  ;;  %v1445_v33 = vmul.f32 %v1253_v2, %v677_v60  ;;  %4654 = vtanh.f32 %v1437_v36  ;;  %v5686_v17 = vmul.f32 0.5, %v302_v48  ;;  %v301_v60 = vld [vmem:[%s5138_s30 + $0x290] sm:$0xff] }
 0x1c8   : > { %v1822_v61 = vadd.f32 1.0, %v4647_v52  ;;  %v1249_v41 = vadd.f32 1.0, %v1057_v63  ;;  %v1257_v1 = vadd.f32 1.0, %v1065_v10  ;;  %v686_v6 = vmul.f32 0.7978846, %v302_v48  ;;  %v309_v19 = vld [vmem:[%s5138_s30 + $0x2d0] sm:$0xff] }
 0x1c9   : > { %v4649_v9 = vpop.eup %4648  ;;  %v2169_v7 = vpack.c.bf16 %v2009_v51, %v2001_v59  ;;  %4656 = vtanh.f32 %v1445_v33  ;;  %v886_v25 = vmul.f32 %v310_v13, %v310_v13  ;;  %v694_v32 = vmul.f32 0.7978846, %v310_v13  ;;  %v305_v48 = vld [vmem:[%s5138_s30 + $0x2b0] sm:$0xff] }
 0x1ca   : > { %v1830_v20 = vadd.f32 1.0, %v4649_v9  ;;  %v2014_v55 = vmul.f32 %v1822_v61, %v5654_v8  ;;  %v1441_v4 = vmul.f32 %v1249_v41, %v673_v49  ;;  %v1449_v0 = vmul.f32 %v1257_v1, %v681_v56  ;;  %v313_v41 = vld [vmem:[%s5138_s30 + $0x2f0] sm:$0xff] }
 0x1cb   : > { %3537 = vmatmul.mubr.bf16.gmra.mrb[12].mxu0 %v2169_v7  ;;  %v1070_v21 = vmul.f32 0.044715, %v878_v54  ;;  %v1078_v12 = vmul.f32 0.044715, %v886_v25  ;;  %v5692_v31 = vmul.f32 0.5, %v310_v13  ;;  %v5694_v44 = vmul.f32 0.5, %v306_v14 }
 0x1cc   : > { %v4651_v15 = vpop.eup %4650  ;;  %v2022_v11 = vmul.f32 %v1830_v20, %v5656_v53  ;;  %4658 = vtanh.f32 %v1441_v4  ;;  %v882_v43 = vmul.f32 %v306_v14, %v306_v14  ;;  %v890_v23 = vmul.f32 %v314_v18, %v314_v18 }
 0x1cd   : > { %v4653_v16 = vpop.eup %4652  ;;  %v1826_v8 = vadd.f32 1.0, %v4651_v15  ;;  %4660 = vtanh.f32 %v1449_v0  ;;  %v1262_v58 = vadd.f32 1.0, %v1070_v21  ;;  %v1270_v22 = vadd.f32 1.0, %v1078_v12 }
 0x1ce   : > { %v2174_v35 = vpack.c.bf16 %v2022_v11, %v2014_v55  ;;  %v1834_v29 = vadd.f32 1.0, %v4653_v16  ;;  %v5698_v30 = vmul.f32 0.5, %v314_v18  ;;  %v690_v37 = vmul.f32 0.7978846, %v306_v14 }
 0x1cf   : > { %v2018_v24 = vmul.f32 %v1826_v8, %v5661_v57  ;;  %v1454_v62 = vmul.f32 %v1262_v58, %v686_v6  ;;  %v1462_v53 = vmul.f32 %v1270_v22, %v694_v32  ;;  %v1074_v38 = vmul.f32 0.044715, %v882_v43  ;;  %v326_v8 = vld [vmem:[%s5138_s30 + $0x358] sm:$0xff] }
 0x1d0   : > { %3240 = vmatprep.mubr.bf16.mxu1 %v2174_v35  ;;  %v2026_v46 = vmul.f32 %v1834_v29, %v5665_v34  ;;  %v1082_v27 = vmul.f32 0.044715, %v890_v23  ;;  %v698_v47 = vmul.f32 0.7978846, %v314_v18  ;;  %v5702_v45 = vmul.f32 0.5, %v301_v60  ;;  %v318_v18 = vld [vmem:[%s5138_s30 + $0x318] sm:$0xff] }
 0x1d1   : > { %v4655_v42 = vpop.eup %4654  ;;  %4662 = vtanh.f32 %v1454_v62  ;;  %v877_v49 = vmul.f32 %v301_v60, %v301_v60  ;;  %v1266_v3 = vadd.f32 1.0, %v1074_v38  ;;  %v685_v2 = vmul.f32 0.7978846, %v301_v60  ;;  %v322_v62 = vld [vmem:[%s5138_s30 + $0x338] sm:$0xff] }
 0x1d2   : > { %v2178_v26 = vpack.c.bf16 %v2026_v46, %v2018_v24  ;;  %v1821_v57 = vadd.f32 1.0, %v4655_v42  ;;  %4664 = vtanh.f32 %v1462_v53  ;;  %v1274_v59 = vadd.f32 1.0, %v1082_v27 }
 0x1d3   : > { %v4657_v40 = vpop.eup %4656  ;;  %v885_v36 = vmul.f32 %v309_v19, %v309_v19  ;;  %v1069_v34 = vmul.f32 0.044715, %v877_v49  ;;  %v1458_v63 = vmul.f32 %v1266_v3, %v690_v37  ;;  %v5706_v10 = vmul.f32 0.5, %v309_v19  ;;  %v330_v37 = vld [vmem:[%s5138_s30 + $0x378] sm:$0xff] }
 0x1d4   : > { %3546 = vmatprep.mubr.bf16.mxu0 %v2178_v26  ;;  %v1829_v13 = vadd.f32 1.0, %v4657_v40  ;;  %v2013_v56 = vmul.f32 %v1821_v57, %v5668_v5  ;;  %v1466_v52 = vmul.f32 %v1274_v59, %v698_v47  ;;  %v693_v51 = vmul.f32 0.7978846, %v309_v19 }
 0x1d5   : > { %v1077_v33 = vmul.f32 0.044715, %v885_v36  ;;  %v1261_v61 = vadd.f32 1.0, %v1069_v34  ;;  %4666 = vtanh.f32 %v1458_v63  ;;  %v689_v9 = vmul.f32 0.7978846, %v305_v48 }
 0x1d6   : > { %v4659_v1 = vpop.eup %4658  ;;  %v2021_v6 = vmul.f32 %v1829_v13, %v5672_v28  ;;  %v881_v7 = vmul.f32 %v305_v48, %v305_v48  ;;  %4668 = vtanh.f32 %v1466_v52  ;;  %v889_v0 = vmul.f32 %v313_v41, %v313_v41 }
 0x1d7   : > { %v4661_v54 = vpop.eup %4660  ;;  %v1825_v25 = vadd.f32 1.0, %v4659_v1  ;;  %v1269_v20 = vadd.f32 1.0, %v1077_v33  ;;  %v1453_v5 = vmul.f32 %v1261_v61, %v685_v2  ;;  %v5712_v12 = vmul.f32 0.5, %v305_v48 }
 0x1d8   : > { %v2173_v55 = vpack.c.bf16 %v2021_v6, %v2013_v56  ;;  %v1833_v4 = vadd.f32 1.0, %v4661_v54  ;;  %v1073_v14 = vmul.f32 0.044715, %v881_v7  ;;  %v697_v15 = vmul.f32 0.7978846, %v313_v41  ;;  %v317_v56 = vld [vmem:[%s5138_s30 + $0x310] sm:$0xff] }
 0x1d9   : > { %v2017_v32 = vmul.f32 %v1825_v25, %v5678_v39  ;;  %v1461_v21 = vmul.f32 %v1269_v20, %v693_v51  ;;  %4670 = vtanh.f32 %v1453_v5  ;;  %v1081_v11 = vmul.f32 0.044715, %v889_v0  ;;  %v325_v25 = vld [vmem:[%s5138_s30 + $0x350] sm:$0xff] }
 0x1da   : > { %3241 = vmatmul.mubr.bf16.gmra.mrb[16].mxu1 %v2173_v55  ;;  %v2025_v28 = vmul.f32 %v1833_v4, %v5680_v50  ;;  %v1265_v16 = vadd.f32 1.0, %v1073_v14  ;;  %v5716_v22 = vmul.f32 0.5, %v313_v41  ;;  %v5718_v35 = vmul.f32 0.5, %v318_v18 }
 0x1db   : > { %v4663_v58 = vpop.eup %4662  ;;  %4672 = vtanh.f32 %v1461_v21  ;;  %v894_v39 = vmul.f32 %v318_v18, %v318_v18  ;;  %v1273_v60 = vadd.f32 1.0, %v1081_v11  ;;  %v702_v50 = vmul.f32 0.7978846, %v318_v18  ;;  %v329_v11 = vld [vmem:[%s5138_s30 + $0x370] sm:$0xff] }
 0x1dc   : > { %v4665_v29 = vpop.eup %4664  ;;  %v2177_v43 = vpack.c.bf16 %v2025_v28, %v2017_v32  ;;  %v1838_v23 = vadd.f32 1.0, %v4663_v58  ;;  %v1457_v24 = vmul.f32 %v1265_v16, %v689_v9  ;;  %v902_v19 = vmul.f32 %v326_v8, %v326_v8 }
 0x1dd   : > { %v1846_v53 = vadd.f32 1.0, %v4665_v29  ;;  %v1086_v46 = vmul.f32 0.044715, %v894_v39  ;;  %v1465_v27 = vmul.f32 %v1273_v60, %v697_v15  ;;  %v5723_v42 = vmul.f32 0.5, %v326_v8  ;;  %v321_v15 = vld [vmem:[%s5138_s30 + $0x330] sm:$0xff] }
 0x1de   : > { %3547 = vmatmul.mubr.bf16.gmra.mrb[16].mxu0 %v2177_v43  ;;  %v2030_v38 = vmul.f32 %v1838_v23, %v5686_v17  ;;  %4674 = vtanh.f32 %v1457_v24  ;;  %v710_v49 = vmul.f32 0.7978846, %v326_v8  ;;  %v1094_v26 = vmul.f32 0.044715, %v902_v19 }
 0x1df   : > { %v2038_v47 = vmul.f32 %v1846_v53, %v5692_v31  ;;  %v1278_v57 = vadd.f32 1.0, %v1086_v46  ;;  %v4667_v3 = vpop.eup %4666  ;;  %4676 = vtanh.f32 %v1465_v27  ;;  %v706_v40 = vmul.f32 0.7978846, %v322_v62 }
 0x1e0   : > { %v898_v59 = vmul.f32 %v322_v62, %v322_v62  ;;  %v906_v2 = vmul.f32 %v330_v37, %v330_v37  ;;  %v4669_v36 = vpop.eup %4668  ;;  %v1842_v48 = vadd.f32 1.0, %v4667_v3  ;;  %v1286_v13 = vadd.f32 1.0, %v1094_v26 }
 0x1e1   : > { %v2182_v34 = vpack.c.bf16 %v2038_v47, %v2030_v38  ;;  %v1470_v17 = vmul.f32 %v1278_v57, %v702_v50  ;;  %v1850_v63 = vadd.f32 1.0, %v4669_v36  ;;  %v5727_v52 = vmul.f32 0.5, %v322_v62  ;;  %v342_v38 = vld [vmem:[%s5138_s30 + $0x3d8] sm:$0xff] }
 0x1e2   : > { %v1090_v51 = vmul.f32 0.044715, %v898_v59  ;;  %v1098_v31 = vmul.f32 0.044715, %v906_v2  ;;  %v2034_v61 = vmul.f32 %v1842_v48, %v5694_v44  ;;  %v1478_v41 = vmul.f32 %v1286_v13, %v710_v49 }
 0x1e3   : > { %v4671_v33 = vpop.eup %4670  ;;  %3250 = vmatprep.mubr.bf16.mxu1 %v2182_v34  ;;  %4678 = vtanh.f32 %v1470_v17  ;;  %v714_v1 = vmul.f32 0.7978846, %v330_v37  ;;  %v2042_v6 = vmul.f32 %v1850_v63, %v5698_v30  ;;  %v5732_v5 = vmul.f32 0.5, %v330_v37  ;;  %v334_v37 = vld [vmem:[%s5138_s30 + $0x398] sm:$0xff] }
 0x1e4   : > { %v1837_v9 = vadd.f32 1.0, %v4671_v33  ;;  %v1282_v7 = vadd.f32 1.0, %v1090_v51  ;;  %v1290_v54 = vadd.f32 1.0, %v1098_v31  ;;  %4680 = vtanh.f32 %v1478_v41  ;;  %v338_v31 = vld [vmem:[%s5138_s30 + $0x3b8] sm:$0xff] }
 0x1e5   : > { %v4673_v20 = vpop.eup %4672  ;;  %v5734_v55 = vmul.f32 0.5, %v317_v56  ;;  %v893_v4 = vmul.f32 %v317_v56, %v317_v56  ;;  %v2186_v0 = vpack.c.bf16 %v2042_v6, %v2034_v61  ;;  %v701_v30 = vmul.f32 0.7978846, %v317_v56  ;;  %v346_v33 = vld [vmem:[%s5138_s30 + $0x3f8] sm:$0xff] }
 0x1e6   : > { %v1845_v44 = vadd.f32 1.0, %v4673_v20  ;;  %v2029_v14 = vmul.f32 %v1837_v9, %v5702_v45  ;;  %v1474_v18 = vmul.f32 %v1282_v7, %v706_v40  ;;  %v1482_v32 = vmul.f32 %v1290_v54, %v714_v1 }
 0x1e7   : > { %v901_v21 = vmul.f32 %v325_v25, %v325_v25  ;;  %v1085_v28 = vmul.f32 0.044715, %v893_v4  ;;  %3556 = vmatprep.mubr.bf16.mxu0 %v2186_v0  ;;  %v5740_v58 = vmul.f32 0.5, %v325_v25  ;;  %v709_v39 = vmul.f32 0.7978846, %v325_v25 }
 0x1e8   : > { %v4675_v16 = vpop.eup %4674  ;;  %v2037_v8 = vmul.f32 %v1845_v44, %v5706_v10  ;;  %4682 = vtanh.f32 %v1474_v18  ;;  %v705_v24 = vmul.f32 0.7978846, %v321_v15  ;;  %v897_v62 = vmul.f32 %v321_v15, %v321_v15 }
 0x1e9   : > { %v1841_v29 = vadd.f32 1.0, %v4675_v16  ;;  %4684 = vtanh.f32 %v1482_v32  ;;  %v1093_v45 = vmul.f32 0.044715, %v901_v21  ;;  %v1277_v43 = vadd.f32 1.0, %v1085_v28  ;;  %v4677_v23 = vpop.eup %4676  ;;  %v333_v32 = vld [vmem:[%s5138_s30 + $0x390] sm:$0xff] }
 0x1ea   : > { %v2181_v60 = vpack.c.bf16 %v2037_v8, %v2029_v14  ;;  %v905_v53 = vmul.f32 %v329_v11, %v329_v11  ;;  %v1849_v50 = vadd.f32 1.0, %v4677_v23  ;;  %v713_v27 = vmul.f32 0.7978846, %v329_v11 }
 0x1eb   : > { %v2033_v19 = vmul.f32 %v1841_v29, %v5712_v12  ;;  %v1285_v46 = vadd.f32 1.0, %v1093_v45  ;;  %v1469_v10 = vmul.f32 %v1277_v43, %v701_v30  ;;  %v1089_v47 = vmul.f32 0.044715, %v897_v62 }
 0x1ec   : > { %3251 = vmatmul.mubr.bf16.gmra.mrb[20].mxu1 %v2181_v60  ;;  %v1097_v49 = vmul.f32 0.044715, %v905_v53  ;;  %v2041_v57 = vmul.f32 %v1849_v50, %v5716_v22  ;;  %v5746_v40 = vmul.f32 0.5, %v321_v15  ;;  %v718_v36 = vmul.f32 0.7978846, %v334_v37  ;;  %v341_v15 = vld [vmem:[%s5138_s30 + $0x3d0] sm:$0xff] }
 0x1ed   : > { %v4679_v26 = vpop.eup %4678  ;;  %v1477_v3 = vmul.f32 %v1285_v46, %v709_v39  ;;  %4686 = vtanh.f32 %v1469_v10  ;;  %v1281_v2 = vadd.f32 1.0, %v1089_v47  ;;  %v910_v13 = vmul.f32 %v334_v37, %v334_v37  ;;  %v337_v46 = vld [vmem:[%s5138_s30 + $0x3b0] sm:$0xff] }
 0x1ee   : > { %v1854_v59 = vadd.f32 1.0, %v4679_v26  ;;  %v1289_v12 = vadd.f32 1.0, %v1097_v49  ;;  %v4681_v34 = vpop.eup %4680  ;;  %v2185_v48 = vpack.c.bf16 %v2041_v57, %v2033_v19  ;;  %v918_v17 = vmul.f32 %v342_v38, %v342_v38 }
 0x1ef   : > { %4688 = vtanh.f32 %v1477_v3  ;;  %v1862_v56 = vadd.f32 1.0, %v4681_v34  ;;  %v1473_v51 = vmul.f32 %v1281_v2, %v705_v24  ;;  %v726_v61 = vmul.f32 0.7978846, %v342_v38  ;;  %v345_v3 = vld [vmem:[%s5138_s30 + $0x3f0] sm:$0xff] }
 0x1f0   : > { %v2046_v63 = vmul.f32 %v1854_v59, %v5718_v35  ;;  %v1481_v22 = vmul.f32 %v1289_v12, %v713_v27  ;;  %3557 = vmatmul.mubr.bf16.gmra.mrb[20].mxu0 %v2185_v48  ;;  %v1102_v41 = vmul.f32 0.044715, %v910_v13  ;;  %v1110_v1 = vmul.f32 0.044715, %v918_v17 }
 0x1f1   : > { %v2054_v9 = vmul.f32 %v1862_v56, %v5723_v42  ;;  %v5752_v7 = vmul.f32 0.5, %v329_v11  ;;  %4690 = vtanh.f32 %v1473_v51  ;;  %v5754_v54 = vmul.f32 0.5, %v334_v37 }
 0x1f2   : > { %v4683_v6 = vpop.eup %4682  ;;  %4692 = vtanh.f32 %v1481_v22  ;;  %v1294_v20 = vadd.f32 1.0, %v1102_v41  ;;  %v1302_v4 = vadd.f32 1.0, %v1110_v1  ;;  %v914_v14 = vmul.f32 %v338_v31, %v338_v31  ;;  %v350_v22 = vld [vmem:[%s5138_s30 + $0x418] sm:$0xff] }
 0x1f3   : > { %v4685_v25 = vpop.eup %4684  ;;  %v1858_v35 = vadd.f32 1.0, %v4683_v6  ;;  %v2190_v0 = vpack.c.bf16 %v2054_v9, %v2046_v63  ;;  %v922_v18 = vmul.f32 %v346_v33, %v346_v33  ;;  %v5758_v21 = vmul.f32 0.5, %v342_v38  ;;  %v358_v9 = vld [vmem:[%s5138_s30 + $0x458] sm:$0xff] }
 0x1f4   : > { %v1866_v44 = vadd.f32 1.0, %v4685_v25  ;;  %v1486_v42 = vmul.f32 %v1294_v20, %v718_v36  ;;  %v1494_v28 = vmul.f32 %v1302_v4, %v726_v61  ;;  %v722_v16 = vmul.f32 0.7978846, %v338_v31 }
 0x1f5   : > { %v2050_v30 = vmul.f32 %v1858_v35, %v5727_v52  ;;  %3260 = vmatprep.mubr.bf16.mxu1 %v2190_v0  ;;  %v1106_v8 = vmul.f32 0.044715, %v914_v14  ;;  %v1114_v39 = vmul.f32 0.044715, %v922_v18  ;;  %v5762_v45 = vmul.f32 0.5, %v338_v31 }
 0x1f6   : > { %v2058_v11 = vmul.f32 %v1866_v44, %v5732_v5  ;;  %4694 = vtanh.f32 %v1486_v42  ;;  %v730_v43 = vmul.f32 0.7978846, %v346_v33  ;;  %v909_v23 = vmul.f32 %v333_v32, %v333_v32 }
 0x1f7   : > { %v4687_v29 = vpop.eup %4686  ;;  %4696 = vtanh.f32 %v1494_v28  ;;  %v1298_v24 = vadd.f32 1.0, %v1106_v8  ;;  %v1306_v53 = vadd.f32 1.0, %v1114_v39  ;;  %v717_v50 = vmul.f32 0.7978846, %v333_v32 }
 0x1f8   : > { %v2194_v60 = vpack.c.bf16 %v2058_v11, %v2050_v30  ;;  %v1853_v52 = vadd.f32 1.0, %v4687_v29  ;;  %v917_v19 = vmul.f32 %v341_v15, %v341_v15  ;;  %v1101_v5 = vmul.f32 0.044715, %v909_v23  ;;  %v362_v11 = vld [vmem:[%s5138_s30 + $0x478] sm:$0xff] }
 0x1f9   : > { %v4689_v62 = vpop.eup %4688  ;;  %v5766_v38 = vmul.f32 0.5, %v346_v33  ;;  %v1490_v27 = vmul.f32 %v1298_v24, %v722_v16  ;;  %v1498_v47 = vmul.f32 %v1306_v53, %v730_v43  ;;  %v725_v49 = vmul.f32 0.7978846, %v341_v15 }
 0x1fa   : > { %3566 = vmatprep.mubr.bf16.mxu0 %v2194_v60  ;;  %v1861_v10 = vadd.f32 1.0, %v4689_v62  ;;  %v2045_v37 = vmul.f32 %v1853_v52, %v5734_v55  ;;  %v1109_v26 = vmul.f32 0.044715, %v917_v19  ;;  %v1293_v57 = vadd.f32 1.0, %v1101_v5 }
 0x1fb   : > { %v4691_v59 = vpop.eup %4690  ;;  %4698 = vtanh.f32 %v1490_v27  ;;  %v721_v12 = vmul.f32 0.7978846, %v337_v46  ;;  %v913_v36 = vmul.f32 %v337_v46, %v337_v46  ;;  %v921_v63 = vmul.f32 %v345_v3, %v345_v3 }
 0x1fc   : > { %v2053_v2 = vmul.f32 %v1861_v10, %v5740_v58  ;;  %v4693_v34 = vpop.eup %4692  ;;  %v1857_v48 = vadd.f32 1.0, %v4691_v59  ;;  %4700 = vtanh.f32 %v1498_v47  ;;  %v1301_v13 = vadd.f32 1.0, %v1109_v26 }
 0x1fd   : > { %v1485_v55 = vmul.f32 %v1293_v57, %v717_v50  ;;  %v1865_v56 = vadd.f32 1.0, %v4693_v34  ;;  %v1105_v51 = vmul.f32 0.044715, %v913_v36  ;;  %v5772_v33 = vmul.f32 0.5, %v333_v32  ;;  %v354_v32 = vld [vmem:[%s5138_s30 + $0x438] sm:$0xff]  ;;  %v5792_v36 = vld [vmem:[%s5138_s30 + $0x450] sm:$0xff] }
 0x1fe   : > { %v2189_v17 = vpack.c.bf16 %v2053_v2, %v2045_v37  ;;  %v2049_v31 = vmul.f32 %v1857_v48, %v5746_v40  ;;  %v1493_v61 = vmul.f32 %v1301_v13, %v725_v49  ;;  %v729_v41 = vmul.f32 0.7978846, %v345_v3 }
 0x1ff   : > { %4702 = vtanh.f32 %v1485_v55  ;;  %v2057_v58 = vmul.f32 %v1865_v56, %v5752_v7  ;;  %v1113_v1 = vmul.f32 0.044715, %v921_v63  ;;  %v1297_v6 = vadd.f32 1.0, %v1105_v51 }
 0x200   : > { %3261 = vmatmul.mubr.bf16.gmra.mrb[24].mxu1 %v2189_v17  ;;  %v4695_v25 = vpop.eup %4694  ;;  %v5776_v35 = vmul.f32 0.5, %v341_v15  ;;  %4704 = vtanh.f32 %v1493_v61  ;;  %v5778_v20 = vmul.f32 0.5, %v337_v46  ;;  %v926_v40 = vmul.f32 %v350_v22, %v350_v22  ;;  %v349_v46 = vld [vmem:[%s5138_s30 + $0x410] sm:$0xff] }
 0x201   : > { %v4697_v4 = vpop.eup %4696  ;;  %v2193_v0 = vpack.c.bf16 %v2057_v58, %v2049_v31  ;;  %v1870_v44 = vadd.f32 1.0, %v4695_v25  ;;  %v1305_v14 = vadd.f32 1.0, %v1113_v1  ;;  %v1489_v18 = vmul.f32 %v1297_v6, %v721_v12  ;;  %v353_v61 = vld [vmem:[%s5138_s30 + $0x430] sm:$0xff] }
 0x202   : > { %v1878_v30 = vadd.f32 1.0, %v4697_v4  ;;  %v734_v7 = vmul.f32 0.7978846, %v350_v22  ;;  %v934_v42 = vmul.f32 %v358_v9, %v358_v9  ;;  %v1118_v28 = vmul.f32 0.044715, %v926_v40  ;;  %v5803_v58 = vld [vmem:[%s5138_s30 + $0x470] sm:$0xff] }
 0x203   : > { %3567 = vmatmul.mubr.bf16.gmra.mrb[24].mxu0 %v2193_v0  ;;  %v2062_v16 = vmul.f32 %v1870_v44, %v5754_v54  ;;  %v5783_v15 = vmul.f32 0.5, %v345_v3  ;;  %v1497_v8 = vmul.f32 %v1305_v14, %v729_v41  ;;  %4706 = vtanh.f32 %v1489_v18 }
 0x204   : > { %v2070_v39 = vmul.f32 %v1878_v30, %v5758_v21  ;;  %v742_v29 = vmul.f32 0.7978846, %v358_v9  ;;  %v1126_v43 = vmul.f32 0.044715, %v934_v42  ;;  %v1310_v23 = vadd.f32 1.0, %v1118_v28  ;;  %v366_v42 = vld [vmem:[%s5138_s30 + $0x498] sm:$0xff] }
 0x205   : > { %v4699_v60 = vpop.eup %4698  ;;  %4708 = vtanh.f32 %v1497_v8  ;;  %v738_v52 = vmul.f32 0.7978846, %v354_v32  ;;  %v930_v24 = vmul.f32 %v354_v32, %v354_v32  ;;  %v938_v62 = vmul.f32 %v362_v11, %v362_v11  ;;  %v5814_v28 = vld [vmem:[%s5138_s30 + $0x4d8] sm:$0xff] }
 0x206   : > { %v4701_v53 = vpop.eup %4700  ;;  %v2198_v50 = vpack.c.bf16 %v2070_v39, %v2062_v16  ;;  %v1874_v19 = vadd.f32 1.0, %v4699_v60  ;;  %v1318_v5 = vadd.f32 1.0, %v1126_v43  ;;  %v1502_v54 = vmul.f32 %v1310_v23, %v734_v7 }
 0x207   : > { %v1882_v10 = vadd.f32 1.0, %v4701_v53  ;;  %v5787_v37 = vmul.f32 0.5, %v350_v22  ;;  %v1122_v27 = vmul.f32 0.044715, %v930_v24  ;;  %v1130_v21 = vmul.f32 0.044715, %v938_v62 }
 0x208   : > { %3270 = vmatprep.mubr.bf16.mxu1 %v2198_v50  ;;  %v2066_v49 = vmul.f32 %v1874_v19, %v5762_v45  ;;  %v1510_v26 = vmul.f32 %v1318_v5, %v742_v29  ;;  %4710 = vtanh.f32 %v1502_v54  ;;  %v746_v57 = vmul.f32 0.7978846, %v362_v11 }
 0x209   : > { %v4703_v47 = vpop.eup %4702  ;;  %v2074_v3 = vmul.f32 %v1882_v10, %v5766_v38  ;;  %v1314_v2 = vadd.f32 1.0, %v1122_v27  ;;  %v1322_v12 = vadd.f32 1.0, %v1130_v21  ;;  %v5794_v48 = vmul.f32 0.5, %v358_v9  ;;  %v5824_v10 = vld [vmem:[%s5138_s30 + $0x4b8] sm:$0xff] }
 0x20a   : > { %v1869_v59 = vadd.f32 1.0, %v4703_v47  ;;  %v4705_v34 = vpop.eup %4704  ;;  %4712 = vtanh.f32 %v1510_v26  ;;  %v5796_v13 = vmul.f32 0.5, %v354_v32  ;;  %v925_v55 = vmul.f32 %v349_v46, %v349_v46  ;;  %v5827_v27 = vld [vmem:[%s5138_s30 + $0x4f8] sm:$0xff] }
 0x20b   : > { %v2202_v45 = vpack.c.bf16 %v2074_v3, %v2066_v49  ;;  %v1877_v17 = vadd.f32 1.0, %v4705_v34  ;;  %v1506_v63 = vmul.f32 %v1314_v2, %v738_v52  ;;  %v1514_v38 = vmul.f32 %v1322_v12, %v746_v57 }
 0x20c   : > { %v2061_v56 = vmul.f32 %v1869_v59, %v5772_v33  ;;  %v733_v51 = vmul.f32 0.7978846, %v349_v46  ;;  %v933_v22 = vmul.f32 %v5792_v36, %v5792_v36  ;;  %v1117_v31 = vmul.f32 0.044715, %v925_v55 }
 0x20d   : > { %v4707_v41 = vpop.eup %4706  ;;  %3576 = vmatprep.mubr.bf16.mxu0 %v2202_v45  ;;  %v2069_v1 = vmul.f32 %v1877_v17, %v5776_v35  ;;  %v5806_v6 = vmul.f32 0.5, %v362_v11  ;;  %4714 = vtanh.f32 %v1506_v63  ;;  %v741_v33 = vmul.f32 0.7978846, %v5792_v36  ;;  %v365_v63 = vld [vmem:[%s5138_s30 + $0x490] sm:$0xff] }
 0x20e   : > { %v1873_v9 = vadd.f32 1.0, %v4707_v41  ;;  %4716 = vtanh.f32 %v1514_v38  ;;  %v1125_v25 = vmul.f32 0.044715, %v933_v22  ;;  %v1309_v40 = vadd.f32 1.0, %v1117_v31  ;;  %v5840_v22 = vld [vmem:[%s5138_s30 + $0x4d0] sm:$0xff] }
 0x20f   : > { %v4709_v4 = vpop.eup %4708  ;;  %v2197_v0 = vpack.c.bf16 %v2069_v1, %v2061_v56  ;;  %v737_v44 = vmul.f32 0.7978846, %v353_v61  ;;  %v929_v14 = vmul.f32 %v353_v61, %v353_v61  ;;  %v937_v18 = vmul.f32 %v5803_v58, %v5803_v58 }
 0x210   : > { %v1881_v32 = vadd.f32 1.0, %v4709_v4  ;;  %v2065_v35 = vmul.f32 %v1873_v9, %v5778_v20  ;;  %v1317_v30 = vadd.f32 1.0, %v1125_v25  ;;  %v1501_v7 = vmul.f32 %v1309_v40, %v733_v51 }
 0x211   : > { %3271 = vmatmul.mubr.bf16.gmra.mrb[28].mxu1 %v2197_v0  ;;  %v745_v11 = vmul.f32 0.7978846, %v5803_v58  ;;  %v1121_v16 = vmul.f32 0.044715, %v929_v14  ;;  %v1129_v8 = vmul.f32 0.044715, %v937_v18  ;;  %v942_v50 = vmul.f32 %v366_v42, %v366_v42 }
 0x212   : > { %v4711_v39 = vpop.eup %4710  ;;  %v2073_v29 = vmul.f32 %v1881_v32, %v5783_v15  ;;  %v5818_v43 = vmul.f32 0.5, %v349_v46  ;;  %v1509_v23 = vmul.f32 %v1317_v30, %v741_v33  ;;  %4718 = vtanh.f32 %v1501_v7  ;;  %v5850_v32 = vld [vmem:[%s5138_s30 + $0x4b0] sm:$0xff] }
 0x213   : > { %v1886_v20 = vadd.f32 1.0, %v4711_v39  ;;  %v1313_v60 = vadd.f32 1.0, %v1121_v16  ;;  %v1321_v52 = vadd.f32 1.0, %v1129_v8  ;;  %v750_v24 = vmul.f32 0.7978846, %v366_v42 }
 0x214   : > { %v4713_v62 = vpop.eup %4712  ;;  %v2201_v53 = vpack.c.bf16 %v2073_v29, %v2065_v35  ;;  %4720 = vtanh.f32 %v1509_v23  ;;  %v950_v19 = vmul.f32 %v5814_v28, %v5814_v28  ;;  %v758_v21 = vmul.f32 0.7978846, %v5814_v28  ;;  %v5856_v29 = vld [vmem:[%s5138_s30 + $0x4f0] sm:$0xff] }
 0x215   : > { %v1894_v5 = vadd.f32 1.0, %v4713_v62  ;;  %v2078_v15 = vmul.f32 %v1886_v20, %v5787_v37  ;;  %v1505_v54 = vmul.f32 %v1313_v60, %v737_v44  ;;  %v1513_v46 = vmul.f32 %v1321_v52, %v745_v11 }
 0x216   : > { %3577 = vmatmul.mubr.bf16.gmra.mrb[28].mxu0 %v2201_v53  ;;  %v1134_v47 = vmul.f32 0.044715, %v942_v50  ;;  %v1142_v49 = vmul.f32 0.044715, %v950_v19  ;;  %v549_v3 = vmul.f32 0.5, %v5792_v36  ;;  %v545_v59 = vmul.f32 0.5, %v353_v61 }
 0x217   : > { %v4715_v26 = vpop.eup %4714  ;;  %v2086_v57 = vmul.f32 %v1894_v5, %v5794_v48  ;;  %4722 = vtanh.f32 %v1505_v54  ;;  %v946_v17 = vmul.f32 %v5824_v10, %v5824_v10  ;;  %v954_v56 = vmul.f32 %v5827_v27, %v5827_v27 }
 0x218   : > { %v4717_v37 = vpop.eup %4716  ;;  %v1890_v2 = vadd.f32 1.0, %v4715_v26  ;;  %4724 = vtanh.f32 %v1513_v46  ;;  %v1326_v12 = vadd.f32 1.0, %v1134_v47  ;;  %v1334_v34 = vadd.f32 1.0, %v1142_v49 }
 0x219   : > { %v2206_v55 = vpack.c.bf16 %v2086_v57, %v2078_v15  ;;  %v1898_v45 = vadd.f32 1.0, %v4717_v37  ;;  %v553_v36 = vmul.f32 0.5, %v5803_v58  ;;  %v754_v61 = vmul.f32 0.7978846, %v5824_v10  ;;  %v5864_v15 = vld [vmem:[%s5138_s30 + $0x518] sm:$0xff] }
 0x21a   : > { %v2082_v48 = vmul.f32 %v1890_v2, %v5796_v13  ;;  %v1518_v38 = vmul.f32 %v1326_v12, %v750_v24  ;;  %v1526_v51 = vmul.f32 %v1334_v34, %v758_v21  ;;  %v1138_v41 = vmul.f32 0.044715, %v946_v17 }
 0x21b   : > { %3280 = vmatprep.mubr.bf16.mxu1 %v2206_v55  ;;  %v2090_v31 = vmul.f32 %v1898_v45, %v5806_v6  ;;  %v1146_v1 = vmul.f32 0.044715, %v954_v56  ;;  %v5844_v9 = vmul.f32 0.5, %v366_v42  ;;  %v762_v13 = vmul.f32 0.7978846, %v5827_v27  ;;  %v5875_v56 = vld [vmem:[%s5138_s30 + $0x538] sm:$0xff] }
 0x21c   : > { %v4719_v33 = vpop.eup %4718  ;;  %4726 = vtanh.f32 %v1518_v38  ;;  %v941_v25 = vmul.f32 %v365_v63, %v365_v63  ;;  %v1330_v4 = vadd.f32 1.0, %v1138_v41  ;;  %v749_v6 = vmul.f32 0.7978846, %v365_v63 }
 0x21d   : > { %v2210_v58 = vpack.c.bf16 %v2090_v31, %v2082_v48  ;;  %v1885_v40 = vadd.f32 1.0, %v4719_v33  ;;  %4728 = vtanh.f32 %v1526_v51  ;;  %v1338_v44 = vadd.f32 1.0, %v1146_v1 }
 0x21e   : > { %v4721_v0 = vpop.eup %4720  ;;  %v949_v14 = vmul.f32 %v5840_v22, %v5840_v22  ;;  %v1133_v18 = vmul.f32 0.044715, %v941_v25  ;;  %v566_v7 = vmul.f32 0.5, %v5814_v28  ;;  %v1522_v42 = vmul.f32 %v1330_v4, %v754_v61 }
 0x21f   : > { %3586 = vmatprep.mubr.bf16.mxu0 %v2210_v58  ;;  %v1893_v35 = vadd.f32 1.0, %v4721_v0  ;;  %v2077_v30 = vmul.f32 %v1885_v40, %v5818_v43  ;;  %v1530_v11 = vmul.f32 %v1338_v44, %v762_v13  ;;  %v757_v16 = vmul.f32 0.7978846, %v5840_v22 }
 0x220   : > { %v1141_v8 = vmul.f32 0.044715, %v949_v14  ;;  %v1325_v39 = vadd.f32 1.0, %v1133_v18  ;;  %4730 = vtanh.f32 %v1522_v42  ;;  %v753_v60 = vmul.f32 0.7978846, %v5850_v32  ;;  %v5892_v14 = vld [vmem:[%s5138_s30 + $0x510] sm:$0xff] }
 0x221   : > { %v4723_v23 = vpop.eup %4722  ;;  %v2085_v20 = vmul.f32 %v1893_v35, %v549_v3  ;;  %v945_v52 = vmul.f32 %v5850_v32, %v5850_v32  ;;  %4732 = vtanh.f32 %v1530_v11  ;;  %v953_v19 = vmul.f32 %v5856_v29, %v5856_v29  ;;  %v5869_v3 = vld [vmem:[%s5138_s30 + $0x558] sm:$0xff] }
 0x222   : > { %v4725_v43 = vpop.eup %4724  ;;  %v1889_v24 = vadd.f32 1.0, %v4723_v23  ;;  %v1333_v28 = vadd.f32 1.0, %v1141_v8  ;;  %v1517_v62 = vmul.f32 %v1325_v39, %v749_v6  ;;  %v562_v46 = vmul.f32 0.5, %v5824_v10 }
 0x223   : > { %v2205_v53 = vpack.c.bf16 %v2085_v20, %v2077_v30  ;;  %v1897_v50 = vadd.f32 1.0, %v4725_v43  ;;  %v1137_v5 = vmul.f32 0.044715, %v945_v52  ;;  %v761_v49 = vmul.f32 0.7978846, %v5856_v29  ;;  %v5897_v52 = vld [vmem:[%s5138_s30 + $0x550] sm:$0xff] }
 0x224   : > { %v2081_v54 = vmul.f32 %v1889_v24, %v545_v59  ;;  %v1525_v21 = vmul.f32 %v1333_v28, %v757_v16  ;;  %4734 = vtanh.f32 %v1517_v62  ;;  %v1145_v26 = vmul.f32 0.044715, %v953_v19 }
 0x225   : > { %3281 = vmatmul.mubr.bf16.gmra.mrb[32].mxu1 %v2205_v53  ;;  %v2089_v47 = vmul.f32 %v1897_v50, %v553_v36  ;;  %v1329_v57 = vadd.f32 1.0, %v1137_v5  ;;  %v570_v2 = vmul.f32 0.5, %v5827_v27  ;;  %v557_v12 = vmul.f32 0.5, %v365_v63  ;;  %v5881_v27 = vld [vmem:[%s5138_s30 + $0x578] sm:$0xff] }
 0x226   : > { %v4727_v37 = vpop.eup %4726  ;;  %4736 = vtanh.f32 %v1525_v21  ;;  %v958_v10 = vmul.f32 %v5864_v15, %v5864_v15  ;;  %v1337_v45 = vadd.f32 1.0, %v1145_v26  ;;  %v766_v36 = vmul.f32 0.7978846, %v5864_v15 }
 0x227   : > { %v4729_v59 = vpop.eup %4728  ;;  %v2209_v34 = vpack.c.bf16 %v2089_v47, %v2081_v54  ;;  %v1902_v55 = vadd.f32 1.0, %v4727_v37  ;;  %v1521_v17 = vmul.f32 %v1329_v57, %v753_v60  ;;  %v966_v38 = vmul.f32 %v5869_v3, %v5869_v3  ;;  %v5907_v47 = vld [vmem:[%s5138_s30 + $0x530] sm:$0xff] }
 0x228   : > { %v1910_v48 = vadd.f32 1.0, %v4729_v59  ;;  %v1150_v51 = vmul.f32 0.044715, %v958_v10  ;;  %v565_v31 = vmul.f32 0.5, %v5840_v22  ;;  %v1529_v61 = vmul.f32 %v1337_v45, %v761_v49 }
 0x229   : > { %3587 = vmatmul.mubr.bf16.gmra.mrb[32].mxu0 %v2209_v34  ;;  %v2094_v63 = vmul.f32 %v1902_v55, %v5844_v9  ;;  %4738 = vtanh.f32 %v1521_v17  ;;  %v774_v1 = vmul.f32 0.7978846, %v5869_v3  ;;  %v1158_v33 = vmul.f32 0.044715, %v966_v38  ;;  %v5920_v38 = vld [vmem:[%s5138_s30 + $0x598] sm:$0xff] }
 0x22a   : > { %v2102_v41 = vmul.f32 %v1910_v48, %v566_v7  ;;  %v1342_v13 = vadd.f32 1.0, %v1150_v51  ;;  %v4731_v25 = vpop.eup %4730  ;;  %4740 = vtanh.f32 %v1529_v61  ;;  %v770_v58 = vmul.f32 0.7978846, %v5875_v56  ;;  %v5923_v51 = vld [vmem:[%s5138_s30 + $0x5d8] sm:$0xff] }
 0x22b   : > { %v962_v40 = vmul.f32 %v5875_v56, %v5875_v56  ;;  %v970_v9 = vmul.f32 %v5881_v27, %v5881_v27  ;;  %v4733_v4 = vpop.eup %4732  ;;  %v1906_v0 = vadd.f32 1.0, %v4731_v25  ;;  %v1350_v44 = vadd.f32 1.0, %v1158_v33 }
 0x22c   : > { %v2214_v22 = vpack.c.bf16 %v2102_v41, %v2094_v63  ;;  %v1534_v6 = vmul.f32 %v1342_v13, %v766_v36  ;;  %v1914_v18 = vadd.f32 1.0, %v4733_v4  ;;  %v561_v35 = vmul.f32 0.5, %v5850_v32 }
 0x22d   : > { %v1154_v30 = vmul.f32 0.044715, %v962_v40  ;;  %v1162_v7 = vmul.f32 0.044715, %v970_v9  ;;  %v2098_v11 = vmul.f32 %v1906_v0, %v562_v46  ;;  %v1542_v16 = vmul.f32 %v1350_v44, %v774_v1 }
 0x22e   : > { %v4735_v42 = vpop.eup %4734  ;;  %3290 = vmatprep.mubr.bf16.mxu1 %v2214_v22  ;;  %4742 = vtanh.f32 %v1534_v6  ;;  %v778_v8 = vmul.f32 0.7978846, %v5881_v27  ;;  %v2106_v39 = vmul.f32 %v1914_v18, %v570_v2  ;;  %v569_v32 = vmul.f32 0.5, %v5856_v29  ;;  %v5910_v29 = vld [vmem:[%s5138_s30 + $0x570] sm:$0xff] }
 0x22f   : > { %v1901_v23 = vadd.f32 1.0, %v4735_v42  ;;  %v1346_v20 = vadd.f32 1.0, %v1154_v30  ;;  %v1354_v60 = vadd.f32 1.0, %v1162_v7  ;;  %v574_v24 = vmul.f32 0.5, %v5864_v15  ;;  %v5933_v30 = vld [vmem:[%s5138_s30 + $0x5b8] sm:$0xff] }
 0x230   : > { %v4737_v43 = vpop.eup %4736  ;;  %4744 = vtanh.f32 %v1542_v16  ;;  %v957_v28 = vmul.f32 %v5892_v14, %v5892_v14  ;;  %v2218_v62 = vpack.c.bf16 %v2106_v39, %v2098_v11  ;;  %v765_v54 = vmul.f32 0.7978846, %v5892_v14  ;;  %v5936_v7 = vld [vmem:[%s5138_s30 + $0x5f8] sm:$0xff] }
 0x231   : > { %v1909_v53 = vadd.f32 1.0, %v4737_v43  ;;  %v2093_v50 = vmul.f32 %v1901_v23, %v557_v12  ;;  %v1538_v19 = vmul.f32 %v1346_v20, %v770_v58  ;;  %v1546_v5 = vmul.f32 %v1354_v60, %v778_v8 }
 0x232   : > { %v965_v46 = vmul.f32 %v5897_v52, %v5897_v52  ;;  %v1149_v21 = vmul.f32 0.044715, %v957_v28  ;;  %3596 = vmatprep.mubr.bf16.mxu0 %v2218_v62  ;;  %v582_v26 = vmul.f32 0.5, %v5869_v3  ;;  %v773_v57 = vmul.f32 0.7978846, %v5897_v52 }
 0x233   : > { %v4739_v15 = vpop.eup %4738  ;;  %v2101_v49 = vmul.f32 %v1909_v53, %v565_v31  ;;  %4746 = vtanh.f32 %v1538_v19  ;;  %v769_v34 = vmul.f32 0.7978846, %v5907_v47  ;;  %v961_v55 = vmul.f32 %v5907_v47, %v5907_v47  ;;  %v5946_v19 = vld [vmem:[%s5138_s30 + $0x590] sm:$0xff] }
 0x234   : > { %v1905_v37 = vadd.f32 1.0, %v4739_v15  ;;  %4748 = vtanh.f32 %v1546_v5  ;;  %v1157_v2 = vmul.f32 0.044715, %v965_v46  ;;  %v1341_v12 = vadd.f32 1.0, %v1149_v21  ;;  %v4741_v10 = vpop.eup %4740  ;;  %v5950_v46 = vld [vmem:[%s5138_s30 + $0x5d0] sm:$0xff] }
 0x235   : > { %v2213_v59 = vpack.c.bf16 %v2101_v49, %v2093_v50  ;;  %v969_v45 = vmul.f32 %v5910_v29, %v5910_v29  ;;  %v1913_v3 = vadd.f32 1.0, %v4741_v10  ;;  %v777_v63 = vmul.f32 0.7978846, %v5910_v29 }
 0x236   : > { %v2097_v17 = vmul.f32 %v1905_v37, %v561_v35  ;;  %v1349_v48 = vadd.f32 1.0, %v1157_v2  ;;  %v1533_v36 = vmul.f32 %v1341_v12, %v765_v54  ;;  %v1153_v31 = vmul.f32 0.044715, %v961_v55 }
 0x237   : > { %3291 = vmatmul.mubr.bf16.gmra.mrb[36].mxu1 %v2213_v59  ;;  %v1161_v61 = vmul.f32 0.044715, %v969_v45  ;;  %v2105_v1 = vmul.f32 %v1913_v3, %v569_v32  ;;  %v578_v33 = vmul.f32 0.5, %v5875_v56  ;;  %v782_v9 = vmul.f32 0.7978846, %v5920_v38 }
 0x238   : > { %v4743_v41 = vpop.eup %4742  ;;  %v1541_v13 = vmul.f32 %v1349_v48, %v773_v57  ;;  %4750 = vtanh.f32 %v1533_v36  ;;  %v1345_v58 = vadd.f32 1.0, %v1153_v31  ;;  %v974_v0 = vmul.f32 %v5920_v38, %v5920_v38 }
 0x239   : > { %v1918_v25 = vadd.f32 1.0, %v4743_v41  ;;  %v1353_v40 = vadd.f32 1.0, %v1161_v61  ;;  %v2217_v22 = vpack.c.bf16 %v2105_v1, %v2097_v17  ;;  %v982_v44 = vmul.f32 %v5923_v51, %v5923_v51 }
 0x23a   : > { %v4745_v4 = vpop.eup %4744  ;;  %4752 = vtanh.f32 %v1541_v13  ;;  %v1537_v18 = vmul.f32 %v1345_v58, %v769_v34  ;;  %v790_v42 = vmul.f32 0.7978846, %v5923_v51  ;;  %v1166_v11 = vmul.f32 0.044715, %v974_v0  ;;  %v5966_v13 = vld [vmem:[%s5138_s30 + $0x5f0] sm:$0xff] }
 0x23b   : > { %v1926_v6 = vadd.f32 1.0, %v4745_v4  ;;  %v2110_v56 = vmul.f32 %v1918_v25, %v574_v24  ;;  %v1545_v35 = vmul.f32 %v1353_v40, %v777_v63  ;;  %3597 = vmatmul.mubr.bf16.gmra.mrb[36].mxu0 %v2217_v22  ;;  %v1174_v16 = vmul.f32 0.044715, %v982_v44 }
 0x23c   : > { %v586_v23 = vmul.f32 0.5, %v5881_v27  ;;  %v573_v20 = vmul.f32 0.5, %v5892_v14  ;;  %4754 = vtanh.f32 %v1537_v18  ;;  %v1358_v32 = vadd.f32 1.0, %v1166_v11 }
 0x23d   : > { %v4747_v8 = vpop.eup %4746  ;;  %v2118_v39 = vmul.f32 %v1926_v6, %v582_v26  ;;  %4756 = vtanh.f32 %v1545_v35  ;;  %v1366_v24 = vadd.f32 1.0, %v1174_v16  ;;  %v978_v53 = vmul.f32 %v5933_v30, %v5933_v30 }
 0x23e   : > { %v4749_v60 = vpop.eup %4748  ;;  %v1922_v43 = vadd.f32 1.0, %v4747_v8  ;;  %v986_v50 = vmul.f32 %v5936_v7, %v5936_v7  ;;  %v581_v14 = vmul.f32 0.5, %v5897_v52  ;;  %v1550_v5 = vmul.f32 %v1358_v32, %v782_v9 }
 0x23f   : > { %v2222_v28 = vpack.c.bf16 %v2118_v39, %v2110_v56  ;;  %v1930_v62 = vadd.f32 1.0, %v4749_v60  ;;  %v1558_v54 = vmul.f32 %v1366_v24, %v790_v42  ;;  %v786_v15 = vmul.f32 0.7978846, %v5933_v30 }
 0x240   : > { %v2114_v27 = vmul.f32 %v1922_v43, %v578_v33  ;;  %v1170_v49 = vmul.f32 0.044715, %v978_v53  ;;  %v1178_v26 = vmul.f32 0.044715, %v986_v50  ;;  %v577_v37 = vmul.f32 0.5, %v5907_v47  ;;  %v5961_v47 = vld [vmem:[%s5138_s30 + $0x5b0] sm:$0xff] }
 0x241   : > { %3300 = vmatprep.mubr.bf16.mxu1 %v2222_v28  ;;  %v2122_v21 = vmul.f32 %v1930_v62, %v586_v23  ;;  %4758 = vtanh.f32 %v1550_v5  ;;  %v794_v2 = vmul.f32 0.7978846, %v5936_v7  ;;  %v973_v52 = vmul.f32 %v5946_v19, %v5946_v19 }
 0x242   : > { %v4751_v57 = vpop.eup %4750  ;;  %4760 = vtanh.f32 %v1558_v54  ;;  %v1362_v59 = vadd.f32 1.0, %v1170_v49  ;;  %v1370_v55 = vadd.f32 1.0, %v1178_v26  ;;  %v781_v45 = vmul.f32 0.7978846, %v5946_v19 }
 0x243   : > { %v2226_v12 = vpack.c.bf16 %v2122_v21, %v2114_v27  ;;  %v1917_v10 = vadd.f32 1.0, %v4751_v57  ;;  %v981_v3 = vmul.f32 %v5950_v46, %v5950_v46  ;;  %v1165_v17 = vmul.f32 0.044715, %v973_v52 }
 0x244   : > { %v4753_v34 = vpop.eup %4752  ;;  %v585_v63 = vmul.f32 0.5, %v5910_v29  ;;  %v1554_v31 = vmul.f32 %v1362_v59, %v786_v15  ;;  %v1562_v61 = vmul.f32 %v1370_v55, %v794_v2  ;;  %v789_v41 = vmul.f32 0.7978846, %v5950_v46 }
 0x245   : > { %3606 = vmatprep.mubr.bf16.mxu0 %v2226_v12  ;;  %v1925_v48 = vadd.f32 1.0, %v4753_v34  ;;  %v2109_v36 = vmul.f32 %v1917_v10, %v573_v20  ;;  %v1173_v1 = vmul.f32 0.044715, %v981_v3  ;;  %v1357_v33 = vadd.f32 1.0, %v1165_v17 }
 0x246   : > { %v4755_v25 = vpop.eup %4754  ;;  %4762 = vtanh.f32 %v1554_v31  ;;  %v785_v40 = vmul.f32 0.7978846, %v5961_v47  ;;  %v977_v9 = vmul.f32 %v5961_v47, %v5961_v47  ;;  %v985_v56 = vmul.f32 %v5966_v13, %v5966_v13 }
 0x247   : > { %v2117_v58 = vmul.f32 %v1925_v48, %v581_v14  ;;  %v4757_v4 = vpop.eup %4756  ;;  %v1921_v22 = vadd.f32 1.0, %v4755_v25  ;;  %4764 = vtanh.f32 %v1562_v61  ;;  %v1365_v29 = vadd.f32 1.0, %v1173_v1 }
 0x248   : > { %v1549_v0 = vmul.f32 %v1357_v33, %v781_v45  ;;  %v1929_v6 = vadd.f32 1.0, %v4757_v4  ;;  %v1169_v18 = vmul.f32 0.044715, %v977_v9  ;;  %v590_v42 = vmul.f32 0.5, %v5920_v38 }
 0x249   : > { %v2221_v44 = vpack.c.bf16 %v2117_v58, %v2109_v36  ;;  %v2113_v35 = vmul.f32 %v1921_v22, %v577_v37  ;;  %v1557_v11 = vmul.f32 %v1365_v29, %v789_v41  ;;  %v793_v8 = vmul.f32 0.7978846, %v5966_v13 }
 0x24a   : > { %4766 = vtanh.f32 %v1549_v0  ;;  %v2121_v16 = vmul.f32 %v1929_v6, %v585_v63  ;;  %v1177_v39 = vmul.f32 0.044715, %v985_v56  ;;  %v1361_v23 = vadd.f32 1.0, %v1169_v18  ;;  %v2363_v63 = vld [vmem:[#allocation7] sm:$0x3] }
 0x24b   : > { %3301 = vmatmul.mubr.bf16.gmra.mrb[40].mxu1 %v2221_v44  ;;  %v4759_v20 = vpop.eup %4758  ;;  %v598_v60 = vmul.f32 0.5, %v5923_v51  ;;  %4768 = vtanh.f32 %v1557_v11  ;;  %v594_v14 = vmul.f32 0.5, %v5933_v30  ;;  %v602_v54 = vmul.f32 0.5, %v5936_v7 }
 0x24c   : > { %v4761_v43 = vpop.eup %4760  ;;  %v2225_v32 = vpack.c.bf16 %v2121_v16, %v2113_v35  ;;  %v1934_v24 = vadd.f32 1.0, %v4759_v20  ;;  %v1369_v28 = vadd.f32 1.0, %v1177_v39  ;;  %v1553_v62 = vmul.f32 %v1361_v23, %v785_v40 }
 0x24d   : > { %v1942_v53 = vadd.f32 1.0, %v4761_v43  ;;  %v2365_v21 = vlaneseq  ;;  %v589_v57 = vmul.f32 0.5, %v5946_v19  ;;  %v597_v12 = vmul.f32 0.5, %v5950_v46 }
 0x24e   : > { %3607 = vmatmul.mubr.bf16.gmra.mrb[40].mxu0 %v2225_v32  ;;  %v2126_v38 = vmul.f32 %v1934_v24, %v590_v42  ;;  %v1561_v50 = vmul.f32 %v1369_v28, %v793_v8  ;;  %4770 = vtanh.f32 %v1553_v62  ;;  %v593_v45 = vmul.f32 0.5, %v5961_v47 }
 0x24f   : > { %v2134_v27 = vmul.f32 %v1942_v53, %v598_v60  ;;  %v2366_v59 = vshrl.u32 %v2365_v21, 7  ;;  %v601_v19 = vmul.f32 0.5, %v5966_v13 }
 0x250   : > { %v4763_v5 = vpop.eup %4762  ;;  %4772 = vtanh.f32 %v1561_v50 }
 0x251   : > { %v4765_v51 = vpop.eup %4764  ;;  %v2230_v15 = vpack.c.bf16 %v2134_v27, %v2126_v38  ;;  %v1938_v49 = vadd.f32 1.0, %v4763_v5  ;;  %v2367_v48 = vsub.s32 0, %v2366_v59  ;;  %v2371_v31 = vsub.s32 1, %v2366_v59 }
 0x252   : > { %v1946_v26 = vadd.f32 1.0, %v4765_v51 }
 0x253   : > { %3310 = vmatprep.mubr.bf16.mxu1 %v2230_v15  ;;  %v2130_v2 = vmul.f32 %v1938_v49, %v594_v14  ;;  %v5982_v33 = vrot.slane %v2363_v63, %v2367_v48  ;;  %v5984_v58 = vrot.slane %v2363_v63, %v2371_v31 }
 0x254   : > { %v4767_v37 = vpop.eup %4766  ;;  %v2138_v52 = vmul.f32 %v1946_v26, %v602_v54 }
 0x255   : > { %v1933_v10 = vadd.f32 1.0, %v4767_v37  ;;  %v4769_v30 = vpop.eup %4768 }
 0x256   : > { %v2234_v34 = vpack.c.bf16 %v2138_v52, %v2130_v2  ;;  %v1941_v55 = vadd.f32 1.0, %v4769_v30 }
 0x257   : > { %v2125_v7 = vmul.f32 %v1933_v10, %v589_v57 }
 0x258   : > { %v4771_v3 = vpop.eup %4770  ;;  %3616 = vmatprep.mubr.bf16.mxu0 %v2234_v34  ;;  %v2133_v17 = vmul.f32 %v1941_v55, %v597_v12 }
 0x259   : > { %v1937_v36 = vadd.f32 1.0, %v4771_v3 }
 0x25a   : > { %v4773_v61 = vpop.eup %4772  ;;  %v2229_v46 = vpack.c.bf16 %v2133_v17, %v2125_v7 }
 0x25b   : > { %v1945_v41 = vadd.f32 1.0, %v4773_v61  ;;  %v2129_v1 = vmul.f32 %v1937_v36, %v593_v45 }
 0x25c   : > { %3311 = vmatmul.mubr.bf16.gmra.mrb[44].mxu1 %v2229_v46 }
 0x25d   : > { %v2137_v25 = vmul.f32 %v1945_v41, %v601_v19 }
 0x25f   : > { %v2233_v47 = vpack.c.bf16 %v2137_v25, %v2129_v1 }
 0x261   : > { %v3202_v40 = vpop.f32.mrb[0].mxu1  ;;  %3617 = vmatmul.mubr.bf16.gmra.mrb[44].mxu0 %v2233_v47 }
 0x262   : > { %v3930_v9 = vadd.f32 %v3202_v40, %v5982_v33  ;;  %v3204_v4 = vpop.f32.mrb[1].mxu1 }
 0x263   : > { %v3932_v13 = vadd.f32 %v3204_v4, %v5984_v58  ;;  %v3206_v22 = vpop.f32.mrb[2].mxu1 }
 0x264   : > { %v3934_v29 = vadd.f32 %v3206_v22, %v5982_v33  ;;  %v3208_v0 = vpop.f32.mrb[3].mxu1 }
 0x265   : > { %v3508_v44 = vpop.f32.mrb[0].mxu0  ;;  %v3936_v6 = vadd.f32 %v3208_v0, %v5984_v58 }
 0x266   : > { %v3931_v56 = vadd.f32 %v3930_v9, %v3508_v44  ;;  %v3510_v18 = vpop.f32.mrb[1].mxu0 }
 0x267   : > { %v3933_v35 = vadd.f32 %v3932_v13, %v3510_v18  ;;  %v3512_v42 = vpop.f32.mrb[2].mxu0 }
 0x268   : > { %3627 = vst [vmem:[%s5991_s20] sm:$0xff] %v3931_v56  ;;  %v3935_v11 = vadd.f32 %v3934_v29, %v3512_v42  ;;  %v3514_v16 = vpop.f32.mrb[3].mxu0 }
 0x269   : > { %3628 = vst [vmem:[%s5991_s20 + $0x8] sm:$0xff] %v3933_v35  ;;  %v3937_v8 = vadd.f32 %v3936_v6, %v3514_v16 }
 0x26a   : > { %3629 = vst [vmem:[%s5991_s20 + $0x10] sm:$0xff] %v3935_v11 }
 0x26b   : > { %3630 = vst [vmem:[%s5991_s20 + $0x18] sm:$0xff] %v3937_v8 }
 0x273   : > { %v3212_v39 = vpop.f32.mrb[4].mxu1 }
 0x274   : > { %v3214_v23 = vpop.f32.mrb[5].mxu1  ;;  %v3938_v20 = vadd.f32 %v3212_v39, %v5982_v33 }
 0x275   : > { %v3216_v60 = vpop.f32.mrb[6].mxu1  ;;  %v3940_v43 = vadd.f32 %v3214_v23, %v5984_v58 }
 0x276   : > { %v3218_v32 = vpop.f32.mrb[7].mxu1  ;;  %v3942_v24 = vadd.f32 %v3216_v60, %v5982_v33 }
 0x277   : > { %v3944_v62 = vadd.f32 %v3218_v32, %v5984_v58 }
 0x278   : > { %v3518_v28 = vpop.f32.mrb[4].mxu0 }
 0x279   : > { %v3939_v53 = vadd.f32 %v3938_v20, %v3518_v28  ;;  %v3520_v38 = vpop.f32.mrb[5].mxu0 }
 0x27a   : > { %v3941_v50 = vadd.f32 %v3940_v43, %v3520_v38  ;;  %v3522_v27 = vpop.f32.mrb[6].mxu0 }
 0x27b   : > { %3631 = vst [vmem:[%s5991_s20 + $0x20] sm:$0xff] %v3939_v53  ;;  %v3943_v14 = vadd.f32 %v3942_v24, %v3522_v27  ;;  %v3524_v5 = vpop.f32.mrb[7].mxu0 }
 0x27c   : > { %3632 = vst [vmem:[%s5991_s20 + $0x28] sm:$0xff] %v3941_v50  ;;  %v3945_v54 = vadd.f32 %v3944_v62, %v3524_v5 }
 0x27d   : > { %3633 = vst [vmem:[%s5991_s20 + $0x30] sm:$0xff] %v3943_v14 }
 0x27e   : > { %3634 = vst [vmem:[%s5991_s20 + $0x38] sm:$0xff] %v3945_v54 }
 0x287   : > { %v3222_v21 = vpop.f32.mrb[8].mxu1 }
 0x288   : > { %v3946_v51 = vadd.f32 %v3222_v21, %v5982_v33  ;;  %v3224_v15 = vpop.f32.mrb[9].mxu1 }
 0x289   : > { %v3948_v49 = vadd.f32 %v3224_v15, %v5984_v58  ;;  %v3226_v26 = vpop.f32.mrb[10].mxu1 }
 0x28a   : > { %v3950_v57 = vadd.f32 %v3226_v26, %v5982_v33  ;;  %v3228_v37 = vpop.f32.mrb[11].mxu1 }
 0x28b   : > { %v3528_v2 = vpop.f32.mrb[8].mxu0  ;;  %v3952_v52 = vadd.f32 %v3228_v37, %v5984_v58 }
 0x28c   : > { %v3947_v12 = vadd.f32 %v3946_v51, %v3528_v2  ;;  %v3530_v10 = vpop.f32.mrb[9].mxu0 }
 0x28d   : > { %v3949_v59 = vadd.f32 %v3948_v49, %v3530_v10  ;;  %v3532_v30 = vpop.f32.mrb[10].mxu0 }
 0x28e   : > { %3635 = vst [vmem:[%s5991_s20 + $0x40] sm:$0xff] %v3947_v12  ;;  %v3951_v34 = vadd.f32 %v3950_v57, %v3532_v30  ;;  %v3534_v55 = vpop.f32.mrb[11].mxu0 }
 0x28f   : > { %3636 = vst [vmem:[%s5991_s20 + $0x48] sm:$0xff] %v3949_v59  ;;  %v3953_v7 = vadd.f32 %v3952_v52, %v3534_v55 }
 0x290   : > { %3637 = vst [vmem:[%s5991_s20 + $0x50] sm:$0xff] %v3951_v34 }
 0x291   : > { %3638 = vst [vmem:[%s5991_s20 + $0x58] sm:$0xff] %v3953_v7 }
 0x299   : > { %v3232_v45 = vpop.f32.mrb[12].mxu1 }
 0x29a   : > { %v3234_v3 = vpop.f32.mrb[13].mxu1  ;;  %v3954_v17 = vadd.f32 %v3232_v45, %v5982_v33 }
 0x29b   : > { %v3236_v48 = vpop.f32.mrb[14].mxu1  ;;  %v3956_v19 = vadd.f32 %v3234_v3, %v5984_v58 }
 0x29c   : > { %v3238_v36 = vpop.f32.mrb[15].mxu1  ;;  %v3958_v63 = vadd.f32 %v3236_v48, %v5982_v33 }
 0x29d   : > { %v3960_v61 = vadd.f32 %v3238_v36, %v5984_v58 }
 0x29e   : > { %v3538_v31 = vpop.f32.mrb[12].mxu0 }
 0x29f   : > { %v3955_v46 = vadd.f32 %v3954_v17, %v3538_v31  ;;  %v3540_v41 = vpop.f32.mrb[13].mxu0 }
 0x2a0   : > { %v3957_v1 = vadd.f32 %v3956_v19, %v3540_v41  ;;  %v3542_v25 = vpop.f32.mrb[14].mxu0 }
 0x2a1   : > { %3639 = vst [vmem:[%s5991_s20 + $0x60] sm:$0xff] %v3955_v46  ;;  %v3959_v47 = vadd.f32 %v3958_v63, %v3542_v25  ;;  %v3544_v40 = vpop.f32.mrb[15].mxu0 }
 0x2a2   : > { %3640 = vst [vmem:[%s5991_s20 + $0x68] sm:$0xff] %v3957_v1  ;;  %v3961_v9 = vadd.f32 %v3960_v61, %v3544_v40 }
 0x2a3   : > { %3641 = vst [vmem:[%s5991_s20 + $0x70] sm:$0xff] %v3959_v47 }
 0x2a4   : > { %3642 = vst [vmem:[%s5991_s20 + $0x78] sm:$0xff] %v3961_v9 }
 0x2ad   : > { %v3242_v4 = vpop.f32.mrb[16].mxu1 }
 0x2ae   : > { %v3962_v13 = vadd.f32 %v3242_v4, %v5982_v33  ;;  %v3244_v22 = vpop.f32.mrb[17].mxu1 }
 0x2af   : > { %v3964_v29 = vadd.f32 %v3244_v22, %v5984_v58  ;;  %v3246_v0 = vpop.f32.mrb[18].mxu1 }
 0x2b0   : > { %v3966_v44 = vadd.f32 %v3246_v0, %v5982_v33  ;;  %v3248_v6 = vpop.f32.mrb[19].mxu1 }
 0x2b1   : > { %v3548_v56 = vpop.f32.mrb[16].mxu0  ;;  %v3968_v18 = vadd.f32 %v3248_v6, %v5984_v58 }
 0x2b2   : > { %v3963_v35 = vadd.f32 %v3962_v13, %v3548_v56  ;;  %v3550_v42 = vpop.f32.mrb[17].mxu0 }
 0x2b3   : > { %v3965_v11 = vadd.f32 %v3964_v29, %v3550_v42  ;;  %v3552_v16 = vpop.f32.mrb[18].mxu0 }
 0x2b4   : > { %3643 = vst [vmem:[%s5991_s20 + $0x80] sm:$0xff] %v3963_v35  ;;  %v3967_v8 = vadd.f32 %v3966_v44, %v3552_v16  ;;  %v3554_v39 = vpop.f32.mrb[19].mxu0 }
 0x2b5   : > { %3644 = vst [vmem:[%s5991_s20 + $0x88] sm:$0xff] %v3965_v11  ;;  %v3969_v23 = vadd.f32 %v3968_v18, %v3554_v39 }
 0x2b6   : > { %3645 = vst [vmem:[%s5991_s20 + $0x90] sm:$0xff] %v3967_v8 }
 0x2b7   : > { %3646 = vst [vmem:[%s5991_s20 + $0x98] sm:$0xff] %v3969_v23 }
 0x2bf   : > { %v3252_v20 = vpop.f32.mrb[20].mxu1 }
 0x2c0   : > { %v3254_v60 = vpop.f32.mrb[21].mxu1  ;;  %v3970_v43 = vadd.f32 %v3252_v20, %v5982_v33 }
 0x2c1   : > { %v3256_v32 = vpop.f32.mrb[22].mxu1  ;;  %v3972_v24 = vadd.f32 %v3254_v60, %v5984_v58 }
 0x2c2   : > { %v3258_v28 = vpop.f32.mrb[23].mxu1  ;;  %v3974_v62 = vadd.f32 %v3256_v32, %v5982_v33 }
 0x2c3   : > { %v3558_v53 = vpop.f32.mrb[20].mxu0  ;;  %v3976_v38 = vadd.f32 %v3258_v28, %v5984_v58 }
 0x2c4   : > { %v3971_v50 = vadd.f32 %v3970_v43, %v3558_v53  ;;  %v3560_v27 = vpop.f32.mrb[21].mxu0 }
 0x2c5   : > { %v3973_v14 = vadd.f32 %v3972_v24, %v3560_v27  ;;  %v3562_v5 = vpop.f32.mrb[22].mxu0 }
 0x2c6   : > { %3647 = vst [vmem:[%s5991_s20 + $0xa0] sm:$0xff] %v3971_v50  ;;  %v3975_v54 = vadd.f32 %v3974_v62, %v3562_v5  ;;  %v3564_v21 = vpop.f32.mrb[23].mxu0 }
 0x2c7   : > { %3648 = vst [vmem:[%s5991_s20 + $0xa8] sm:$0xff] %v3973_v14  ;;  %v3977_v51 = vadd.f32 %v3976_v38, %v3564_v21 }
 0x2c8   : > { %3649 = vst [vmem:[%s5991_s20 + $0xb0] sm:$0xff] %v3975_v54 }
 0x2c9   : > { %3650 = vst [vmem:[%s5991_s20 + $0xb8] sm:$0xff] %v3977_v51 }
 0x2d3   : > { %v3262_v15 = vpop.f32.mrb[24].mxu1 }
 0x2d4   : > { %v3978_v49 = vadd.f32 %v3262_v15, %v5982_v33  ;;  %v3264_v26 = vpop.f32.mrb[25].mxu1 }
 0x2d5   : > { %v3980_v57 = vadd.f32 %v3264_v26, %v5984_v58  ;;  %v3266_v37 = vpop.f32.mrb[26].mxu1 }
 0x2d6   : > { %v3982_v2 = vadd.f32 %v3266_v37, %v5982_v33  ;;  %v3268_v52 = vpop.f32.mrb[27].mxu1  ;;  %v3568_v12 = vpop.f32.mrb[24].mxu0 }
 0x2d7   : > { %v3984_v10 = vadd.f32 %v3268_v52, %v5984_v58  ;;  %v3979_v59 = vadd.f32 %v3978_v49, %v3568_v12  ;;  %v3570_v30 = vpop.f32.mrb[25].mxu0 }
 0x2d8   : > { %v3981_v34 = vadd.f32 %v3980_v57, %v3570_v30  ;;  %v3572_v55 = vpop.f32.mrb[26].mxu0 }
 0x2d9   : > { %3651 = vst [vmem:[%s5991_s20 + $0xc0] sm:$0xff] %v3979_v59  ;;  %v3983_v7 = vadd.f32 %v3982_v2, %v3572_v55  ;;  %v3574_v45 = vpop.f32.mrb[27].mxu0 }
 0x2da   : > { %3652 = vst [vmem:[%s5991_s20 + $0xc8] sm:$0xff] %v3981_v34  ;;  %v3985_v3 = vadd.f32 %v3984_v10, %v3574_v45 }
 0x2db   : > { %3653 = vst [vmem:[%s5991_s20 + $0xd0] sm:$0xff] %v3983_v7 }
 0x2dc   : > { %3654 = vst [vmem:[%s5991_s20 + $0xd8] sm:$0xff] %v3985_v3 }
 0x2e4   : > { %v3272_v17 = vpop.f32.mrb[28].mxu1 }
 0x2e5   : > { %v3274_v48 = vpop.f32.mrb[29].mxu1  ;;  %v3986_v19 = vadd.f32 %v3272_v17, %v5982_v33 }
 0x2e6   : > { %v3276_v36 = vpop.f32.mrb[30].mxu1  ;;  %v3988_v63 = vadd.f32 %v3274_v48, %v5984_v58 }
 0x2e7   : > { %v3278_v31 = vpop.f32.mrb[31].mxu1  ;;  %v3990_v61 = vadd.f32 %v3276_v36, %v5982_v33 }
 0x2e8   : > { %v3992_v41 = vadd.f32 %v3278_v31, %v5984_v58 }
 0x2e9   : > { %v3578_v46 = vpop.f32.mrb[28].mxu0 }
 0x2ea   : > { %v3987_v1 = vadd.f32 %v3986_v19, %v3578_v46  ;;  %v3580_v25 = vpop.f32.mrb[29].mxu0 }
 0x2eb   : > { %v3989_v47 = vadd.f32 %v3988_v63, %v3580_v25  ;;  %v3582_v40 = vpop.f32.mrb[30].mxu0 }
 0x2ec   : > { %3655 = vst [vmem:[%s5991_s20 + $0xe0] sm:$0xff] %v3987_v1  ;;  %v3991_v9 = vadd.f32 %v3990_v61, %v3582_v40  ;;  %v3584_v4 = vpop.f32.mrb[31].mxu0 }
 0x2ed   : > { %3656 = vst [vmem:[%s5991_s20 + $0xe8] sm:$0xff] %v3989_v47  ;;  %v3993_v13 = vadd.f32 %v3992_v41, %v3584_v4 }
 0x2ee   : > { %3657 = vst [vmem:[%s5991_s20 + $0xf0] sm:$0xff] %v3991_v9 }
 0x2ef   : > { %3658 = vst [vmem:[%s5991_s20 + $0xf8] sm:$0xff] %v3993_v13 }
 0x2f8   : > { %v3282_v22 = vpop.f32.mrb[32].mxu1 }
 0x2f9   : > { %v3994_v29 = vadd.f32 %v3282_v22, %v5982_v33  ;;  %v3284_v0 = vpop.f32.mrb[33].mxu1 }
 0x2fa   : > { %v3996_v44 = vadd.f32 %v3284_v0, %v5984_v58  ;;  %v3286_v6 = vpop.f32.mrb[34].mxu1 }
 0x2fb   : > { %v3998_v56 = vadd.f32 %v3286_v6, %v5982_v33  ;;  %v3288_v18 = vpop.f32.mrb[35].mxu1 }
 0x2fc   : > { %v3588_v35 = vpop.f32.mrb[32].mxu0  ;;  %v4000_v42 = vadd.f32 %v3288_v18, %v5984_v58 }
 0x2fd   : > { %v3995_v11 = vadd.f32 %v3994_v29, %v3588_v35  ;;  %v3590_v16 = vpop.f32.mrb[33].mxu0 }
 0x2fe   : > { %v3997_v8 = vadd.f32 %v3996_v44, %v3590_v16  ;;  %v3592_v39 = vpop.f32.mrb[34].mxu0 }
 0x2ff   : > { %3659 = vst [vmem:[%s5991_s20 + $0x100] sm:$0xff] %v3995_v11  ;;  %v3999_v23 = vadd.f32 %v3998_v56, %v3592_v39  ;;  %v3594_v20 = vpop.f32.mrb[35].mxu0 }
 0x300   : > { %3660 = vst [vmem:[%s5991_s20 + $0x108] sm:$0xff] %v3997_v8  ;;  %v4001_v60 = vadd.f32 %v4000_v42, %v3594_v20 }
 0x301   : > { %3661 = vst [vmem:[%s5991_s20 + $0x110] sm:$0xff] %v3999_v23 }
 0x302   : > { %3662 = vst [vmem:[%s5991_s20 + $0x118] sm:$0xff] %v4001_v60 }
 0x30a   : > { %v3292_v43 = vpop.f32.mrb[36].mxu1 }
 0x30b   : > { %v3294_v32 = vpop.f32.mrb[37].mxu1  ;;  %v4002_v24 = vadd.f32 %v3292_v43, %v5982_v33 }
 0x30c   : > { %v3296_v28 = vpop.f32.mrb[38].mxu1  ;;  %v4004_v62 = vadd.f32 %v3294_v32, %v5984_v58 }
 0x30d   : > { %v3298_v53 = vpop.f32.mrb[39].mxu1  ;;  %v4006_v38 = vadd.f32 %v3296_v28, %v5982_v33 }
 0x30e   : > { %v3598_v50 = vpop.f32.mrb[36].mxu0  ;;  %v4008_v27 = vadd.f32 %v3298_v53, %v5984_v58 }
 0x30f   : > { %v4003_v14 = vadd.f32 %v4002_v24, %v3598_v50  ;;  %v3600_v5 = vpop.f32.mrb[37].mxu0 }
 0x310   : > { %v4005_v54 = vadd.f32 %v4004_v62, %v3600_v5  ;;  %v3602_v21 = vpop.f32.mrb[38].mxu0 }
 0x311   : > { %3663 = vst [vmem:[%s5991_s20 + $0x120] sm:$0xff] %v4003_v14  ;;  %v4007_v51 = vadd.f32 %v4006_v38, %v3602_v21  ;;  %v3604_v15 = vpop.f32.mrb[39].mxu0 }
 0x312   : > { %3664 = vst [vmem:[%s5991_s20 + $0x128] sm:$0xff] %v4005_v54  ;;  %v4009_v49 = vadd.f32 %v4008_v27, %v3604_v15 }
 0x313   : > { %3665 = vst [vmem:[%s5991_s20 + $0x130] sm:$0xff] %v4007_v51 }
 0x314   : > { %3666 = vst [vmem:[%s5991_s20 + $0x138] sm:$0xff] %v4009_v49 }
 0x31e   : > { %v3302_v26 = vpop.f32.mrb[40].mxu1 }
 0x31f   : > { %v4010_v57 = vadd.f32 %v3302_v26, %v5982_v33  ;;  %v3304_v37 = vpop.f32.mrb[41].mxu1 }
 0x320   : > { %v4012_v2 = vadd.f32 %v3304_v37, %v5984_v58  ;;  %v3306_v52 = vpop.f32.mrb[42].mxu1 }
 0x321   : > { %v4014_v12 = vadd.f32 %v3306_v52, %v5982_v33  ;;  %v3308_v10 = vpop.f32.mrb[43].mxu1  ;;  %v3608_v59 = vpop.f32.mrb[40].mxu0 }
 0x322   : > { %v4016_v30 = vadd.f32 %v3308_v10, %v5984_v58  ;;  %v4011_v34 = vadd.f32 %v4010_v57, %v3608_v59  ;;  %v3610_v55 = vpop.f32.mrb[41].mxu0 }
 0x323   : > { %v4013_v7 = vadd.f32 %v4012_v2, %v3610_v55  ;;  %v3612_v45 = vpop.f32.mrb[42].mxu0 }
 0x324   : > { %3667 = vst [vmem:[%s5991_s20 + $0x140] sm:$0xff] %v4011_v34  ;;  %v4015_v3 = vadd.f32 %v4014_v12, %v3612_v45  ;;  %v3614_v17 = vpop.f32.mrb[43].mxu0 }
 0x325   : > { %3668 = vst [vmem:[%s5991_s20 + $0x148] sm:$0xff] %v4013_v7  ;;  %v4017_v48 = vadd.f32 %v4016_v30, %v3614_v17 }
 0x326   : > { %3669 = vst [vmem:[%s5991_s20 + $0x150] sm:$0xff] %v4015_v3 }
 0x327   : > { %3670 = vst [vmem:[%s5991_s20 + $0x158] sm:$0xff] %v4017_v48 }
 0x32f   : > { %v3312_v19 = vpop.f32.mrb[44].mxu1 }
 0x330   : > { %v3314_v36 = vpop.f32.mrb[45].mxu1  ;;  %v4018_v63 = vadd.f32 %v3312_v19, %v5982_v33 }
 0x331   : > { %v3316_v31 = vpop.f32.mrb[46].mxu1  ;;  %v4020_v61 = vadd.f32 %v3314_v36, %v5984_v58 }
 0x332   : > { %v3318_v46 = vpop.f32.mrb[47].mxu1  ;;  %v4022_v41 = vadd.f32 %v3316_v31, %v5982_v33 }
 0x333   : > { %v4024_v25 = vadd.f32 %v3318_v46, %v5984_v58 }
 0x334   : > { %v3618_v1 = vpop.f32.mrb[44].mxu0 }
 0x335   : > { %v4019_v47 = vadd.f32 %v4018_v63, %v3618_v1  ;;  %v3620_v40 = vpop.f32.mrb[45].mxu0 }
 0x336   : > { %v4021_v9 = vadd.f32 %v4020_v61, %v3620_v40  ;;  %v3622_v4 = vpop.f32.mrb[46].mxu0 }
 0x337   : > { %3671 = vst [vmem:[%s5991_s20 + $0x160] sm:$0xff] %v4019_v47  ;;  %v4023_v13 = vadd.f32 %v4022_v41, %v3622_v4  ;;  %v3624_v22 = vpop.f32.mrb[47].mxu0 }
 0x338   : > { %3672 = vst [vmem:[%s5991_s20 + $0x168] sm:$0xff] %v4021_v9  ;;  %v4025_v33 = vadd.f32 %v4024_v25, %v3624_v22 }
 0x339   : > { %3673 = vst [vmem:[%s5991_s20 + $0x170] sm:$0xff] %v4023_v13 }
 0x33a   : > { %3674 = vst [vmem:[%s5991_s20 + $0x178] sm:$0xff] %v4025_v33 }
 0x33b   : > { %4873 = shalt.err (!%p4870_p2)
}
 0x33c   : > { %s4874_s11 = scalar_lea.hbm %s6087_s23, 6144  ;;  %s4878_s22 = scalar_lea.hbm %s6139_s3, 12288 }
 0x33d   : > { %p4875_p13 = scmp.ne.s32.totalorder %s6087_s23, %s4874_s11  ;;  %p4879_p4 = scmp.lt.u32.totalorder %s6087_s23, %s6139_s3 }
 0x33e   : > { %p4880_p5 = scmp.lt.u32.totalorder %s4878_s22, %s4874_s11  ;;  %p4882_p11 = scmp.lt.u32.totalorder %s4874_s11, %s6087_s23 }
 0x33f   : > { %p4876_p6 = pnand %p4875_p13, %p6153_p0 }
 0x340   : > { %p4881_p8 = por %p4880_p5, %p4879_p4 }
 0x341   : > { %p4877_p10 = pneg %p4876_p6 }
 0x342   : > { %p4883_p1 = por %p4882_p11, %p4881_p8 }
 0x344   : > { %p4884_p3 = pnand %p4883_p1, %p4877_p10 }
 0x346   : > { %4887 = shalt.err (!%p4884_p3)
}
 0x347   : > { %s4940_s18 = smov 256   ;;  %s4941_s20 = smov 16  }
 0x348   : > { %4135 = dma.vmem_to_hbm [thread:$0]  (%p6153_p0), %s6090_s21, 6144, %s6087_s23, %s3676_s16, %s4940_s18, %s4940_s18, %s4941_s20  }
 0x349 PF: > { %s3705_s10 = sand.u32 1, %s4918_s12   ;;  %p6154_p7 = scmp.ne.s32.totalorder %s6144_s19, 0 }
 0x34a   : > { %p6155_p9 = scmp.ge.s32.totalorder %s4930_s15, 2  ;;  %s3706_s26 = scalar_lea.sflag [#allocation4], %s3705_s10 }
 0x34c   : > { %p4149_p12 = pnand %p6155_p9, %p6154_p7 }
 0x34e   : > { %4913 = dma.done.wait (!%p4149_p12), %s3706_s26, 6144  }
 0x34f   : > { %4915 = vsyncadd (!%p4149_p12), %s3706_s26, 4294961152  ;;  %p17_p2 = scmp.ge.s32.totalorder %s5072_s4, 4   ;;  %s6156_s12 = smov %s4922_s13 }
 0x350   : > { %s6157_s13 = smov %s4926_s14  ;;  %s6158_s14 = smov %s5088_s7 }
 0x351   : > { %s6159_s15 = smov %s5072_s4  ;;  %19 = sbr.rel (!%p17_p2) target bundleno = 6 (0x6), region = 85 }
 0x358   :  { %3711 = vsyncpa [#allocation3], 1 }
 0x359   :  { %3713 = vsyncpa [#allocation3 + $0x1], 1 }
 0x35a   :  { %3714 = vsyncpa [#allocation6], 1 }
 0x35b   :  { %3715 = vsyncpa [#allocation4], 1 }
 0x35c   :  { %3717 = vsyncpa [#allocation4 + $0x1], 1 }

</bundles_post_ra>
